<compile_context>
chip_gen: v7x
topology: tpu7x:2x2x1
jax: 0.10.0
libtpu: 0.0.40
codegen_flags: <defaults>
</compile_context>

<pallas_src>
import jax
import jax.numpy as jnp
import numpy as np
from jax.experimental import pallas as pl
from jax.experimental.pallas import tpu as pltpu

# ---------------- model hyper-parameters (args) ----------------
BATCH = 2          # batch_size
SEQ = 8            # args.lag  (seq_length)
NUM_NODES = 16     # args.num_nodes
INPUT_DIM = 2      # args.input_dim
HIDDEN = 32        # args.rnn_units
HORIZON = 4        # args.horizon
OUTPUT_DIM = 1     # args.output_dim
CHEB_K = 3         # args.cheb_k
NB_BLOCKS = 2      # args.nb_blocks
BN_EPS = 1e-5


# ---------------- the single fused Pallas kernel ----------------
def _mstgcn_fused_kernel(
    x0_ref,                        # [F, M]          input, columns ordered (t, b, n)
    adj_op_ref,                    # [K-1, M, M]     kron(I_{T*B}, adj_k) for k >= 1
    in_w_ref, in_b_ref,            # [H, F], [H, 1]             (BN folded)
    cheb_w_ref, cheb_b_ref,        # [NB, H, K*H], [NB, H, 1]
    tc_w_ref, tc_b_ref,            # [NB*2, H, 3*H], [NB*2, H, 1]   (BN folded)
    gate_w_ref, gate_b_ref,        # [NB, H, 2*H], [NB, H, 1]
    res_w_ref, res_b_ref,          # [NB, H, H], [NB, H, 1]
    bn_sc_ref, bn_sh_ref,          # [NB, H, 1]   eval-BN scale/shift of the gated mix
    out_w1_ref, out_b1_ref,        # [H, T*H], [H, 1]           (BN folded)
    out_w2_ref, out_b2_ref,        # [HO, H], [HO, 1]
    o_ref,                         # [HO, B*N]
):
    """Entire MSTGCN forward in one launch; every activation stays VMEM/vreg resident."""
    nb = res_w_ref.shape[0]
    k_rest = adj_op_ref.shape[0]            # K-1 non-identity Chebyshev operators
    m = x0_ref.shape[1]                     # T * B * N
    bn_cols = o_ref.shape[1]                # B * N  (columns per time step)
    seq = m // bn_cols

    def mm(a, b):
        return jnp.dot(a, b, preferred_element_type=jnp.float32)

    # Boundary masks for the circular rolls (restore the conv zero-padding semantics).
    col = jax.lax.broadcasted_iota(jnp.int32, (1, m), 1)
    mask_prev = (col >= bn_cols).astype(jnp.float32)        # a t-1 neighbor exists
    mask_next = (col < m - bn_cols).astype(jnp.float32)     # a t+1 neighbor exists

    # input_proj: 1x1 conv (+ folded eval BN) + ReLU                       -> x: [H, M]
    x = jnp.maximum(mm(in_w_ref[...], x0_ref[...]) + in_b_ref[...], 0.0)

    for blk in range(nb):
        # Chebyshev spatial filter.  k=0 operator is the identity -> reuse x directly;
        # batch the K per-order projections into one [H, K*H] @ [K*H, M] matmul.
        zs = [x] + [mm(x, adj_op_ref[k]) for k in range(k_rest)]
        s = mm(cheb_w_ref[blk], jnp.concatenate(zs, axis=0)) + cheb_b_ref[blk]

        # temporal Conv2d(H,H,(1,3),pad=(0,1)) + folded BN + ReLU, applied twice.
        # Shift taps via XLU roll + VPU mask, batch the 3 taps into one [H,3H] @ [3H,M] matmul.
        t = x
        for layer in range(2):
            t_prev = pltpu.roll(t, shift=bn_cols, axis=1) * mask_prev       # value at time t-1
            t_next = pltpu.roll(t, shift=m - bn_cols, axis=1) * mask_next   # value at time t+1
            t = jnp.maximum(
                mm(tc_w_ref[blk * 2 + layer],
                   jnp.concatenate([t_prev, t, t_next], axis=0))
                + tc_b_ref[blk * 2 + layer],
                0.0,
            )

        # gate (sigmoid -> EUP) on the channel-concat [s; t] (exactly the PyTorch concat-conv1x1),
        # residual, gated mix + folded eval-mode BN.
        g = jax.nn.sigmoid(
            mm(gate_w_ref[blk], jnp.concatenate([s, t], axis=0)) + gate_b_ref[blk]
        )
        r = mm(res_w_ref[blk], x) + res_b_ref[blk]
        x = bn_sc_ref[blk] * (g * s + (1.0 - g) * t + r) + bn_sh_ref[blk]

    # output_proj: Conv2d(H,H,(1,T)) + BN + ReLU collapses time.  Static lane slices restacked
    # along sublanes -> one [H, T*H] @ [T*H, B*N] matmul; then 1x1 conv to HO channels.
    x_stk = jnp.concatenate(
        [x[:, tt * bn_cols:(tt + 1) * bn_cols] for tt in range(seq)], axis=0)   # [T*H, B*N]
    y = jnp.maximum(mm(out_w1_ref[...], x_stk) + out_b1_ref[...], 0.0)
    o_ref[...] = (mm(out_w2_ref[...], y) + out_b2_ref[...]).astype(o_ref.dtype)


# ---------------- glue (plain JAX: operator construction, BN folding, packing) ----------------
def _bn_scale_shift(bn):
    gamma, beta, mean, var = bn
    scale = gamma / jnp.sqrt(var + BN_EPS)
    return scale, beta - mean * scale


def build_adj_matrix(node_emb, num_nodes, cheb_k):
    adj = jax.nn.softmax(jax.nn.relu(node_emb @ node_emb.T), axis=1)
    adj_list = [jnp.eye(num_nodes, dtype=node_emb.dtype), adj]
    for _ in range(2, cheb_k):
        adj_list.append(2.0 * adj @ adj_list[-1] - adj_list[-2])
    return jnp.stack(adj_list, axis=0)


def temporal_gnn_forward(X, P):
    """TemporalGNN(MSTGCN).forward — X: [B, T, N, F] -> ([B, horizon, N, output_dim], None)."""
    B, T, N, F = X.shape
    H, K = HIDDEN, CHEB_K
    BN_ = B * N
    M = T * BN_
    HO = HORIZON * OUTPUT_DIM
    f32 = jnp.float32

    # ---- structural operators: only the non-identity Chebyshev krons are shipped ----
    adj = build_adj_matrix(P["node_emb"], N, K)                                   # [K, N, N]
    eye_g = jnp.eye(T * B, dtype=f32)
    adj_op = jnp.stack([jnp.kron(eye_g, adj[k]) for k in range(1, K)])            # [K-1, M, M]

    # ---- fold eval-mode BatchNorms and pack weights into the batched kernel layout ----
    sc, sh = _bn_scale_shift(P["in_bn"])
    in_w = P["in_w"][:, :, 0, 0] * sc[:, None]                                    # [H, F]
    in_b = (sc * P["in_b"] + sh)[:, None]                                         # [H, 1]

    cheb_w_l, cheb_b_l, tc_w_l, tc_b_l = [], [], [], []
    gate_w_l, gate_b_l, res_w_l, res_b_l, bn_sc_l, bn_sh_l = [], [], [], [], [], []
    for p in P["blocks"]:
        Wt = jnp.transpose(p["cheb_w"], (0, 2, 1))                                # [K, Hout, Hin]
        cheb_w_l.append(jnp.concatenate([Wt[k] for k in range(K)], axis=1))       # [H, K*H]
        cheb_b_l.append(p["cheb_b"][:, None])
        for wname, bname, bnname in (("tc1_w", "tc1_b", "tbn1"), ("tc2_w", "tc2_b", "tbn2")):
            sc, sh = _bn_scale_shift(p[bnname])
            wf = p[wname][:, :, 0, :] * sc[:, None, None]                         # [H, H, 3]
            tc_w_l.append(jnp.concatenate([wf[:, :, d] for d in range(3)], axis=1))  # [H, 3H]
            tc_b_l.append((sc * p[bname] + sh)[:, None])
        gate_w_l.append(p["gate_w"][:, :, 0, 0])                                  # [H, 2H]
        gate_b_l.append(p["gate_b"][:, None])
        res_w_l.append(p["res_w"][:, :, 0, 0])
        res_b_l.append(p["res_b"][:, None])
        sc, sh = _bn_scale_shift(p["bn"])
        bn_sc_l.append(sc[:, None])
        bn_sh_l.append(sh[:, None])

    cheb_w = jnp.stack(cheb_w_l)                                                  # [NB, H, K*H]
    cheb_b = jnp.stack(cheb_b_l)                                                  # [NB, H, 1]
    tc_w = jnp.stack(tc_w_l)                                                      # [NB*2, H, 3H]
    tc_b = jnp.stack(tc_b_l)                                                      # [NB*2, H, 1]
    gate_w = jnp.stack(gate_w_l)                                                  # [NB, H, 2H]
    gate_b = jnp.stack(gate_b_l)
    res_w = jnp.stack(res_w_l)
    res_b = jnp.stack(res_b_l)
    bn_sc = jnp.stack(bn_sc_l)
    bn_sh = jnp.stack(bn_sh_l)

    sc, sh = _bn_scale_shift(P["out_bn"])
    wf = P["out_w1"][:, :, 0, :] * sc[:, None, None]                              # [H, H, T]
    out_w1 = jnp.concatenate([wf[:, :, t] for t in range(T)], axis=1)             # [H, T*H]
    out_b1 = (sc * P["out_b1"] + sh)[:, None]
    out_w2 = P["out_w2"][:, :, 0, 0]                                              # [HO, H]
    out_b2 = P["out_b2"][:, None]

    # ---- single fused Pallas launch for the whole network ----
    x0 = jnp.transpose(X, (3, 1, 0, 2)).reshape(F, M)       # [F, M], column = (t, b, n)

    out2 = pl.pallas_call(
        _mstgcn_fused_kernel,
        out_shape=jax.ShapeDtypeStruct((HO, BN_), f32),
    )(x0, adj_op, in_w, in_b,
      cheb_w, cheb_b, tc_w, tc_b, gate_w, gate_b, res_w, res_b,
      bn_sc, bn_sh, out_w1, out_b1, out_w2, out_b2)

    y = out2.reshape(HORIZON, OUTPUT_DIM, B, N).transpose(2, 0, 3, 1)   # [B, horizon, N, od]
    return y, None


# ---------------- pure-JAX reference (mirrors PyTorch ops 1:1, no folding) ----------------
def reference_forward(X, P):
    B, T, N, F = X.shape
    adj_mx = build_adj_matrix(P["node_emb"], N, CHEB_K)

    def bn(x, g, b, m, v):
        return (x - m[None, :, None, None]) / jnp.sqrt(v[None, :, None, None] + BN_EPS) \
            * g[None, :, None, None] + b[None, :, None, None]

    def conv1x1(x, w, b):
        return jnp.einsum("bcnt,oc->bont", x, w[:, :, 0, 0]) + b[None, :, None, None]

    def conv1x3(x, w, b):
        xp = jnp.pad(x, ((0, 0), (0, 0), (0, 0), (1, 1)))
        Tn = x.shape[-1]
        out = sum(jnp.einsum("bcnt,oc->bont", xp[..., d:d + Tn], w[:, :, 0, d]) for d in range(3))
        return out + b[None, :, None, None]

    def cheb(x, w, bias):
        Bx, C, Nx, Tx = x.shape
        xr = x.transpose(0, 3, 1, 2).reshape(Bx * Tx, C, Nx)
        out = jnp.zeros((Bx * Tx, w.shape[2], Nx), x.dtype)
        for k in range(w.shape[0]):
            xk = jnp.einsum("bin,nm->bim", xr, adj_mx[k])
            out = out + jnp.einsum("bim,io->bom", xk, w[k])
        out = out + bias.reshape(1, -1, 1)
        return out.reshape(Bx, Tx, w.shape[2], Nx).transpose(0, 2, 3, 1)

    x = X.transpose(0, 3, 2, 1)
    x = jax.nn.relu(bn(conv1x1(x, P["in_w"], P["in_b"]), *P["in_bn"]))
    for p in P["blocks"]:
        s = cheb(x, p["cheb_w"], p["cheb_b"])
        t = jax.nn.relu(bn(conv1x3(x, p["tc1_w"], p["tc1_b"]), *p["tbn1"]))
        t = jax.nn.relu(bn(conv1x3(t, p["tc2_w"], p["tc2_b"]), *p["tbn2"]))
        cat = jnp.concatenate([s, t], axis=1)
        g = jax.nn.sigmoid(conv1x1(cat, p["gate_w"], p["gate_b"]))
        r = conv1x1(x, p["res_w"], p["res_b"])
        x = bn(g * s + (1 - g) * t + r, *p["bn"])
    y = jnp.einsum("bcnt,oct->bon", x, P["out_w1"][:, :, 0, :]) + P["out_b1"][None, :, None]
    y = jax.nn.relu(bn(y[..., None], *P["out_bn"]))
    y = conv1x1(y, P["out_w2"], P["out_b2"])                       # [B, horizon*od, N, 1]
    y = y.reshape(B, HORIZON, OUTPUT_DIM, N).transpose(0, 1, 3, 2)
    return y, None


# ---------------- deterministic parameter init ----------------
def init_params(key):
    keys = iter(jax.random.split(key, 128))

    def nrm(shape, s=0.1):
        return (s * jax.random.normal(next(keys), shape)).astype(jnp.float32)

    def bn_params(c):
        return (
            (1.0 + 0.05 * jax.random.normal(next(keys), (c,))).astype(jnp.float32),
            (0.05 * jax.random.normal(next(keys), (c,))).astype(jnp.float32),
            (0.05 * jax.random.normal(next(keys), (c,))).astype(jnp.float32),
            (1.0 + 0.1 * jnp.abs(jax.random.normal(next(keys), (c,)))).astype(jnp.float32),
        )

    H, F, T, N = HIDDEN, INPUT_DIM, SEQ, NUM_NODES
    P = {
        "node_emb": nrm((N, H), 0.3),
        "in_w": nrm((H, F, 1, 1)), "in_b": nrm((H,)), "in_bn": bn_params(H),
        "blocks": [],
        "out_w1": nrm((H, H, 1, T)), "out_b1": nrm((H,)), "out_bn": bn_params(H),
        "out_w2": nrm((HORIZON * OUTPUT_DIM, H, 1, 1)), "out_b2": nrm((HORIZON * OUTPUT_DIM,)),
    }
    for _ in range(NB_BLOCKS):
        P["blocks"].append({
            "cheb_w": nrm((CHEB_K, H, H)), "cheb_b": nrm((H,)),
            "tc1_w": nrm((H, H, 1, 3)), "tc1_b": nrm((H,)), "tbn1": bn_params(H),
            "tc2_w": nrm((H, H, 1, 3)), "tc2_b": nrm((H,)), "tbn2": bn_params(H),
            "gate_w": nrm((H, 2 * H, 1, 1)), "gate_b": nrm((H,)),
            "res_w": nrm((H, H, 1, 1)), "res_b": nrm((H,)),
            "bn": bn_params(H),
        })
    return P


if __name__ == "__main__":
    key = jax.random.PRNGKey(0)
    kx, kp = jax.random.split(key)
    X = jax.random.normal(kx, (BATCH, SEQ, NUM_NODES, INPUT_DIM), dtype=jnp.float32)
    params = init_params(kp)

    fwd = jax.jit(temporal_gnn_forward)
    out, aux = fwd(X, params)
    out = jax.block_until_ready(out)
    assert out.shape == (BATCH, HORIZON, NUM_NODES, OUTPUT_DIM), out.shape
    assert aux is None

    ref, _ = reference_forward(X, params)
    ref = jax.block_until_ready(ref)
    np.testing.assert_allclose(np.asarray(out), np.asarray(ref), rtol=2e-3, atol=2e-3)

    print("KERNEL_OK")
</pallas_src>

<mosaic_0001>
module attributes {stable_mosaic.version = 11 : i64} {
  func.func @_mstgcn_fused_kernel(%arg0: memref<2x256xf32, #tpu.memory_space<vmem>>, %arg1: memref<2x256x256xf32, #tpu.memory_space<vmem>>, %arg2: memref<32x2xf32, #tpu.memory_space<vmem>>, %arg3: memref<32x1xf32, #tpu.memory_space<vmem>>, %arg4: memref<2x32x96xf32, #tpu.memory_space<vmem>>, %arg5: memref<2x32x1xf32, #tpu.memory_space<vmem>>, %arg6: memref<4x32x96xf32, #tpu.memory_space<vmem>>, %arg7: memref<4x32x1xf32, #tpu.memory_space<vmem>>, %arg8: memref<2x32x64xf32, #tpu.memory_space<vmem>>, %arg9: memref<2x32x1xf32, #tpu.memory_space<vmem>>, %arg10: memref<2x32x32xf32, #tpu.memory_space<vmem>>, %arg11: memref<2x32x1xf32, #tpu.memory_space<vmem>>, %arg12: memref<2x32x1xf32, #tpu.memory_space<vmem>>, %arg13: memref<2x32x1xf32, #tpu.memory_space<vmem>>, %arg14: memref<32x256xf32, #tpu.memory_space<vmem>>, %arg15: memref<32x1xf32, #tpu.memory_space<vmem>>, %arg16: memref<4x32xf32, #tpu.memory_space<vmem>>, %arg17: memref<4x1xf32, #tpu.memory_space<vmem>>, %arg18: memref<4x32xf32, #tpu.memory_space<vmem>>) attributes {dimension_semantics = [], scalar_prefetch = 0 : i64, scratch_operands = 0 : i64, tpu.core_type = #tpu.core_type<tc>} {
    %0 = tpu.iota {dimensions = array<i32: 1>} : vector<1x256xi32>
    %c32_i32 = arith.constant 32 : i32
    %1 = vector.broadcast %c32_i32 : i32 to vector<1x256xi32>
    %2 = arith.cmpi sge, %0, %1 : vector<1x256xi32>
    %3 = arith.extui %2 : vector<1x256xi1> to vector<1x256xi32>
    %4 = arith.sitofp %3 : vector<1x256xi32> to vector<1x256xf32>
    %c224_i32 = arith.constant 224 : i32
    %5 = vector.broadcast %c224_i32 : i32 to vector<1x256xi32>
    %6 = arith.cmpi slt, %0, %5 : vector<1x256xi32>
    %7 = arith.extui %6 : vector<1x256xi1> to vector<1x256xi32>
    %8 = arith.sitofp %7 : vector<1x256xi32> to vector<1x256xf32>
    %c0 = arith.constant 0 : index
    %c0_0 = arith.constant 0 : index
    %9 = vector.load %arg2[%c0, %c0_0] : memref<32x2xf32, #tpu.memory_space<vmem>>, vector<32x2xf32>
    %c0_1 = arith.constant 0 : index
    %c0_2 = arith.constant 0 : index
    %10 = vector.load %arg0[%c0_1, %c0_2] : memref<2x256xf32, #tpu.memory_space<vmem>>, vector<2x256xf32>
    %cst = arith.constant dense<0.000000e+00> : vector<32x256xf32>
    %11 = tpu.matmul %9, %10, %cst {dimension_numbers = #tpu.dot_dimension_numbers<[1], [0], [0], [1], [0, 0, 1, 1], [], []>} : vector<32x2xf32>, vector<2x256xf32>, vector<32x256xf32> -> vector<32x256xf32>
    %c0_3 = arith.constant 0 : index
    %c0_4 = arith.constant 0 : index
    %12 = vector.load %arg3[%c0_3, %c0_4] : memref<32x1xf32, #tpu.memory_space<vmem>>, vector<32x1xf32>
    %13 = vector.broadcast %12 : vector<32x1xf32> to vector<32x256xf32>
    %14 = arith.addf %11, %13 : vector<32x256xf32>
    %cst_5 = arith.constant 0.000000e+00 : f32
    %15 = vector.broadcast %cst_5 : f32 to vector<32x256xf32>
    %16 = arith.maximumf %14, %15 : vector<32x256xf32>
    %c0_6 = arith.constant 0 : index
    %c0_7 = arith.constant 0 : index
    %c0_8 = arith.constant 0 : index
    %17 = vector.load %arg1[%c0_6, %c0_7, %c0_8] : memref<2x256x256xf32, #tpu.memory_space<vmem>>, vector<1x256x256xf32>
    %18 = vector.shape_cast %17 : vector<1x256x256xf32> to vector<256x256xf32>
    %cst_9 = arith.constant dense<0.000000e+00> : vector<32x256xf32>
    %19 = tpu.matmul %16, %18, %cst_9 {dimension_numbers = #tpu.dot_dimension_numbers<[1], [0], [0], [1], [0, 0, 1, 1], [], []>} : vector<32x256xf32>, vector<256x256xf32>, vector<32x256xf32> -> vector<32x256xf32>
    %c1 = arith.constant 1 : index
    %c0_10 = arith.constant 0 : index
    %c0_11 = arith.constant 0 : index
    %20 = vector.load %arg1[%c1, %c0_10, %c0_11] : memref<2x256x256xf32, #tpu.memory_space<vmem>>, vector<1x256x256xf32>
    %21 = vector.shape_cast %20 : vector<1x256x256xf32> to vector<256x256xf32>
    %cst_12 = arith.constant dense<0.000000e+00> : vector<32x256xf32>
    %22 = tpu.matmul %16, %21, %cst_12 {dimension_numbers = #tpu.dot_dimension_numbers<[1], [0], [0], [1], [0, 0, 1, 1], [], []>} : vector<32x256xf32>, vector<256x256xf32>, vector<32x256xf32> -> vector<32x256xf32>
    %c0_13 = arith.constant 0 : index
    %c0_14 = arith.constant 0 : index
    %c0_15 = arith.constant 0 : index
    %23 = vector.load %arg4[%c0_13, %c0_14, %c0_15] : memref<2x32x96xf32, #tpu.memory_space<vmem>>, vector<1x32x96xf32>
    %24 = vector.shape_cast %23 : vector<1x32x96xf32> to vector<32x96xf32>
    %25 = tpu.concatenate %16, %19, %22 in 0 : vector<32x256xf32>, vector<32x256xf32>, vector<32x256xf32> -> vector<96x256xf32>
    %cst_16 = arith.constant dense<0.000000e+00> : vector<32x256xf32>
    %26 = tpu.matmul %24, %25, %cst_16 {dimension_numbers = #tpu.dot_dimension_numbers<[1], [0], [0], [1], [0, 0, 1, 1], [], []>} : vector<32x96xf32>, vector<96x256xf32>, vector<32x256xf32> -> vector<32x256xf32>
    %c0_17 = arith.constant 0 : index
    %c0_18 = arith.constant 0 : index
    %c0_19 = arith.constant 0 : index
    %27 = vector.load %arg5[%c0_17, %c0_18, %c0_19] : memref<2x32x1xf32, #tpu.memory_space<vmem>>, vector<1x32x1xf32>
    %28 = vector.shape_cast %27 : vector<1x32x1xf32> to vector<32x1xf32>
    %29 = vector.broadcast %28 : vector<32x1xf32> to vector<32x256xf32>
    %30 = arith.addf %26, %29 : vector<32x256xf32>
    %c32_i32_20 = arith.constant 32 : i32
    %31 = tpu.dynamic_rotate %16 by %c32_i32_20 dim 1 : vector<32x256xf32>, i32 -> vector<32x256xf32>
    %32 = vector.broadcast %4 : vector<1x256xf32> to vector<32x256xf32>
    %33 = arith.mulf %31, %32 : vector<32x256xf32>
    %c224_i32_21 = arith.constant 224 : i32
    %34 = tpu.dynamic_rotate %16 by %c224_i32_21 dim 1 : vector<32x256xf32>, i32 -> vector<32x256xf32>
    %35 = vector.broadcast %8 : vector<1x256xf32> to vector<32x256xf32>
    %36 = arith.mulf %34, %35 : vector<32x256xf32>
    %c0_22 = arith.constant 0 : index
    %c0_23 = arith.constant 0 : index
    %c0_24 = arith.constant 0 : index
    %37 = vector.load %arg6[%c0_22, %c0_23, %c0_24] : memref<4x32x96xf32, #tpu.memory_space<vmem>>, vector<1x32x96xf32>
    %38 = vector.shape_cast %37 : vector<1x32x96xf32> to vector<32x96xf32>
    %39 = tpu.concatenate %33, %16, %36 in 0 : vector<32x256xf32>, vector<32x256xf32>, vector<32x256xf32> -> vector<96x256xf32>
    %cst_25 = arith.constant dense<0.000000e+00> : vector<32x256xf32>
    %40 = tpu.matmul %38, %39, %cst_25 {dimension_numbers = #tpu.dot_dimension_numbers<[1], [0], [0], [1], [0, 0, 1, 1], [], []>} : vector<32x96xf32>, vector<96x256xf32>, vector<32x256xf32> -> vector<32x256xf32>
    %c0_26 = arith.constant 0 : index
    %c0_27 = arith.constant 0 : index
    %c0_28 = arith.constant 0 : index
    %41 = vector.load %arg7[%c0_26, %c0_27, %c0_28] : memref<4x32x1xf32, #tpu.memory_space<vmem>>, vector<1x32x1xf32>
    %42 = vector.shape_cast %41 : vector<1x32x1xf32> to vector<32x1xf32>
    %43 = vector.broadcast %42 : vector<32x1xf32> to vector<32x256xf32>
    %44 = arith.addf %40, %43 : vector<32x256xf32>
    %cst_29 = arith.constant 0.000000e+00 : f32
    %45 = vector.broadcast %cst_29 : f32 to vector<32x256xf32>
    %46 = arith.maximumf %44, %45 : vector<32x256xf32>
    %c32_i32_30 = arith.constant 32 : i32
    %47 = tpu.dynamic_rotate %46 by %c32_i32_30 dim 1 : vector<32x256xf32>, i32 -> vector<32x256xf32>
    %48 = vector.broadcast %4 : vector<1x256xf32> to vector<32x256xf32>
    %49 = arith.mulf %47, %48 : vector<32x256xf32>
    %c224_i32_31 = arith.constant 224 : i32
    %50 = tpu.dynamic_rotate %46 by %c224_i32_31 dim 1 : vector<32x256xf32>, i32 -> vector<32x256xf32>
    %51 = vector.broadcast %8 : vector<1x256xf32> to vector<32x256xf32>
    %52 = arith.mulf %50, %51 : vector<32x256xf32>
    %c1_32 = arith.constant 1 : index
    %c0_33 = arith.constant 0 : index
    %c0_34 = arith.constant 0 : index
    %53 = vector.load %arg6[%c1_32, %c0_33, %c0_34] : memref<4x32x96xf32, #tpu.memory_space<vmem>>, vector<1x32x96xf32>
    %54 = vector.shape_cast %53 : vector<1x32x96xf32> to vector<32x96xf32>
    %55 = tpu.concatenate %49, %46, %52 in 0 : vector<32x256xf32>, vector<32x256xf32>, vector<32x256xf32> -> vector<96x256xf32>
    %cst_35 = arith.constant dense<0.000000e+00> : vector<32x256xf32>
    %56 = tpu.matmul %54, %55, %cst_35 {dimension_numbers = #tpu.dot_dimension_numbers<[1], [0], [0], [1], [0, 0, 1, 1], [], []>} : vector<32x96xf32>, vector<96x256xf32>, vector<32x256xf32> -> vector<32x256xf32>
    %c1_36 = arith.constant 1 : index
    %c0_37 = arith.constant 0 : index
    %c0_38 = arith.constant 0 : index
    %57 = vector.load %arg7[%c1_36, %c0_37, %c0_38] : memref<4x32x1xf32, #tpu.memory_space<vmem>>, vector<1x32x1xf32>
    %58 = vector.shape_cast %57 : vector<1x32x1xf32> to vector<32x1xf32>
    %59 = vector.broadcast %58 : vector<32x1xf32> to vector<32x256xf32>
    %60 = arith.addf %56, %59 : vector<32x256xf32>
    %cst_39 = arith.constant 0.000000e+00 : f32
    %61 = vector.broadcast %cst_39 : f32 to vector<32x256xf32>
    %62 = arith.maximumf %60, %61 : vector<32x256xf32>
    %c0_40 = arith.constant 0 : index
    %c0_41 = arith.constant 0 : index
    %c0_42 = arith.constant 0 : index
    %63 = vector.load %arg8[%c0_40, %c0_41, %c0_42] : memref<2x32x64xf32, #tpu.memory_space<vmem>>, vector<1x32x64xf32>
    %64 = vector.shape_cast %63 : vector<1x32x64xf32> to vector<32x64xf32>
    %65 = tpu.concatenate %30, %62 in 0 : vector<32x256xf32>, vector<32x256xf32> -> vector<64x256xf32>
    %cst_43 = arith.constant dense<0.000000e+00> : vector<32x256xf32>
    %66 = tpu.matmul %64, %65, %cst_43 {dimension_numbers = #tpu.dot_dimension_numbers<[1], [0], [0], [1], [0, 0, 1, 1], [], []>} : vector<32x64xf32>, vector<64x256xf32>, vector<32x256xf32> -> vector<32x256xf32>
    %c0_44 = arith.constant 0 : index
    %c0_45 = arith.constant 0 : index
    %c0_46 = arith.constant 0 : index
    %67 = vector.load %arg9[%c0_44, %c0_45, %c0_46] : memref<2x32x1xf32, #tpu.memory_space<vmem>>, vector<1x32x1xf32>
    %68 = vector.shape_cast %67 : vector<1x32x1xf32> to vector<32x1xf32>
    %69 = vector.broadcast %68 : vector<32x1xf32> to vector<32x256xf32>
    %70 = arith.addf %66, %69 : vector<32x256xf32>
    %71 = arith.negf %70 : vector<32x256xf32>
    %72 = math.exp %71 : vector<32x256xf32>
    %cst_47 = arith.constant 1.000000e+00 : f32
    %73 = vector.broadcast %cst_47 : f32 to vector<32x256xf32>
    %74 = arith.addf %73, %72 : vector<32x256xf32>
    %75 = arith.divf %73, %74 : vector<32x256xf32>
    %c0_48 = arith.constant 0 : index
    %c0_49 = arith.constant 0 : index
    %c0_50 = arith.constant 0 : index
    %76 = vector.load %arg10[%c0_48, %c0_49, %c0_50] : memref<2x32x32xf32, #tpu.memory_space<vmem>>, vector<1x32x32xf32>
    %77 = vector.shape_cast %76 : vector<1x32x32xf32> to vector<32x32xf32>
    %cst_51 = arith.constant dense<0.000000e+00> : vector<32x256xf32>
    %78 = tpu.matmul %77, %16, %cst_51 {dimension_numbers = #tpu.dot_dimension_numbers<[1], [0], [0], [1], [0, 0, 1, 1], [], []>} : vector<32x32xf32>, vector<32x256xf32>, vector<32x256xf32> -> vector<32x256xf32>
    %c0_52 = arith.constant 0 : index
    %c0_53 = arith.constant 0 : index
    %c0_54 = arith.constant 0 : index
    %79 = vector.load %arg11[%c0_52, %c0_53, %c0_54] : memref<2x32x1xf32, #tpu.memory_space<vmem>>, vector<1x32x1xf32>
    %80 = vector.shape_cast %79 : vector<1x32x1xf32> to vector<32x1xf32>
    %81 = vector.broadcast %80 : vector<32x1xf32> to vector<32x256xf32>
    %82 = arith.addf %78, %81 : vector<32x256xf32>
    %c0_55 = arith.constant 0 : index
    %c0_56 = arith.constant 0 : index
    %c0_57 = arith.constant 0 : index
    %83 = vector.load %arg12[%c0_55, %c0_56, %c0_57] : memref<2x32x1xf32, #tpu.memory_space<vmem>>, vector<1x32x1xf32>
    %84 = vector.shape_cast %83 : vector<1x32x1xf32> to vector<32x1xf32>
    %85 = arith.mulf %75, %30 : vector<32x256xf32>
    %cst_58 = arith.constant 1.000000e+00 : f32
    %86 = vector.broadcast %cst_58 : f32 to vector<32x256xf32>
    %87 = arith.subf %86, %75 : vector<32x256xf32>
    %88 = arith.mulf %87, %62 : vector<32x256xf32>
    %89 = arith.addf %85, %88 : vector<32x256xf32>
    %90 = arith.addf %89, %82 : vector<32x256xf32>
    %91 = vector.broadcast %84 : vector<32x1xf32> to vector<32x256xf32>
    %92 = arith.mulf %91, %90 : vector<32x256xf32>
    %c0_59 = arith.constant 0 : index
    %c0_60 = arith.constant 0 : index
    %c0_61 = arith.constant 0 : index
    %93 = vector.load %arg13[%c0_59, %c0_60, %c0_61] : memref<2x32x1xf32, #tpu.memory_space<vmem>>, vector<1x32x1xf32>
    %94 = vector.shape_cast %93 : vector<1x32x1xf32> to vector<32x1xf32>
    %95 = vector.broadcast %94 : vector<32x1xf32> to vector<32x256xf32>
    %96 = arith.addf %92, %95 : vector<32x256xf32>
    %c0_62 = arith.constant 0 : index
    %c0_63 = arith.constant 0 : index
    %c0_64 = arith.constant 0 : index
    %97 = vector.load %arg1[%c0_62, %c0_63, %c0_64] : memref<2x256x256xf32, #tpu.memory_space<vmem>>, vector<1x256x256xf32>
    %98 = vector.shape_cast %97 : vector<1x256x256xf32> to vector<256x256xf32>
    %cst_65 = arith.constant dense<0.000000e+00> : vector<32x256xf32>
    %99 = tpu.matmul %96, %98, %cst_65 {dimension_numbers = #tpu.dot_dimension_numbers<[1], [0], [0], [1], [0, 0, 1, 1], [], []>} : vector<32x256xf32>, vector<256x256xf32>, vector<32x256xf32> -> vector<32x256xf32>
    %c1_66 = arith.constant 1 : index
    %c0_67 = arith.constant 0 : index
    %c0_68 = arith.constant 0 : index
    %100 = vector.load %arg1[%c1_66, %c0_67, %c0_68] : memref<2x256x256xf32, #tpu.memory_space<vmem>>, vector<1x256x256xf32>
    %101 = vector.shape_cast %100 : vector<1x256x256xf32> to vector<256x256xf32>
    %cst_69 = arith.constant dense<0.000000e+00> : vector<32x256xf32>
    %102 = tpu.matmul %96, %101, %cst_69 {dimension_numbers = #tpu.dot_dimension_numbers<[1], [0], [0], [1], [0, 0, 1, 1], [], []>} : vector<32x256xf32>, vector<256x256xf32>, vector<32x256xf32> -> vector<32x256xf32>
    %c1_70 = arith.constant 1 : index
    %c0_71 = arith.constant 0 : index
    %c0_72 = arith.constant 0 : index
    %103 = vector.load %arg4[%c1_70, %c0_71, %c0_72] : memref<2x32x96xf32, #tpu.memory_space<vmem>>, vector<1x32x96xf32>
    %104 = vector.shape_cast %103 : vector<1x32x96xf32> to vector<32x96xf32>
    %105 = tpu.concatenate %96, %99, %102 in 0 : vector<32x256xf32>, vector<32x256xf32>, vector<32x256xf32> -> vector<96x256xf32>
    %cst_73 = arith.constant dense<0.000000e+00> : vector<32x256xf32>
    %106 = tpu.matmul %104, %105, %cst_73 {dimension_numbers = #tpu.dot_dimension_numbers<[1], [0], [0], [1], [0, 0, 1, 1], [], []>} : vector<32x96xf32>, vector<96x256xf32>, vector<32x256xf32> -> vector<32x256xf32>
    %c1_74 = arith.constant 1 : index
    %c0_75 = arith.constant 0 : index
    %c0_76 = arith.constant 0 : index
    %107 = vector.load %arg5[%c1_74, %c0_75, %c0_76] : memref<2x32x1xf32, #tpu.memory_space<vmem>>, vector<1x32x1xf32>
    %108 = vector.shape_cast %107 : vector<1x32x1xf32> to vector<32x1xf32>
    %109 = vector.broadcast %108 : vector<32x1xf32> to vector<32x256xf32>
    %110 = arith.addf %106, %109 : vector<32x256xf32>
    %c32_i32_77 = arith.constant 32 : i32
    %111 = tpu.dynamic_rotate %96 by %c32_i32_77 dim 1 : vector<32x256xf32>, i32 -> vector<32x256xf32>
    %112 = vector.broadcast %4 : vector<1x256xf32> to vector<32x256xf32>
    %113 = arith.mulf %111, %112 : vector<32x256xf32>
    %c224_i32_78 = arith.constant 224 : i32
    %114 = tpu.dynamic_rotate %96 by %c224_i32_78 dim 1 : vector<32x256xf32>, i32 -> vector<32x256xf32>
    %115 = vector.broadcast %8 : vector<1x256xf32> to vector<32x256xf32>
    %116 = arith.mulf %114, %115 : vector<32x256xf32>
    %c2 = arith.constant 2 : index
    %c0_79 = arith.constant 0 : index
    %c0_80 = arith.constant 0 : index
    %117 = vector.load %arg6[%c2, %c0_79, %c0_80] : memref<4x32x96xf32, #tpu.memory_space<vmem>>, vector<1x32x96xf32>
    %118 = vector.shape_cast %117 : vector<1x32x96xf32> to vector<32x96xf32>
    %119 = tpu.concatenate %113, %96, %116 in 0 : vector<32x256xf32>, vector<32x256xf32>, vector<32x256xf32> -> vector<96x256xf32>
    %cst_81 = arith.constant dense<0.000000e+00> : vector<32x256xf32>
    %120 = tpu.matmul %118, %119, %cst_81 {dimension_numbers = #tpu.dot_dimension_numbers<[1], [0], [0], [1], [0, 0, 1, 1], [], []>} : vector<32x96xf32>, vector<96x256xf32>, vector<32x256xf32> -> vector<32x256xf32>
    %c2_82 = arith.constant 2 : index
    %c0_83 = arith.constant 0 : index
    %c0_84 = arith.constant 0 : index
    %121 = vector.load %arg7[%c2_82, %c0_83, %c0_84] : memref<4x32x1xf32, #tpu.memory_space<vmem>>, vector<1x32x1xf32>
    %122 = vector.shape_cast %121 : vector<1x32x1xf32> to vector<32x1xf32>
    %123 = vector.broadcast %122 : vector<32x1xf32> to vector<32x256xf32>
    %124 = arith.addf %120, %123 : vector<32x256xf32>
    %cst_85 = arith.constant 0.000000e+00 : f32
    %125 = vector.broadcast %cst_85 : f32 to vector<32x256xf32>
    %126 = arith.maximumf %124, %125 : vector<32x256xf32>
    %c32_i32_86 = arith.constant 32 : i32
    %127 = tpu.dynamic_rotate %126 by %c32_i32_86 dim 1 : vector<32x256xf32>, i32 -> vector<32x256xf32>
    %128 = vector.broadcast %4 : vector<1x256xf32> to vector<32x256xf32>
    %129 = arith.mulf %127, %128 : vector<32x256xf32>
    %c224_i32_87 = arith.constant 224 : i32
    %130 = tpu.dynamic_rotate %126 by %c224_i32_87 dim 1 : vector<32x256xf32>, i32 -> vector<32x256xf32>
    %131 = vector.broadcast %8 : vector<1x256xf32> to vector<32x256xf32>
    %132 = arith.mulf %130, %131 : vector<32x256xf32>
    %c3 = arith.constant 3 : index
    %c0_88 = arith.constant 0 : index
    %c0_89 = arith.constant 0 : index
    %133 = vector.load %arg6[%c3, %c0_88, %c0_89] : memref<4x32x96xf32, #tpu.memory_space<vmem>>, vector<1x32x96xf32>
    %134 = vector.shape_cast %133 : vector<1x32x96xf32> to vector<32x96xf32>
    %135 = tpu.concatenate %129, %126, %132 in 0 : vector<32x256xf32>, vector<32x256xf32>, vector<32x256xf32> -> vector<96x256xf32>
    %cst_90 = arith.constant dense<0.000000e+00> : vector<32x256xf32>
    %136 = tpu.matmul %134, %135, %cst_90 {dimension_numbers = #tpu.dot_dimension_numbers<[1], [0], [0], [1], [0, 0, 1, 1], [], []>} : vector<32x96xf32>, vector<96x256xf32>, vector<32x256xf32> -> vector<32x256xf32>
    %c3_91 = arith.constant 3 : index
    %c0_92 = arith.constant 0 : index
    %c0_93 = arith.constant 0 : index
    %137 = vector.load %arg7[%c3_91, %c0_92, %c0_93] : memref<4x32x1xf32, #tpu.memory_space<vmem>>, vector<1x32x1xf32>
    %138 = vector.shape_cast %137 : vector<1x32x1xf32> to vector<32x1xf32>
    %139 = vector.broadcast %138 : vector<32x1xf32> to vector<32x256xf32>
    %140 = arith.addf %136, %139 : vector<32x256xf32>
    %cst_94 = arith.constant 0.000000e+00 : f32
    %141 = vector.broadcast %cst_94 : f32 to vector<32x256xf32>
    %142 = arith.maximumf %140, %141 : vector<32x256xf32>
    %c1_95 = arith.constant 1 : index
    %c0_96 = arith.constant 0 : index
    %c0_97 = arith.constant 0 : index
    %143 = vector.load %arg8[%c1_95, %c0_96, %c0_97] : memref<2x32x64xf32, #tpu.memory_space<vmem>>, vector<1x32x64xf32>
    %144 = vector.shape_cast %143 : vector<1x32x64xf32> to vector<32x64xf32>
    %145 = tpu.concatenate %110, %142 in 0 : vector<32x256xf32>, vector<32x256xf32> -> vector<64x256xf32>
    %cst_98 = arith.constant dense<0.000000e+00> : vector<32x256xf32>
    %146 = tpu.matmul %144, %145, %cst_98 {dimension_numbers = #tpu.dot_dimension_numbers<[1], [0], [0], [1], [0, 0, 1, 1], [], []>} : vector<32x64xf32>, vector<64x256xf32>, vector<32x256xf32> -> vector<32x256xf32>
    %c1_99 = arith.constant 1 : index
    %c0_100 = arith.constant 0 : index
    %c0_101 = arith.constant 0 : index
    %147 = vector.load %arg9[%c1_99, %c0_100, %c0_101] : memref<2x32x1xf32, #tpu.memory_space<vmem>>, vector<1x32x1xf32>
    %148 = vector.shape_cast %147 : vector<1x32x1xf32> to vector<32x1xf32>
    %149 = vector.broadcast %148 : vector<32x1xf32> to vector<32x256xf32>
    %150 = arith.addf %146, %149 : vector<32x256xf32>
    %151 = arith.negf %150 : vector<32x256xf32>
    %152 = math.exp %151 : vector<32x256xf32>
    %cst_102 = arith.constant 1.000000e+00 : f32
    %153 = vector.broadcast %cst_102 : f32 to vector<32x256xf32>
    %154 = arith.addf %153, %152 : vector<32x256xf32>
    %155 = arith.divf %153, %154 : vector<32x256xf32>
    %c1_103 = arith.constant 1 : index
    %c0_104 = arith.constant 0 : index
    %c0_105 = arith.constant 0 : index
    %156 = vector.load %arg10[%c1_103, %c0_104, %c0_105] : memref<2x32x32xf32, #tpu.memory_space<vmem>>, vector<1x32x32xf32>
    %157 = vector.shape_cast %156 : vector<1x32x32xf32> to vector<32x32xf32>
    %cst_106 = arith.constant dense<0.000000e+00> : vector<32x256xf32>
    %158 = tpu.matmul %157, %96, %cst_106 {dimension_numbers = #tpu.dot_dimension_numbers<[1], [0], [0], [1], [0, 0, 1, 1], [], []>} : vector<32x32xf32>, vector<32x256xf32>, vector<32x256xf32> -> vector<32x256xf32>
    %c1_107 = arith.constant 1 : index
    %c0_108 = arith.constant 0 : index
    %c0_109 = arith.constant 0 : index
    %159 = vector.load %arg11[%c1_107, %c0_108, %c0_109] : memref<2x32x1xf32, #tpu.memory_space<vmem>>, vector<1x32x1xf32>
    %160 = vector.shape_cast %159 : vector<1x32x1xf32> to vector<32x1xf32>
    %161 = vector.broadcast %160 : vector<32x1xf32> to vector<32x256xf32>
    %162 = arith.addf %158, %161 : vector<32x256xf32>
    %c1_110 = arith.constant 1 : index
    %c0_111 = arith.constant 0 : index
    %c0_112 = arith.constant 0 : index
    %163 = vector.load %arg12[%c1_110, %c0_111, %c0_112] : memref<2x32x1xf32, #tpu.memory_space<vmem>>, vector<1x32x1xf32>
    %164 = vector.shape_cast %163 : vector<1x32x1xf32> to vector<32x1xf32>
    %165 = arith.mulf %155, %110 : vector<32x256xf32>
    %cst_113 = arith.constant 1.000000e+00 : f32
    %166 = vector.broadcast %cst_113 : f32 to vector<32x256xf32>
    %167 = arith.subf %166, %155 : vector<32x256xf32>
    %168 = arith.mulf %167, %142 : vector<32x256xf32>
    %169 = arith.addf %165, %168 : vector<32x256xf32>
    %170 = arith.addf %169, %162 : vector<32x256xf32>
    %171 = vector.broadcast %164 : vector<32x1xf32> to vector<32x256xf32>
    %172 = arith.mulf %171, %170 : vector<32x256xf32>
    %c1_114 = arith.constant 1 : index
    %c0_115 = arith.constant 0 : index
    %c0_116 = arith.constant 0 : index
    %173 = vector.load %arg13[%c1_114, %c0_115, %c0_116] : memref<2x32x1xf32, #tpu.memory_space<vmem>>, vector<1x32x1xf32>
    %174 = vector.shape_cast %173 : vector<1x32x1xf32> to vector<32x1xf32>
    %175 = vector.broadcast %174 : vector<32x1xf32> to vector<32x256xf32>
    %176 = arith.addf %172, %175 : vector<32x256xf32>
    %177 = vector.extract_strided_slice %176 {offsets = [0, 0], sizes = [32, 32], strides = [1, 1]} : vector<32x256xf32> to vector<32x32xf32>
    %178 = vector.extract_strided_slice %176 {offsets = [0, 32], sizes = [32, 32], strides = [1, 1]} : vector<32x256xf32> to vector<32x32xf32>
    %179 = vector.extract_strided_slice %176 {offsets = [0, 64], sizes = [32, 32], strides = [1, 1]} : vector<32x256xf32> to vector<32x32xf32>
    %180 = vector.extract_strided_slice %176 {offsets = [0, 96], sizes = [32, 32], strides = [1, 1]} : vector<32x256xf32> to vector<32x32xf32>
    %181 = vector.extract_strided_slice %176 {offsets = [0, 128], sizes = [32, 32], strides = [1, 1]} : vector<32x256xf32> to vector<32x32xf32>
    %182 = vector.extract_strided_slice %176 {offsets = [0, 160], sizes = [32, 32], strides = [1, 1]} : vector<32x256xf32> to vector<32x32xf32>
    %183 = vector.extract_strided_slice %176 {offsets = [0, 192], sizes = [32, 32], strides = [1, 1]} : vector<32x256xf32> to vector<32x32xf32>
    %184 = vector.extract_strided_slice %176 {offsets = [0, 224], sizes = [32, 32], strides = [1, 1]} : vector<32x256xf32> to vector<32x32xf32>
    %185 = tpu.concatenate %177, %178, %179, %180, %181, %182, %183, %184 in 0 : vector<32x32xf32>, vector<32x32xf32>, vector<32x32xf32>, vector<32x32xf32>, vector<32x32xf32>, vector<32x32xf32>, vector<32x32xf32>, vector<32x32xf32> -> vector<256x32xf32>
    %c0_117 = arith.constant 0 : index
    %c0_118 = arith.constant 0 : index
    %186 = vector.load %arg14[%c0_117, %c0_118] : memref<32x256xf32, #tpu.memory_space<vmem>>, vector<32x256xf32>
    %cst_119 = arith.constant dense<0.000000e+00> : vector<32x32xf32>
    %187 = tpu.matmul %186, %185, %cst_119 {dimension_numbers = #tpu.dot_dimension_numbers<[1], [0], [0], [1], [0, 0, 1, 1], [], []>} : vector<32x256xf32>, vector<256x32xf32>, vector<32x32xf32> -> vector<32x32xf32>
    %c0_120 = arith.constant 0 : index
    %c0_121 = arith.constant 0 : index
    %188 = vector.load %arg15[%c0_120, %c0_121] : memref<32x1xf32, #tpu.memory_space<vmem>>, vector<32x1xf32>
    %189 = vector.broadcast %188 : vector<32x1xf32> to vector<32x32xf32>
    %190 = arith.addf %187, %189 : vector<32x32xf32>
    %cst_122 = arith.constant 0.000000e+00 : f32
    %191 = vector.broadcast %cst_122 : f32 to vector<32x32xf32>
    %192 = arith.maximumf %190, %191 : vector<32x32xf32>
    %c0_123 = arith.constant 0 : index
    %c0_124 = arith.constant 0 : index
    %193 = vector.load %arg16[%c0_123, %c0_124] : memref<4x32xf32, #tpu.memory_space<vmem>>, vector<4x32xf32>
    %cst_125 = arith.constant dense<0.000000e+00> : vector<4x32xf32>
    %194 = tpu.matmul %193, %192, %cst_125 {dimension_numbers = #tpu.dot_dimension_numbers<[1], [0], [0], [1], [0, 0, 1, 1], [], []>} : vector<4x32xf32>, vector<32x32xf32>, vector<4x32xf32> -> vector<4x32xf32>
    %c0_126 = arith.constant 0 : index
    %c0_127 = arith.constant 0 : index
    %195 = vector.load %arg17[%c0_126, %c0_127] : memref<4x1xf32, #tpu.memory_space<vmem>>, vector<4x1xf32>
    %196 = vector.broadcast %195 : vector<4x1xf32> to vector<4x32xf32>
    %197 = arith.addf %194, %196 : vector<4x32xf32>
    %c0_128 = arith.constant 0 : index
    %c0_129 = arith.constant 0 : index
    %198 = vector.load %arg18[%c0_128, %c0_129] : memref<4x32xf32, #tpu.memory_space<vmem>>, vector<4x32xf32>
    tpu.vector_store %arg18[%c0_128, %c0_129], %197 {strides = array<i32>} : memref<4x32xf32, #tpu.memory_space<vmem>>, vector<4x32xf32>,
    return
  }
}

</mosaic_0001>

<bundles_post_ra>
// kernel: temporal_gnn_forward.1
= control target key start
LH: loop header
LB: loop body
LE: loop exit
PB: predicated region body
PF: predicated region fallthrough
CT: control target
= control target key end

     0   :  { %vm125_vm0 = vcmask 1041408   ;;  %v5641_v1 = vmov 0.0   ;;  %v3766_v2 = vmov 0   ;;  %vm112_vm1 = vcmask 15360   ;;  %s3768_s23 = smov 96   ;;  %s5620_s0 = inlined_call_operand.vmem [shape: f32[2,256], index: 0, kind: input, shape index: {}]   ;;  %s5621_s2 = inlined_call_operand.vmem [shape: f32[32,2], index: 2, kind: input, shape index: {}]   ;;  %s5622_s3 = inlined_call_operand.vmem [shape: f32[32,1], index: 3, kind: input, shape index: {}]   ;;  %s5623_s1 = inlined_call_operand.vmem [shape: f32[2,256,256], index: 1, kind: input, shape index: {}]   ;;  %s5624_s7 = inlined_call_operand.vmem [shape: f32[4,32,1], index: 7, kind: input, shape index: {}]   ;;  %s5625_s6 = inlined_call_operand.vmem [shape: f32[4,32,96], index: 6, kind: input, shape index: {}]   ;;  %s5626_s4 = inlined_call_operand.vmem [shape: f32[2,32,96], index: 4, kind: input, shape index: {}]   ;;  %s5627_s5 = inlined_call_operand.vmem [shape: f32[2,32,1], index: 5, kind: input, shape index: {}]   ;;  %s5628_s9 = inlined_call_operand.vmem [shape: f32[2,32,1], index: 9, kind: input, shape index: {}]   ;;  %s5629_s11 = inlined_call_operand.vmem [shape: f32[2,32,1], index: 11, kind: input, shape index: {}]   ;;  %s5630_s12 = inlined_call_operand.vmem [shape: f32[2,32,1], index: 12, kind: input, shape index: {}]   ;;  %s5631_s13 = inlined_call_operand.vmem [shape: f32[2,32,1], index: 13, kind: input, shape index: {}]   ;;  %s5632_s8 = inlined_call_operand.vmem [shape: f32[2,32,64], index: 8, kind: input, shape index: {}]   ;;  %s5633_s10 = inlined_call_operand.vmem [shape: f32[2,32,32], index: 10, kind: input, shape index: {}]   ;;  %s5634_s14 = inlined_call_operand.vmem [shape: f32[32,256], index: 14, kind: input, shape index: {}]   ;;  %s5635_s15 = inlined_call_operand.vmem [shape: f32[32,1], index: 15, kind: input, shape index: {}]   ;;  %s5636_s17 = inlined_call_operand.vmem [shape: f32[4,1], index: 17, kind: input, shape index: {}]   ;;  %s5637_s16 = inlined_call_operand.vmem [shape: f32[4,32], index: 16, kind: input, shape index: {}]   ;;  %s5638_s18 = inlined_call_operand.vmem [shape: f32[4,32], index: 18, kind: output, shape index: {}]  }
   0x1   :  { %5684 = sst [smem:[#allocation43_spill]] %s5620_s0  ;;  %194 = vmatprep.mubr.f32.mxu1 %v5641_v1  ;;  %3639 = vset.pattern.permute.xlu0 %v3766_v2  ;;  %v228_v9 = vld [vmem:[%s5623_s1 + $0x8] sm:$0xff]  ;;  %v230_v10 = vld [vmem:[%s5623_s1 + $0x18] sm:$0xff]  ;;  %v227_v15 = vld [vmem:[%s5623_s1] sm:$0xff]  ;;  %vm562_vm6 = vcmask 785408   ;;  %vm1098_vm7 = vcmask 523264  }
   0x2   :  { %5685 = sst [smem:[#allocation44_spill]] %s5621_s2  ;;  %s5687_s29 = sld [smem:[#allocation43_spill]]  ;;  %3640 = vset.pattern.permute.xlu1 %v3766_v2  ;;  %v2910_v11 = vld [vmem:[%s5623_s1 + $0x208] sm:$0xff]  ;;  %v3900_v13 = vpack.c.bf16 %v230_v10, %v228_v9  ;;  %v2912_v14 = vld [vmem:[%s5623_s1 + $0x218] sm:$0xff]  ;;  %v229_v16 = vld [vmem:[%s5623_s1 + $0x10] sm:$0xff]  ;;  %vm1276_vm8 = vcmask 261120  }
   0x3   :  { %5686 = sst [smem:[#allocation45_spill]] %s5622_s3  ;;  %s5688_s19 = sld [smem:[#allocation44_spill]]  ;;  %v3912_v17 = vpack.c.bf16 %v2912_v14, %v2910_v11  ;;  %v3914_v18 = vpack.c.bf16 %v229_v16, %v227_v15  ;;  %v2909_v19 = vld [vmem:[%s5623_s1 + $0x200] sm:$0xff]  ;;  %v2911_v20 = vld [vmem:[%s5623_s1 + $0x210] sm:$0xff]  ;;  %v232_v21 = vld [vmem:[%s5623_s1 + $0x28] sm:$0xff]  ;;  %vm3771_vm9 = vmmov 0  }
   0x4   :  { %s5689_s21 = sld [smem:[#allocation45_spill]]  ;;  %v3926_v22 = vpack.c.bf16 %v2911_v20, %v2909_v19  ;;  %v234_v23 = vld [vmem:[%s5623_s1 + $0x38] sm:$0xff]  ;;  %v2914_v24 = vld [vmem:[%s5623_s1 + $0x228] sm:$0xff]  ;;  %v231_v28 = vld [vmem:[%s5623_s1 + $0x20] sm:$0xff]  ;;  %vm2894_vm10 = vcmask 257024  }
   0x5   :  { %5690 = vst [vmem:[#allocation2_spill] sm:$0xff] %v3912_v17  ;;  %v2916_v25 = vld [vmem:[%s5623_s1 + $0x238] sm:$0xff]  ;;  %v3938_v26 = vpack.c.bf16 %v234_v23, %v232_v21  ;;  %v233_v29 = vld [vmem:[%s5623_s1 + $0x30] sm:$0xff]  ;;  %v2913_v30 = vld [vmem:[%s5623_s1 + $0x220] sm:$0xff]  ;;  %3211 = vmatprep.subr.bf16.mxu0 %v3912_v17 }
   0x6   :  { %5691 = vst [vmem:[#allocation3_spill] sm:$0xff] %v3926_v22  ;;  %v3940_v27 = vpack.c.bf16 %v2916_v25, %v2914_v24  ;;  %v3956_v32 = vpack.c.bf16 %v233_v29, %v231_v28  ;;  %v2915_v33 = vld [vmem:[%s5623_s1 + $0x230] sm:$0xff]  ;;  %v236_v34 = vld [vmem:[%s5623_s1 + $0x48] sm:$0xff]  ;;  %v238_v35 = vld [vmem:[%s5623_s1 + $0x58] sm:$0xff]  ;;  %3213 = vmatpush1.bf16.msra.mxu0 %v3926_v22 }
   0x7   :  { %v3969_v36 = vpack.c.bf16 %v2915_v33, %v2913_v30  ;;  %v2918_v37 = vld [vmem:[%s5623_s1 + $0x248] sm:$0xff]  ;;  %v2920_v38 = vld [vmem:[%s5623_s1 + $0x258] sm:$0xff]  ;;  %v235_v39 = vld [vmem:[%s5623_s1 + $0x40] sm:$0xff]  ;;  %v3982_v40 = vpack.c.bf16 %v238_v35, %v236_v34 }
   0x8   :  { %v2902_v0 = vld.sshfl [vmem:[%s5687_s29] sm:$0x33 pattern:$0x76325410]  ;;  %5692 = vst [vmem:[#allocation4_spill] sm:$0xff] %v3940_v27  ;;  %v237_v41 = vld [vmem:[%s5623_s1 + $0x50] sm:$0xff]  ;;  %3215 = vmatprep.subr.bf16.mxu0 %v3940_v27  ;;  %v3994_v44 = vpack.c.bf16 %v2920_v38, %v2918_v37 }
   0x9   :  { %v111_v3 = vcombine.high %v2902_v0, %v2902_v0  ;;  %v74_v4 = vld [vmem:[%s5688_s19] sm:$0xff]  ;;  %v75_v12 = vld [vmem:[%s5688_s19 + $0x8] sm:$0xff]  ;;  %v76_v31 = vld [vmem:[%s5688_s19 + $0x10] sm:$0xff]  ;;  %5693 = vst [vmem:[#allocation5_spill] sm:$0xff] %v3969_v36  ;;  %v4009_v49 = vpack.c.bf16 %v237_v41, %v235_v39 }
   0xa   :  { %v79_v5 = vld [vmem:[%s5689_s21] sm:$0xff]  ;;  %v80_v6 = vld [vmem:[%s5689_s21 + $0x8] sm:$0xff]  ;;  %v81_v7 = vld [vmem:[%s5689_s21 + $0x10] sm:$0xff]  ;;  %5694 = vst [vmem:[#allocation6_spill] sm:$0xff] %v3994_v44  ;;  %3217 = vmatpush1.bf16.msra.mxu0 %v3969_v36 }
   0xb   :  { %85 = vperm.xlu0 %3639, %v79_v5   ;;  %v82_v8 = vld [vmem:[%s5689_s21 + $0x18] sm:$0xff]  ;;  %2903 = vmatprep.subr.msk.mxu1 %vm125_vm0, %v111_v3  ;;  %v2917_v42 = vld [vmem:[%s5623_s1 + $0x240] sm:$0xff]  ;;  %v2919_v43 = vld [vmem:[%s5623_s1 + $0x250] sm:$0xff] }
   0xc   :  { %95 = vperm.xlu1 %3640, %v81_v7   ;;  %2904 = vmatpush1.msk.msra.mxu1 %vm125_vm0, %v2902_v0  ;;  %v240_v45 = vld [vmem:[%s5623_s1 + $0x68] sm:$0xff]  ;;  %v242_v46 = vld [vmem:[%s5623_s1 + $0x78] sm:$0xff]  ;;  %v4016_v51 = vpack.c.bf16 %v2919_v43, %v2917_v42  ;;  %v239_v52 = vld [vmem:[%s5623_s1 + $0x60] sm:$0xff] }
   0xd   :  { %2905 = vmatmul.mubr.msk.f32.vlgmr.msra.gmra.mrb[0].mxu1 %vm112_vm1, %v74_v4  ;;  %3147 = vmatprep.subr.bf16.mxu1 %v3900_v13  ;;  %v2922_v47 = vld [vmem:[%s5623_s1 + $0x268] sm:$0xff]  ;;  %v77_v48 = vld [vmem:[%s5688_s19 + $0x18] sm:$0xff]  ;;  %v241_v53 = vld [vmem:[%s5623_s1 + $0x70] sm:$0xff]  ;;  %v4029_v55 = vpack.c.bf16 %v242_v46, %v240_v45 }
   0xe   :  { %200 = vmatprep.mubr.f32.mxu1 %v5641_v1  ;;  %3149 = vmatpush1.bf16.msra.mxu1 %v3914_v18  ;;  %v2924_v50 = vld [vmem:[%s5623_s1 + $0x278] sm:$0xff]  ;;  %5695 = vst [vmem:[#allocation7_spill] sm:$0xff] %v4016_v51  ;;  %v2921_v54 = vld [vmem:[%s5623_s1 + $0x260] sm:$0xff]  ;;  %v2923_v57 = vld [vmem:[%s5623_s1 + $0x270] sm:$0xff]  ;;  %v4050_v62 = vpack.c.bf16 %v241_v53, %v239_v52 }
   0xf   :  { %90 = vperm.xlu0 %3639, %v80_v6   ;;  %3151 = vmatprep.subr.bf16.mxu1 %v3938_v26  ;;  %v4031_v56 = vpack.c.bf16 %v2924_v50, %v2922_v47  ;;  %v244_v58 = vld [vmem:[%s5623_s1 + $0x88] sm:$0xff]  ;;  %v246_v59 = vld [vmem:[%s5623_s1 + $0x98] sm:$0xff]  ;;  %v4054_v63 = vpack.c.bf16 %v2923_v57, %v2921_v54  ;;  %v243_v2 = vld [vmem:[%s5623_s1 + $0x80] sm:$0xff] }
  0x10   :  { %100 = vperm.xlu1 %3640, %v82_v8   ;;  %3219 = vmatprep.subr.bf16.mxu0 %v3994_v44  ;;  %v2926_v60 = vld [vmem:[%s5623_s1 + $0x288] sm:$0xff]  ;;  %v2928_v61 = vld [vmem:[%s5623_s1 + $0x298] sm:$0xff]  ;;  %v4056_v0 = vpack.c.bf16 %v246_v59, %v244_v58  ;;  %v245_v3 = vld [vmem:[%s5623_s1 + $0x90] sm:$0xff] }
  0x11   :  { %2906 = vmatmul.mubr.msk.f32.gmra.mrb[2].mxu1 %vm112_vm1, %v75_v12  ;;  %5696 = vst [vmem:[#allocation8_spill] sm:$0xff] %v4031_v56  ;;  %3221 = vmatpush1.bf16.msra.mxu0 %v4016_v51  ;;  %5697 = vst [vmem:[#allocation9_spill] sm:$0xff] %v4054_v63  ;;  %v2925_v4 = vld [vmem:[%s5623_s1 + $0x280] sm:$0xff]  ;;  %v4069_v5 = vpack.c.bf16 %v2928_v61, %v2926_v60  ;;  %v2927_v6 = vld [vmem:[%s5623_s1 + $0x290] sm:$0xff]  ;;  %v4087_v11 = vpack.c.bf16 %v245_v3, %v243_v2 }
  0x12   :  { %206 = vmatprep.mubr.f32.mxu1 %v5641_v1  ;;  %3153 = vmatpush1.bf16.msra.mxu1 %v3956_v32  ;;  %v248_v7 = vld [vmem:[%s5623_s1 + $0xa8] sm:$0xff]  ;;  %v250_v8 = vld [vmem:[%s5623_s1 + $0xb8] sm:$0xff]  ;;  %v4091_v12 = vpack.c.bf16 %v2927_v6, %v2925_v4  ;;  %v247_v15 = vld [vmem:[%s5623_s1 + $0xa0] sm:$0xff] }
  0x13   :  { %3155 = vmatprep.subr.bf16.mxu1 %v3982_v40  ;;  %3223 = vmatprep.subr.bf16.mxu0 %v4031_v56  ;;  %5698 = vst [vmem:[#allocation10_spill] sm:$0xff] %v4069_v5  ;;  %v2930_v9 = vld [vmem:[%s5623_s1 + $0x2a8] sm:$0xff]  ;;  %v2932_v10 = vld [vmem:[%s5623_s1 + $0x2b8] sm:$0xff]  ;;  %v4093_v14 = vpack.c.bf16 %v250_v8, %v248_v7  ;;  %v249_v16 = vld [vmem:[%s5623_s1 + $0xb0] sm:$0xff] }
  0x14   :  { %5699 = vst [vmem:[#allocation11_spill] sm:$0xff] %v4091_v12  ;;  %v2929_v19 = vld [vmem:[%s5623_s1 + $0x2a0] sm:$0xff]  ;;  %v4105_v20 = vpack.c.bf16 %v2932_v10, %v2930_v9  ;;  %v2931_v21 = vld [vmem:[%s5623_s1 + $0x2b0] sm:$0xff]  ;;  %v252_v23 = vld [vmem:[%s5623_s1 + $0xc8] sm:$0xff]  ;;  %v4123_v29 = vpack.c.bf16 %v249_v16, %v247_v15 }
  0x15   :  { %2907 = vmatmul.mubr.msk.f32.gmra.mrb[4].mxu1 %vm112_vm1, %v76_v31  ;;  %3225 = vmatpush1.bf16.msra.mxu0 %v4054_v63  ;;  %v254_v24 = vld [vmem:[%s5623_s1 + $0xd8] sm:$0xff]  ;;  %v2934_v25 = vld [vmem:[%s5623_s1 + $0x2c8] sm:$0xff]  ;;  %v4127_v30 = vpack.c.bf16 %v2931_v21, %v2929_v19  ;;  %v251_v33 = vld [vmem:[%s5623_s1 + $0xc0] sm:$0xff] }
  0x16   :  { %212 = vmatprep.mubr.f32.mxu1 %v5641_v1  ;;  %3157 = vmatpush1.bf16.msra.mxu1 %v4009_v49  ;;  %5700 = vst [vmem:[#allocation12_spill] sm:$0xff] %v4105_v20  ;;  %v2936_v28 = vld [vmem:[%s5623_s1 + $0x2d8] sm:$0xff]  ;;  %v4129_v31 = vpack.c.bf16 %v254_v24, %v252_v23  ;;  %v253_v34 = vld [vmem:[%s5623_s1 + $0xd0] sm:$0xff]  ;;  %v2933_v35 = vld [vmem:[%s5623_s1 + $0x2c0] sm:$0xff] }
  0x17   :  { %3159 = vmatprep.subr.bf16.mxu1 %v4029_v55  ;;  %3227 = vmatprep.subr.bf16.mxu0 %v4069_v5  ;;  %5701 = vst [vmem:[#allocation13_spill] sm:$0xff] %v4127_v30  ;;  %v4141_v37 = vpack.c.bf16 %v2936_v28, %v2934_v25  ;;  %v2935_v38 = vld [vmem:[%s5623_s1 + $0x2d0] sm:$0xff]  ;;  %v256_v39 = vld [vmem:[%s5623_s1 + $0xe8] sm:$0xff]  ;;  %v258_v41 = vld [vmem:[%s5623_s1 + $0xf8] sm:$0xff]  ;;  %v4159_v45 = vpack.c.bf16 %v253_v34, %v251_v33 }
  0x18   :  { %v2938_v42 = vld [vmem:[%s5623_s1 + $0x2e8] sm:$0xff]  ;;  %v2940_v43 = vld [vmem:[%s5623_s1 + $0x2f8] sm:$0xff]  ;;  %v4163_v46 = vpack.c.bf16 %v2935_v38, %v2933_v35  ;;  %v4165_v47 = vpack.c.bf16 %v258_v41, %v256_v39  ;;  %v257_v50 = vld [vmem:[%s5623_s1 + $0xf0] sm:$0xff] }
  0x19   :  { %2908 = vmatmul.mubr.msk.f32.gmra.mrb[6].mxu1 %vm112_vm1, %v77_v48  ;;  %3229 = vmatpush1.bf16.msra.mxu0 %v4091_v12  ;;  %5702 = vst [vmem:[#allocation14_spill] sm:$0xff] %v4141_v37  ;;  %v255_v48 = vld [vmem:[%s5623_s1 + $0xe0] sm:$0xff]  ;;  %v4177_v53 = vpack.c.bf16 %v2940_v43, %v2938_v42  ;;  %v2939_v54 = vld [vmem:[%s5623_s1 + $0x2f0] sm:$0xff]  ;;  %v260_v57 = vld [vmem:[%s5623_s1 + $0x108] sm:$0xff] }
  0x1a   :  { %3161 = vmatpush1.bf16.msra.mxu1 %v4050_v62  ;;  %3231 = vmatprep.subr.bf16.mxu0 %v4105_v20  ;;  %5703 = vst [vmem:[#allocation15_spill] sm:$0xff] %v4163_v46  ;;  %v2937_v52 = vld [vmem:[%s5623_s1 + $0x2e0] sm:$0xff]  ;;  %v262_v58 = vld [vmem:[%s5623_s1 + $0x118] sm:$0xff]  ;;  %v2942_v59 = vld [vmem:[%s5623_s1 + $0x308] sm:$0xff]  ;;  %v4195_v61 = vpack.c.bf16 %v257_v50, %v255_v48 }
  0x1b   :  { %3163 = vmatprep.subr.bf16.mxu1 %v4056_v0  ;;  %5704 = vst [vmem:[#allocation16_spill] sm:$0xff] %v4177_v53  ;;  %v2944_v60 = vld [vmem:[%s5623_s1 + $0x318] sm:$0xff]  ;;  %v4199_v2 = vpack.c.bf16 %v2939_v54, %v2937_v52  ;;  %v4201_v3 = vpack.c.bf16 %v262_v58, %v260_v57  ;;  %v259_v4 = vld [vmem:[%s5623_s1 + $0x100] sm:$0xff]  ;;  %v261_v6 = vld [vmem:[%s5623_s1 + $0x110] sm:$0xff] }
  0x1c   :  { %v2941_v7 = vld [vmem:[%s5623_s1 + $0x300] sm:$0xff]  ;;  %v4213_v8 = vpack.c.bf16 %v2944_v60, %v2942_v59  ;;  %v2943_v9 = vld [vmem:[%s5623_s1 + $0x310] sm:$0xff]  ;;  %v264_v10 = vld [vmem:[%s5623_s1 + $0x128] sm:$0xff]  ;;  %v4231_v21 = vpack.c.bf16 %v261_v6, %v259_v4 }
  0x1d   :  { %3233 = vmatpush1.bf16.msra.mxu0 %v4127_v30  ;;  %5705 = vst [vmem:[#allocation17_spill] sm:$0xff] %v4199_v2  ;;  %v266_v15 = vld [vmem:[%s5623_s1 + $0x138] sm:$0xff]  ;;  %v2946_v16 = vld [vmem:[%s5623_s1 + $0x328] sm:$0xff]  ;;  %v4235_v23 = vpack.c.bf16 %v2943_v9, %v2941_v7  ;;  %v263_v25 = vld [vmem:[%s5623_s1 + $0x120] sm:$0xff] }
  0x1e   :  { %3165 = vmatpush1.bf16.msra.mxu1 %v4087_v11  ;;  %3235 = vmatprep.subr.bf16.mxu0 %v4141_v37  ;;  %5706 = vst [vmem:[#allocation18_spill] sm:$0xff] %v4213_v8  ;;  %v2948_v19 = vld [vmem:[%s5623_s1 + $0x338] sm:$0xff]  ;;  %v4237_v24 = vpack.c.bf16 %v266_v15, %v264_v10  ;;  %v265_v28 = vld [vmem:[%s5623_s1 + $0x130] sm:$0xff]  ;;  %v2945_v33 = vld [vmem:[%s5623_s1 + $0x320] sm:$0xff] }
  0x1f   :  { %3167 = vmatprep.subr.bf16.mxu1 %v4093_v14  ;;  %5707 = vst [vmem:[#allocation19_spill] sm:$0xff] %v4235_v23  ;;  %v4249_v34 = vpack.c.bf16 %v2948_v19, %v2946_v16  ;;  %v2947_v35 = vld [vmem:[%s5623_s1 + $0x330] sm:$0xff]  ;;  %v268_v38 = vld [vmem:[%s5623_s1 + $0x148] sm:$0xff]  ;;  %v270_v39 = vld [vmem:[%s5623_s1 + $0x158] sm:$0xff]  ;;  %v4267_v43 = vpack.c.bf16 %v265_v28, %v263_v25 }
  0x20   :  { %v2950_v41 = vld [vmem:[%s5623_s1 + $0x348] sm:$0xff]  ;;  %v2952_v42 = vld [vmem:[%s5623_s1 + $0x358] sm:$0xff]  ;;  %v4271_v48 = vpack.c.bf16 %v2947_v35, %v2945_v33  ;;  %v4273_v50 = vpack.c.bf16 %v270_v39, %v268_v38  ;;  %v267_v52 = vld [vmem:[%s5623_s1 + $0x140] sm:$0xff] }
  0x21   :  { %3237 = vmatpush1.bf16.msra.mxu0 %v4163_v46  ;;  %5708 = vst [vmem:[#allocation20_spill] sm:$0xff] %v4249_v34  ;;  %v269_v54 = vld [vmem:[%s5623_s1 + $0x150] sm:$0xff]  ;;  %v2949_v57 = vld [vmem:[%s5623_s1 + $0x340] sm:$0xff]  ;;  %v4285_v58 = vpack.c.bf16 %v2952_v42, %v2950_v41  ;;  %v272_v60 = vld [vmem:[%s5623_s1 + $0x168] sm:$0xff] }
  0x22   :  { %3169 = vmatpush1.bf16.msra.mxu1 %v4123_v29  ;;  %3239 = vmatprep.subr.bf16.mxu0 %v4177_v53  ;;  %5709 = vst [vmem:[#allocation21_spill] sm:$0xff] %v4271_v48  ;;  %v2951_v59 = vld [vmem:[%s5623_s1 + $0x350] sm:$0xff]  ;;  %v274_v4 = vld [vmem:[%s5623_s1 + $0x178] sm:$0xff]  ;;  %v2954_v6 = vld [vmem:[%s5623_s1 + $0x368] sm:$0xff]  ;;  %v4303_v9 = vpack.c.bf16 %v269_v54, %v267_v52 }
  0x23   :  { %3171 = vmatprep.subr.bf16.mxu1 %v4129_v31  ;;  %5710 = vst [vmem:[#allocation22_spill] sm:$0xff] %v4285_v58  ;;  %v2956_v7 = vld [vmem:[%s5623_s1 + $0x378] sm:$0xff]  ;;  %v4307_v10 = vpack.c.bf16 %v2951_v59, %v2949_v57  ;;  %v4309_v15 = vpack.c.bf16 %v274_v4, %v272_v60  ;;  %v271_v16 = vld [vmem:[%s5623_s1 + $0x160] sm:$0xff]  ;;  %v273_v19 = vld [vmem:[%s5623_s1 + $0x170] sm:$0xff] }
  0x24   :  { %v2953_v25 = vld [vmem:[%s5623_s1 + $0x360] sm:$0xff]  ;;  %v4321_v28 = vpack.c.bf16 %v2956_v7, %v2954_v6  ;;  %v2955_v33 = vld [vmem:[%s5623_s1 + $0x370] sm:$0xff]  ;;  %v276_v35 = vld [vmem:[%s5623_s1 + $0x188] sm:$0xff]  ;;  %v4339_v42 = vpack.c.bf16 %v273_v19, %v271_v16 }
  0x25   :  { %3241 = vmatpush1.bf16.msra.mxu0 %v4199_v2  ;;  %5711 = vst [vmem:[#allocation23_spill] sm:$0xff] %v4307_v10  ;;  %v278_v38 = vld [vmem:[%s5623_s1 + $0x198] sm:$0xff]  ;;  %v2958_v39 = vld [vmem:[%s5623_s1 + $0x388] sm:$0xff]  ;;  %v4343_v52 = vpack.c.bf16 %v2955_v33, %v2953_v25  ;;  %v275_v57 = vld [vmem:[%s5623_s1 + $0x180] sm:$0xff] }
  0x26   :  { %3173 = vmatpush1.bf16.msra.mxu1 %v4159_v45  ;;  %3243 = vmatprep.subr.bf16.mxu0 %v4213_v8  ;;  %5712 = vst [vmem:[#allocation24_spill] sm:$0xff] %v4321_v28  ;;  %v2960_v41 = vld [vmem:[%s5623_s1 + $0x398] sm:$0xff]  ;;  %v4345_v54 = vpack.c.bf16 %v278_v38, %v276_v35  ;;  %v277_v59 = vld [vmem:[%s5623_s1 + $0x190] sm:$0xff]  ;;  %v2957_v60 = vld [vmem:[%s5623_s1 + $0x380] sm:$0xff] }
  0x27   :  { %3175 = vmatprep.subr.bf16.mxu1 %v4165_v47  ;;  %5713 = vst [vmem:[#allocation25_spill] sm:$0xff] %v4343_v52  ;;  %v4357_v4 = vpack.c.bf16 %v2960_v41, %v2958_v39  ;;  %v2959_v6 = vld [vmem:[%s5623_s1 + $0x390] sm:$0xff]  ;;  %v280_v7 = vld [vmem:[%s5623_s1 + $0x1a8] sm:$0xff]  ;;  %v282_v16 = vld [vmem:[%s5623_s1 + $0x1b8] sm:$0xff]  ;;  %v4375_v33 = vpack.c.bf16 %v277_v59, %v275_v57 }
  0x28   :  { %v2962_v19 = vld [vmem:[%s5623_s1 + $0x3a8] sm:$0xff]  ;;  %v2964_v25 = vld [vmem:[%s5623_s1 + $0x3b8] sm:$0xff]  ;;  %v4379_v35 = vpack.c.bf16 %v2959_v6, %v2957_v60  ;;  %v4381_v38 = vpack.c.bf16 %v282_v16, %v280_v7  ;;  %v279_v39 = vld [vmem:[%s5623_s1 + $0x1a0] sm:$0xff] }
  0x29   :  { %3245 = vmatpush1.bf16.msra.mxu0 %v4235_v23  ;;  %5714 = vst [vmem:[#allocation26_spill] sm:$0xff] %v4357_v4  ;;  %v281_v41 = vld [vmem:[%s5623_s1 + $0x1b0] sm:$0xff]  ;;  %v2961_v57 = vld [vmem:[%s5623_s1 + $0x3a0] sm:$0xff]  ;;  %v4393_v59 = vpack.c.bf16 %v2964_v25, %v2962_v19  ;;  %v284_v6 = vld [vmem:[%s5623_s1 + $0x1c8] sm:$0xff] }
  0x2a   :  { %3177 = vmatpush1.bf16.msra.mxu1 %v4195_v61  ;;  %3247 = vmatprep.subr.bf16.mxu0 %v4249_v34  ;;  %5715 = vst [vmem:[#allocation27_spill] sm:$0xff] %v4379_v35  ;;  %v2963_v60 = vld [vmem:[%s5623_s1 + $0x3b0] sm:$0xff]  ;;  %v286_v7 = vld [vmem:[%s5623_s1 + $0x1d8] sm:$0xff]  ;;  %v2966_v16 = vld [vmem:[%s5623_s1 + $0x3c8] sm:$0xff]  ;;  %v4411_v25 = vpack.c.bf16 %v281_v41, %v279_v39 }
  0x2b   :  { %3179 = vmatprep.subr.bf16.mxu1 %v4201_v3  ;;  %5716 = vst [vmem:[#allocation28_spill] sm:$0xff] %v4393_v59  ;;  %v2968_v19 = vld [vmem:[%s5623_s1 + $0x3d8] sm:$0xff]  ;;  %v4415_v1 = vpack.c.bf16 %v2963_v60, %v2961_v57  ;;  %v283_v39 = vld [vmem:[%s5623_s1 + $0x1c0] sm:$0xff]  ;;  %v285_v41 = vld [vmem:[%s5623_s1 + $0x1d0] sm:$0xff] }
  0x2c   :  { %5717 = vst [vmem:[#allocation29_spill] sm:$0xff] %v4411_v25  ;;  %v2965_v57 = vld [vmem:[%s5623_s1 + $0x3c0] sm:$0xff]  ;;  %v4435_v60 = vpack.c.bf16 %v285_v41, %v283_v39  ;;  %v2970_v39 = vld [vmem:[%s5623_s1 + $0x3e8] sm:$0xff] }
  0x2d   :  { %3249 = vmatpush1.bf16.msra.mxu0 %v4271_v48  ;;  %5718 = vst [vmem:[#allocation30_spill] sm:$0xff] %v4415_v1 }
  0x2e   :  { %3181 = vmatpush1.bf16.msra.mxu1 %v4231_v21  ;;  %3251 = vmatprep.subr.bf16.mxu0 %v4285_v58  ;;  %5721 = vst [vmem:[#allocation33_spill] sm:$0xff] %v4435_v60 }
  0x2f   :  { %3183 = vmatprep.subr.bf16.mxu1 %v4237_v24 }
  0x31   :  { %3253 = vmatpush1.bf16.msra.mxu0 %v4307_v10 }
  0x32   :  { %3185 = vmatpush1.bf16.msra.mxu1 %v4267_v43  ;;  %3255 = vmatprep.subr.bf16.mxu0 %v4321_v28 }
  0x33   :  { %3187 = vmatprep.subr.bf16.mxu1 %v4273_v50 }
  0x35   :  { %3257 = vmatpush1.bf16.msra.mxu0 %v4343_v52  ;;  %v4420_v52 = vpack.c.bf16 %v2968_v19, %v2966_v16  ;;  %v288_v16 = vld [vmem:[%s5623_s1 + $0x1e8] sm:$0xff]  ;;  %v290_v19 = vld [vmem:[%s5623_s1 + $0x1f8] sm:$0xff] }
  0x36   :  { %3189 = vmatpush1.bf16.msra.mxu1 %v4303_v9  ;;  %3259 = vmatprep.subr.bf16.mxu0 %v4357_v4  ;;  %v4417_v4 = vpack.c.bf16 %v286_v7, %v284_v6  ;;  %v2967_v6 = vld [vmem:[%s5623_s1 + $0x3d0] sm:$0xff]  ;;  %v4453_v41 = vpack.c.bf16 %v290_v19, %v288_v16  ;;  %v2969_v16 = vld [vmem:[%s5623_s1 + $0x3e0] sm:$0xff] }
  0x37   :  { %3191 = vmatprep.subr.bf16.mxu1 %v4309_v15  ;;  %5720 = vst [vmem:[#allocation32_spill] sm:$0xff] %v4420_v52  ;;  %v4440_v7 = vpack.c.bf16 %v2967_v6, %v2965_v57  ;;  %v2972_v57 = vld [vmem:[%s5623_s1 + $0x3f8] sm:$0xff]  ;;  %v287_v6 = vld [vmem:[%s5623_s1 + $0x1e0] sm:$0xff]  ;;  %v2971_v19 = vld [vmem:[%s5623_s1 + $0x3f0] sm:$0xff] }
  0x38   :  { %5719 = vst [vmem:[#allocation31_spill] sm:$0xff] %v4417_v4  ;;  %5723 = vst [vmem:[#allocation35_spill] sm:$0xff] %v4453_v41 }
  0x39   :  { %3261 = vmatpush1.bf16.msra.mxu0 %v4379_v35  ;;  %5722 = vst [vmem:[#allocation34_spill] sm:$0xff] %v4440_v7 }
  0x3a   :  { %3193 = vmatpush1.bf16.msra.mxu1 %v4339_v42  ;;  %3263 = vmatprep.subr.bf16.mxu0 %v4393_v59 }
  0x3b   :  { %3195 = vmatprep.subr.bf16.mxu1 %v4345_v54 }
  0x3d   :  { %3265 = vmatpush1.bf16.msra.mxu0 %v4415_v1  ;;  %v4464_v1 = vpack.c.bf16 %v2972_v57, %v2970_v39 }
  0x3e   :  { %3197 = vmatpush1.bf16.msra.mxu1 %v4375_v33  ;;  %3267 = vmatprep.subr.bf16.mxu0 %v4420_v52  ;;  %v289_v52 = vld [vmem:[%s5623_s1 + $0x1f0] sm:$0xff]  ;;  %s3767_s1 = smov 32  }
  0x3f   :  { %3199 = vmatprep.subr.bf16.mxu1 %v4381_v38  ;;  %5724 = vst [vmem:[#allocation36_spill] sm:$0xff] %v4464_v1  ;;  %v4466_v59 = vpack.c.bf16 %v289_v52, %v287_v6 }
  0x41   :  { %3269 = vmatpush1.bf16.msra.mxu0 %v4440_v7  ;;  %5725 = vst [vmem:[#allocation37_spill] sm:$0xff] %v4466_v59  ;;  %v4475_v7 = vpack.c.bf16 %v2971_v19, %v2969_v16 }
  0x42   :  { %3201 = vmatpush1.bf16.msra.mxu1 %v4411_v25  ;;  %3271 = vmatprep.subr.bf16.mxu0 %v4464_v1 }
  0x43   :  { %3203 = vmatprep.subr.bf16.mxu1 %v4417_v4  ;;  %5726 = vst [vmem:[#allocation38_spill] sm:$0xff] %v4475_v7 }
  0x45   :  { %3273 = vmatpush1.bf16.msra.mxu0 %v4475_v7 }
  0x46   :  { %3205 = vmatpush1.bf16.msra.mxu1 %v4435_v60 }
  0x47   :  { %3207 = vmatprep.subr.bf16.mxu1 %v4453_v41 }
  0x4a   :  { %3209 = vmatpush1.bf16.msra.mxu1 %v4466_v59 }
  0x8a   :  { %v86_v52 = vpop.permute.xlu0 %85 }
  0x8b   :  { %v96_v16 = vpop.permute.xlu1 %95 }
  0x8e   :  { %v91_v10 = vpop.permute.xlu0 %90 }
  0xe0   :  { %v196_v39 = vpop.f32.mrb[0].mxu1 }
  0xe1   :  { %v197_v57 = vadd.f32 %v196_v39, %v86_v52  ;;  %v198_v6 = vpop.f32.mrb[1].mxu1 }
  0xe2   :  { %v199_v35 = vadd.f32 %v198_v6, %v86_v52 }
  0xe3   :  { %v219_v28 = vmax.f32 %v197_v57, 0.0 }
  0xe4   :  { %v220_v58 = vmax.f32 %v199_v35, 0.0  ;;  %v202_v48 = vpop.f32.mrb[2].mxu1 }
  0xe5   :  { %v203_v34 = vadd.f32 %v202_v48, %v91_v10  ;;  %v204_v23 = vpop.f32.mrb[3].mxu1  ;;  %664 = vrot.lane.b32.xlu0 %v219_v28, %s3767_s1 }
  0xe6   :  { %v205_v19 = vadd.f32 %v204_v23, %v91_v10  ;;  %355 = vmatprep.mubr.f32.mxu1 %v220_v58  ;;  %509 = vmatprep.mubr.f32.mxu0 %v220_v58 }
  0xe7   :  { %v221_v1 = vmax.f32 %v203_v34, 0.0  ;;  %356 = vmatmul.mubr.f32.vlgmr.msra.gmra.mrb[8].mxu1 %v219_v28  ;;  %510 = vmatmul.mubr.f32.vlgmr.msra.gmra.mrb[0].mxu0 %v219_v28  ;;  %v101_v34 = vpop.permute.xlu1 %100 }
  0xe8   :  { %v222_v7 = vmax.f32 %v205_v19, 0.0  ;;  %v208_v39 = vpop.f32.mrb[4].mxu1 }
  0xe9   :  { %v209_v8 = vadd.f32 %v208_v39, %v96_v16  ;;  %v210_v52 = vpop.f32.mrb[5].mxu1  ;;  %666 = vrot.lane.b32.xlu1 %v221_v1, %s3767_s1  ;;  %672 = vrot.lane.b32.xlu0 %v220_v58, %s3767_s1  ;;  %v4483_v48 = vpack.c.bf16 %v221_v1, %v219_v28 }
  0xea   :  { %v211_v35 = vadd.f32 %v210_v52, %v96_v16  ;;  %361 = vmatprep.mubr.f32.mxu1 %v222_v7  ;;  %515 = vmatprep.mubr.f32.mxu0 %v222_v7  ;;  %v4485_v57 = vpack.c.bf16 %v222_v7, %v220_v58 }
  0xeb   :  { %5727 = vst [vmem:[#allocation39_spill] sm:$0xff] %v4483_v48  ;;  %v223_v23 = vmax.f32 %v209_v8, 0.0  ;;  %362 = vmatmul.mubr.f32.gmra.mrb[10].mxu1 %v221_v1  ;;  %516 = vmatmul.mubr.f32.gmra.mrb[2].mxu0 %v221_v1 }
  0xec   :  { %5728 = vst [vmem:[#allocation40_spill] sm:$0xff] %v4485_v57  ;;  %v224_v10 = vmax.f32 %v211_v35, 0.0  ;;  %v214_v6 = vpop.f32.mrb[6].mxu1  ;;  %3275 = vmatprep.subr.bf16.mxu1 %v4485_v57 }
  0xed   :  { %v215_v19 = vadd.f32 %v214_v6, %v101_v34  ;;  %v216_v39 = vpop.f32.mrb[7].mxu1  ;;  %674 = vrot.lane.b32.xlu1 %v222_v7, %s3767_s1  ;;  %668 = vrot.lane.b32.xlu0 %v223_v23, %s3767_s1 }
  0xee   :  { %v217_v2 = vadd.f32 %v216_v39, %v101_v34  ;;  %3277 = vmatpush1.bf16.msra.mxu1 %v4483_v48  ;;  %367 = vmatprep.mubr.f32.mxu1 %v224_v10 }
  0xef   :  { %v225_v16 = vmax.f32 %v215_v19, 0.0  ;;  %521 = vmatprep.mubr.f32.mxu0 %v224_v10  ;;  %368 = vmatmul.mubr.f32.gmra.mrb[12].mxu1 %v223_v23 }
  0xf0   :  { %v226_v8 = vmax.f32 %v217_v2, 0.0  ;;  %522 = vmatmul.mubr.f32.gmra.mrb[4].mxu0 %v223_v23  ;;  %v5731_v2 = vmov 0.0  }
  0xf1   :  { %670 = vrot.lane.b32.xlu1 %v225_v16, %s3767_s1  ;;  %676 = vrot.lane.b32.xlu0 %v224_v10, %s3767_s1  ;;  %v4493_v52 = vpack.c.bf16 %v225_v16, %v223_v23 }
  0xf2   :  { %373 = vmatprep.mubr.f32.mxu1 %v226_v8  ;;  %527 = vmatprep.mubr.f32.mxu0 %v226_v8  ;;  %v4495_v35 = vpack.c.bf16 %v226_v8, %v224_v10 }
  0xf3   :  { %5729 = vst [vmem:[#allocation41_spill] sm:$0xff] %v4493_v52  ;;  %374 = vmatmul.mubr.f32.gmra.mrb[14].mxu1 %v225_v16 }
  0xf4   :  { %5730 = vst [vmem:[#allocation42_spill] sm:$0xff] %v4495_v35  ;;  %528 = vmatmul.mubr.f32.gmra.mrb[6].mxu0 %v225_v16  ;;  %3279 = vmatprep.subr.bf16.mxu1 %v4495_v35 }
  0xf5   :  { %678 = vrot.lane.b32.xlu1 %v226_v8, %s3767_s1  ;;  %697 = vrot.lane.b32.xlu0 %v219_v28, %s3768_s23  ;;  %v734_v28 = vld [vmem:[%s5624_s7] sm:$0xff] }
  0xf6   :  { %3281 = vmatpush1.bf16.msra.mxu1 %v4493_v52  ;;  %834 = vmatprep.mubr.f32.mxu0 %v5731_v2 }
  0xf7   :  { %639 = vmatprep.mubr.f32.mxu1 %v5731_v2 }
  0xf9   :  { %699 = vrot.lane.b32.xlu1 %v221_v1, %s3768_s23  ;;  %705 = vrot.lane.b32.xlu0 %v220_v58, %s3768_s23  ;;  %v735_v1 = vld [vmem:[%s5624_s7 + $0x8] sm:$0xff]  ;;  %v736_v58 = vld [vmem:[%s5624_s7 + $0x10] sm:$0xff] }
  0xfd   :  { %707 = vrot.lane.b32.xlu1 %v222_v7, %s3768_s23  ;;  %701 = vrot.lane.b32.xlu0 %v223_v23, %s3768_s23  ;;  %v737_v7 = vld [vmem:[%s5624_s7 + $0x18] sm:$0xff]  ;;  %v59_v23 = vlaneseq }
 0x101   :  { %703 = vrot.lane.b32.xlu1 %v225_v16, %s3768_s23  ;;  %709 = vrot.lane.b32.xlu0 %v224_v10, %s3768_s23  ;;  %v4522_v10 = vand.u32 127, %v59_v23 }
 0x103   :  { %vm62_vm2 = vcmp.ge.s32.totalorder %v4522_v10, 32  ;;  %vm680_vm3 = vcmp.lt.s32.totalorder %v4522_v10, 32  ;;  %v61_v5 = vadd.s32 128, %v4522_v10  ;;  %vm713_vm4 = vcmp.lt.s32.totalorder %v4522_v10, 96  ;;  %v3034_v10 = vld [vmem:[%s5625_s6 + $0x68] sm:$0xff] }
 0x104   :  { %v4527_v39 = vsel %vm62_vm2, 1.0, %v5731_v2 }
 0x105   :  { %711 = vrot.lane.b32.xlu1 %v226_v8, %s3768_s23  ;;  %740 = vperm.xlu0 %3639, %v734_v28   ;;  %vm69_vm5 = vcmp.lt.s32.totalorder %v61_v5, 224 }
 0x109   :  { %745 = vperm.xlu1 %3640, %v735_v1   ;;  %750 = vperm.xlu0 %3639, %v736_v58  }
 0x10d   :  { %755 = vperm.xlu1 %3640, %v737_v7  }
 0x157   :  { %v665_v34 = vpop.permute.xlu0 %664 }
 0x15b   :  { %v667_v6 = vpop.permute.xlu1 %666  ;;  %v673_v19 = vpop.permute.xlu0 %672 }
 0x15c   :  { %v685_v16 = vsel %vm680_vm3, %v673_v19, %v665_v34  ;;  %v681_v1 = vsel %vm680_vm3, %v665_v34, %v673_v19 }
 0x15d   :  { %v689_v23 = vmul.f32 %v4527_v39, %v685_v16 }
 0x15f   :  { %v675_v8 = vpop.permute.xlu1 %674  ;;  %v669_v28 = vpop.permute.xlu0 %668 }
 0x160   :  { %v682_v58 = vsel %vm680_vm3, %v667_v6, %v675_v8  ;;  %v686_v7 = vsel %vm680_vm3, %v675_v8, %v667_v6 }
 0x161   :  { %v691_v53 = vmul.f32 %v4527_v39, %v686_v7  ;;  %v3298_v46 = vpack.c.bf16 %v682_v58, %v681_v1 }
 0x163   :  { %v3300_v37 = vpack.c.bf16 %v691_v53, %v689_v23  ;;  %v671_v30 = vpop.permute.xlu1 %670  ;;  %3299 = vmatprep.subr.bf16.mxu0 %v3298_v46  ;;  %v677_v20 = vpop.permute.xlu0 %676 }
 0x164   :  { %v687_v12 = vsel %vm680_vm3, %v677_v20, %v669_v28  ;;  %v683_v6 = vsel %vm680_vm3, %v669_v28, %v677_v20  ;;  %v4552_v20 = vsel %vm69_vm5, 1.0, %v5731_v2 }
 0x165   :  { %3301 = vmatpush1.bf16.msra.mxu0 %v3300_v37  ;;  %v693_v46 = vmul.f32 %v4527_v39, %v687_v12 }
 0x167   :  { %v679_v34 = vpop.permute.xlu1 %678  ;;  %v698_v19 = vpop.permute.xlu0 %697 }
 0x168   :  { %v684_v16 = vsel %vm680_vm3, %v671_v30, %v679_v34  ;;  %v688_v53 = vsel %vm680_vm3, %v679_v34, %v671_v30 }
 0x169   :  { %v695_v37 = vmul.f32 %v4527_v39, %v688_v53  ;;  %v3302_v8 = vpack.c.bf16 %v684_v16, %v683_v6 }
 0x16b   :  { %v3304_v1 = vpack.c.bf16 %v695_v37, %v693_v46  ;;  %v700_v58 = vpop.permute.xlu1 %699  ;;  %v706_v7 = vpop.permute.xlu0 %705  ;;  %3303 = vmatprep.subr.bf16.mxu0 %v3302_v8 }
 0x16c   :  { %v718_v28 = vsel %vm713_vm4, %v706_v7, %v698_v19  ;;  %v714_v37 = vsel %vm713_vm4, %v698_v19, %v706_v7 }
 0x16d   :  { %3305 = vmatpush1.bf16.msra.mxu0 %v3304_v1  ;;  %v723_v34 = vmul.f32 %v4552_v20, %v718_v28 }
 0x16e   :  { %3307 = vmatprep.subr.bf16.mxu0 %v4485_v57 }
 0x16f   :  { %v708_v12 = vpop.permute.xlu1 %707  ;;  %v702_v30 = vpop.permute.xlu0 %701 }
 0x170   :  { %v719_v23 = vsel %vm713_vm4, %v708_v12, %v700_v58  ;;  %v715_v46 = vsel %vm713_vm4, %v700_v58, %v708_v12 }
 0x171   :  { %v725_v5 = vmul.f32 %v4552_v20, %v719_v23  ;;  %3309 = vmatpush1.bf16.msra.mxu0 %v4483_v48  ;;  %v3316_v1 = vpack.c.bf16 %v715_v46, %v714_v37 }
 0x172   :  { %3311 = vmatprep.subr.bf16.mxu0 %v4495_v35 }
 0x173   :  { %v704_v6 = vpop.permute.xlu1 %703  ;;  %v710_v16 = vpop.permute.xlu0 %709  ;;  %v3314_v53 = vpack.c.bf16 %v725_v5, %v723_v34  ;;  %v730_v5 = vld [vmem:[%s5625_s6] sm:$0xff] }
 0x174   :  { %v720_v8 = vsel %vm713_vm4, %v710_v16, %v702_v30  ;;  %v716_v19 = vsel %vm713_vm4, %v702_v30, %v710_v16  ;;  %v733_v30 = vld [vmem:[%s5625_s6 + $0x18] sm:$0xff] }
 0x175   :  { %3313 = vmatpush1.bf16.msra.mxu0 %v4493_v52  ;;  %v727_v63 = vmul.f32 %v4552_v20, %v720_v8 }
 0x176   :  { %3315 = vmatprep.subr.bf16.mxu0 %v3314_v53 }
 0x177   :  { %v712_v28 = vpop.permute.xlu1 %711 }
 0x178   :  { %v721_v23 = vsel %vm713_vm4, %v712_v28, %v704_v6  ;;  %v717_v34 = vsel %vm713_vm4, %v704_v6, %v712_v28  ;;  %v731_v6 = vld [vmem:[%s5625_s6 + $0x8] sm:$0xff] }
 0x179   :  { %v729_v58 = vmul.f32 %v4552_v20, %v721_v23  ;;  %3317 = vmatpush1.bf16.msra.mxu0 %v3316_v1  ;;  %v3320_v12 = vpack.c.bf16 %v717_v34, %v716_v19 }
 0x17b   :  { %v3318_v7 = vpack.c.bf16 %v729_v58, %v727_v63  ;;  %v732_v63 = vld [vmem:[%s5625_s6 + $0x10] sm:$0xff] }
 0x17d   :  { %3319 = vmatprep.subr.bf16.mxu0 %v3318_v7 }
 0x17e   :  { %3321 = vmatpush1.bf16.msra.mxu0 %v3320_v12 }
 0x181   :  { %2977 = vmatmul.mubr.msk.f32.vlgmr.msra.gmra.mrb[8].mxu0 %vm562_vm6, %v730_v5 }
 0x182   :  { %840 = vmatprep.mubr.f32.mxu0 %v5731_v2 }
 0x185   :  { %2978 = vmatmul.mubr.msk.f32.gmra.mrb[10].mxu0 %vm562_vm6, %v731_v6 }
 0x186   :  { %846 = vmatprep.mubr.f32.mxu0 %v5731_v2 }
 0x189   :  { %2979 = vmatmul.mubr.msk.f32.gmra.mrb[12].mxu0 %vm562_vm6, %v732_v63 }
 0x18a   :  { %852 = vmatprep.mubr.f32.mxu0 %v5731_v2 }
 0x18d   :  { %2980 = vmatmul.mubr.msk.f32.gmra.mrb[14].mxu0 %vm562_vm6, %v733_v30 }
 0x18e   :  { %1175 = vmatprep.mubr.f32.mxu0 %v5731_v2 }
 0x1ba   :  { %v357_v16 = vpop.f32.mrb[8].mxu1  ;;  %v511_v53 = vpop.f32.mrb[0].mxu0 }
 0x1bb   :  { %v359_v46 = vpop.f32.mrb[9].mxu1  ;;  %v513_v37 = vpop.f32.mrb[1].mxu0 }
 0x1be   :  { %v363_v8 = vpop.f32.mrb[10].mxu1  ;;  %v517_v1 = vpop.f32.mrb[2].mxu0 }
 0x1bf   :  { %v3284_v28 = vpack.c.bf16 %v363_v8, %v357_v16  ;;  %v3292_v23 = vpack.c.bf16 %v517_v1, %v511_v53  ;;  %v365_v34 = vpop.f32.mrb[11].mxu1  ;;  %v519_v58 = vpop.f32.mrb[3].mxu0  ;;  %v534_v16 = vld [vmem:[%s5626_s4] sm:$0xff] }
 0x1c0   :  { %v3282_v19 = vpack.c.bf16 %v365_v34, %v359_v46  ;;  %v3290_v7 = vpack.c.bf16 %v519_v58, %v513_v37  ;;  %v746_v37 = vpop.permute.xlu1 %745 }
 0x1c2   :  { %v369_v12 = vpop.f32.mrb[12].mxu1  ;;  %3283 = vmatprep.subr.bf16.mxu1 %v3282_v19 }
 0x1c3   :  { %v523_v5 = vpop.f32.mrb[4].mxu0  ;;  %v371_v6 = vpop.f32.mrb[13].mxu1  ;;  %3285 = vmatpush1.bf16.msra.mxu1 %v3284_v28 }
 0x1c4   :  { %v525_v63 = vpop.f32.mrb[5].mxu0 }
 0x1c6   :  { %v375_v30 = vpop.f32.mrb[14].mxu1 }
 0x1c7   :  { %v3288_v56 = vpack.c.bf16 %v375_v30, %v369_v12  ;;  %v529_v51 = vpop.f32.mrb[6].mxu0  ;;  %v377_v44 = vpop.f32.mrb[15].mxu1 }
 0x1c8   :  { %v3296_v36 = vpack.c.bf16 %v529_v51, %v523_v5  ;;  %v3286_v27 = vpack.c.bf16 %v377_v44, %v371_v6  ;;  %v531_v22 = vpop.f32.mrb[7].mxu0  ;;  %v535_v44 = vld [vmem:[%s5626_s4 + $0x8] sm:$0xff] }
 0x1c9   :  { %v3294_v17 = vpack.c.bf16 %v531_v22, %v525_v63  ;;  %v537_v22 = vld [vmem:[%s5626_s4 + $0x18] sm:$0xff] }
 0x1ca   :  { %3287 = vmatprep.subr.bf16.mxu1 %v3286_v27  ;;  %v741_v27 = vpop.permute.xlu0 %740 }
 0x1cb   :  { %3289 = vmatpush1.bf16.msra.mxu1 %v3288_v56 }
 0x1cc   :  { %3291 = vmatprep.subr.bf16.mxu1 %v3290_v7 }
 0x1ce   :  { %v751_v19 = vpop.permute.xlu0 %750 }
 0x1cf   :  { %3293 = vmatpush1.bf16.msra.mxu1 %v3292_v23 }
 0x1d0   :  { %3295 = vmatprep.subr.bf16.mxu1 %v3294_v17  ;;  %v536_v17 = vld [vmem:[%s5626_s4 + $0x10] sm:$0xff] }
 0x1d3   :  { %3297 = vmatpush1.bf16.msra.mxu1 %v3296_v36 }
 0x1d6   :  { %2973 = vmatmul.mubr.msk.f32.vlgmr.msra.gmra.mrb[16].mxu1 %vm562_vm6, %v534_v16 }
 0x1d7   :  { %645 = vmatprep.mubr.f32.mxu1 %v5731_v2 }
 0x1da   :  { %2974 = vmatmul.mubr.msk.f32.gmra.mrb[18].mxu1 %vm562_vm6, %v535_v44 }
 0x1db   :  { %651 = vmatprep.mubr.f32.mxu1 %v5731_v2 }
 0x1de   :  { %2975 = vmatmul.mubr.msk.f32.gmra.mrb[20].mxu1 %vm562_vm6, %v536_v17  ;;  %v756_v17 = vpop.permute.xlu1 %755 }
 0x1df   :  { %657 = vmatprep.mubr.f32.mxu1 %v5731_v2 }
 0x1e2   :  { %2976 = vmatmul.mubr.msk.f32.gmra.mrb[22].mxu1 %vm562_vm6, %v537_v22 }
 0x1e3   :  { %1037 = vmatprep.mubr.f32.mxu1 %v5731_v2 }
 0x254   :  { %v836_v36 = vpop.f32.mrb[8].mxu0 }
 0x255   :  { %v837_v51 = vadd.f32 %v836_v36, %v741_v27  ;;  %v838_v56 = vpop.f32.mrb[9].mxu0 }
 0x256   :  { %v839_v46 = vadd.f32 %v838_v56, %v741_v27 }
 0x257   :  { %v4618_v53 = vmax.f32 %v837_v51, 0.0 }
 0x258   :  { %v842_v8 = vpop.f32.mrb[10].mxu0  ;;  %v4622_v34 = vmax.f32 %v839_v46, 0.0 }
 0x259   :  { %v843_v1 = vadd.f32 %v842_v8, %v746_v37  ;;  %v844_v28 = vpop.f32.mrb[11].mxu0  ;;  %867 = vrot.lane.b32.xlu0 %v4618_v53, %s3767_s1 }
 0x25a   :  { %v845_v23 = vadd.f32 %v844_v28, %v746_v37  ;;  %v538_v28 = vld [vmem:[%s5627_s5] sm:$0xff] }
 0x25b   :  { %v4624_v58 = vmax.f32 %v843_v1, 0.0 }
 0x25c   :  { %v4626_v7 = vmax.f32 %v845_v23, 0.0  ;;  %v848_v12 = vpop.f32.mrb[12].mxu0  ;;  %v539_v23 = vld [vmem:[%s5627_s5 + $0x8] sm:$0xff] }
 0x25d   :  { %v849_v6 = vadd.f32 %v848_v12, %v751_v19  ;;  %v850_v63 = vpop.f32.mrb[13].mxu0  ;;  %869 = vrot.lane.b32.xlu1 %v4624_v58, %s3767_s1  ;;  %875 = vrot.lane.b32.xlu0 %v4622_v34, %s3767_s1  ;;  %v541_v12 = vld [vmem:[%s5627_s5 + $0x18] sm:$0xff] }
 0x25e   :  { %v851_v44 = vadd.f32 %v850_v63, %v751_v19  ;;  %v540_v19 = vld [vmem:[%s5627_s5 + $0x10] sm:$0xff]  ;;  %v2986_v63 = vld [vmem:[%s5624_s7 + $0x28] sm:$0xff] }
 0x25f   :  { %v4636_v16 = vmax.f32 %v849_v6, 0.0  ;;  %v2985_v6 = vld [vmem:[%s5624_s7 + $0x20] sm:$0xff] }
 0x260   :  { %v854_v22 = vpop.f32.mrb[14].mxu0  ;;  %v4642_v56 = vmax.f32 %v851_v44, 0.0  ;;  %v2987_v44 = vld [vmem:[%s5624_s7 + $0x30] sm:$0xff] }
 0x261   :  { %v855_v27 = vadd.f32 %v854_v22, %v756_v17  ;;  %v856_v36 = vpop.f32.mrb[15].mxu0  ;;  %877 = vrot.lane.b32.xlu1 %v4626_v7, %s3767_s1  ;;  %871 = vrot.lane.b32.xlu0 %v4636_v16, %s3767_s1  ;;  %v1074_v22 = vld [vmem:[%s5628_s9] sm:$0xff] }
 0x262   :  { %v857_v51 = vadd.f32 %v856_v36, %v756_v17  ;;  %v2988_v17 = vld [vmem:[%s5624_s7 + $0x38] sm:$0xff]  ;;  %v1076_v36 = vld [vmem:[%s5628_s9 + $0x10] sm:$0xff] }
 0x263   :  { %v4644_v46 = vmax.f32 %v855_v27, 0.0  ;;  %v1075_v27 = vld [vmem:[%s5628_s9 + $0x8] sm:$0xff] }
 0x264   :  { %v4646_v37 = vmax.f32 %v857_v51, 0.0  ;;  %v1077_v51 = vld [vmem:[%s5628_s9 + $0x18] sm:$0xff] }
 0x265   :  { %873 = vrot.lane.b32.xlu1 %v4644_v46, %s3767_s1  ;;  %879 = vrot.lane.b32.xlu0 %v4642_v56, %s3767_s1 }
 0x269   :  { %881 = vrot.lane.b32.xlu1 %v4646_v37, %s3767_s1  ;;  %899 = vrot.lane.b32.xlu0 %v4618_v53, %s3768_s23 }
 0x26d   :  { %901 = vrot.lane.b32.xlu1 %v4624_v58, %s3768_s23  ;;  %907 = vrot.lane.b32.xlu0 %v4622_v34, %s3768_s23 }
 0x271   :  { %909 = vrot.lane.b32.xlu1 %v4626_v7, %s3768_s23  ;;  %903 = vrot.lane.b32.xlu0 %v4636_v16, %s3768_s23 }
 0x275   :  { %905 = vrot.lane.b32.xlu1 %v4644_v46, %s3768_s23  ;;  %911 = vrot.lane.b32.xlu0 %v4642_v56, %s3768_s23 }
 0x279   :  { %913 = vrot.lane.b32.xlu1 %v4646_v37, %s3768_s23  ;;  %544 = vperm.xlu0 %3639, %v538_v28   ;;  %v1252_v28 = vld [vmem:[%s5629_s11] sm:$0xff] }
 0x27d   :  { %549 = vperm.xlu1 %3640, %v539_v23   ;;  %554 = vperm.xlu0 %3639, %v540_v19   ;;  %v1253_v23 = vld [vmem:[%s5629_s11 + $0x8] sm:$0xff]  ;;  %v1254_v19 = vld [vmem:[%s5629_s11 + $0x10] sm:$0xff] }
 0x281   :  { %559 = vperm.xlu1 %3640, %v541_v12   ;;  %943 = vperm.xlu0 %3639, %v2985_v6   ;;  %v1255_v12 = vld [vmem:[%s5629_s11 + $0x18] sm:$0xff]  ;;  %v1378_v6 = vld [vmem:[%s5630_s12] sm:$0xff] }
 0x285   :  { %948 = vperm.xlu1 %3640, %v2986_v63   ;;  %953 = vperm.xlu0 %3639, %v2987_v44   ;;  %v1379_v63 = vld [vmem:[%s5630_s12 + $0x8] sm:$0xff]  ;;  %v1450_v44 = vld [vmem:[%s5631_s13] sm:$0xff] }
 0x289   :  { %958 = vperm.xlu1 %3640, %v2988_v17   ;;  %1080 = vperm.xlu0 %3639, %v1074_v22   ;;  %v1451_v17 = vld [vmem:[%s5631_s13 + $0x8] sm:$0xff]  ;;  %v1380_v22 = vld [vmem:[%s5630_s12 + $0x10] sm:$0xff] }
 0x28d   :  { %1085 = vperm.xlu1 %3640, %v1075_v27   ;;  %1090 = vperm.xlu0 %3639, %v1076_v36   ;;  %v1381_v27 = vld [vmem:[%s5630_s12 + $0x18] sm:$0xff]  ;;  %v1452_v36 = vld [vmem:[%s5631_s13 + $0x10] sm:$0xff] }
 0x291   :  { %1095 = vperm.xlu1 %3640, %v1077_v51   ;;  %1258 = vperm.xlu0 %3639, %v1252_v28   ;;  %v1453_v51 = vld [vmem:[%s5631_s13 + $0x18] sm:$0xff] }
 0x295   :  { %1263 = vperm.xlu1 %3640, %v1253_v23   ;;  %1268 = vperm.xlu0 %3639, %v1254_v19  }
 0x299   :  { %1273 = vperm.xlu1 %3640, %v1255_v12   ;;  %1424 = vperm.xlu0 %3639, %v1378_v6  }
 0x29d   :  { %1429 = vperm.xlu1 %3640, %v1379_v63   ;;  %1456 = vperm.xlu0 %3639, %v1450_v44  }
 0x2a1   :  { %1461 = vperm.xlu1 %3640, %v1451_v17   ;;  %1434 = vperm.xlu0 %3639, %v1380_v22  }
 0x2a5   :  { %1439 = vperm.xlu1 %3640, %v1381_v27   ;;  %1466 = vperm.xlu0 %3639, %v1452_v36  }
 0x2a9   :  { %1471 = vperm.xlu1 %3640, %v1453_v51   ;;  %v4746_v28 = vpop.f32.mrb[16].mxu1 }
 0x2aa   :  { %v4748_v23 = vpop.f32.mrb[17].mxu1 }
 0x2ad   :  { %v4750_v19 = vpop.f32.mrb[18].mxu1 }
 0x2ae   :  { %v4752_v12 = vpop.f32.mrb[19].mxu1 }
 0x2b1   :  { %v4754_v6 = vpop.f32.mrb[20].mxu1 }
 0x2b2   :  { %v4756_v63 = vpop.f32.mrb[21].mxu1 }
 0x2b5   :  { %v4758_v44 = vpop.f32.mrb[22].mxu1 }
 0x2b6   :  { %v4760_v17 = vpop.f32.mrb[23].mxu1 }
 0x2cb   :  { %v868_v22 = vpop.permute.xlu0 %867 }
 0x2cf   :  { %v870_v27 = vpop.permute.xlu1 %869  ;;  %v876_v36 = vpop.permute.xlu0 %875 }
 0x2d0   :  { %v887_v51 = vsel %vm680_vm3, %v876_v36, %v868_v22  ;;  %v883_v5 = vsel %vm680_vm3, %v868_v22, %v876_v36 }
 0x2d1   :  { %v891_v35 = vmul.f32 %v4527_v39, %v887_v51 }
 0x2d3   :  { %v878_v8 = vpop.permute.xlu1 %877  ;;  %v872_v1 = vpop.permute.xlu0 %871 }
 0x2d4   :  { %v884_v30 = vsel %vm680_vm3, %v870_v27, %v878_v8  ;;  %v888_v52 = vsel %vm680_vm3, %v878_v8, %v870_v27 }
 0x2d5   :  { %v893_v48 = vmul.f32 %v4527_v39, %v888_v52  ;;  %v3322_v57 = vpack.c.bf16 %v884_v30, %v883_v5 }
 0x2d7   :  { %v3324_v59 = vpack.c.bf16 %v893_v48, %v891_v35  ;;  %v874_v41 = vpop.permute.xlu1 %873  ;;  %v880_v60 = vpop.permute.xlu0 %879  ;;  %3323 = vmatprep.subr.bf16.mxu1 %v3322_v57 }
 0x2d8   :  { %v889_v4 = vsel %vm680_vm3, %v880_v60, %v872_v1  ;;  %v885_v25 = vsel %vm680_vm3, %v872_v1, %v880_v60  ;;  %v5732_v60 = vpack.c.bf16 %v4626_v7, %v4622_v34 }
 0x2d9   :  { %3325 = vmatpush1.bf16.msra.mxu1 %v3324_v59  ;;  %v895_v48 = vmul.f32 %v4527_v39, %v889_v4 }
 0x2db   :  { %v882_v22 = vpop.permute.xlu1 %881  ;;  %v900_v36 = vpop.permute.xlu0 %899 }
 0x2dc   :  { %v886_v8 = vsel %vm680_vm3, %v874_v41, %v882_v22  ;;  %v890_v52 = vsel %vm680_vm3, %v882_v22, %v874_v41  ;;  %v5733_v22 = vpack.c.bf16 %v4624_v58, %v4618_v53 }
 0x2dd   :  { %v897_v35 = vmul.f32 %v4527_v39, %v890_v52  ;;  %v3326_v57 = vpack.c.bf16 %v886_v8, %v885_v25  ;;  %v5734_v8 = vpack.c.bf16 %v4646_v37, %v4642_v56 }
 0x2df   :  { %v3328_v59 = vpack.c.bf16 %v897_v35, %v895_v48  ;;  %v902_v5 = vpop.permute.xlu1 %901  ;;  %v908_v30 = vpop.permute.xlu0 %907  ;;  %3327 = vmatprep.subr.bf16.mxu1 %v3326_v57  ;;  %v5735_v35 = vpack.c.bf16 %v4644_v46, %v4636_v16 }
 0x2e0   :  { %v919_v27 = vsel %vm713_vm4, %v908_v30, %v900_v36  ;;  %v915_v57 = vsel %vm713_vm4, %v900_v36, %v908_v30 }
 0x2e1   :  { %3329 = vmatpush1.bf16.msra.mxu1 %v3328_v59  ;;  %v924_v41 = vmul.f32 %v4552_v20, %v919_v27  ;;  %v2981_v27 = vld [vmem:[%s5625_s6 + $0x20] sm:$0xff] }
 0x2e2   :  { %3331 = vmatprep.subr.bf16.mxu1 %v5732_v60  ;;  %v2982_v60 = vld [vmem:[%s5625_s6 + $0x28] sm:$0xff] }
 0x2e3   :  { %v910_v1 = vpop.permute.xlu1 %909  ;;  %v904_v51 = vpop.permute.xlu0 %903 }
 0x2e4   :  { %v920_v4 = vsel %vm713_vm4, %v910_v1, %v902_v5  ;;  %v916_v48 = vsel %vm713_vm4, %v902_v5, %v910_v1 }
 0x2e5   :  { %v926_v25 = vmul.f32 %v4552_v20, %v920_v4  ;;  %3333 = vmatpush1.bf16.msra.mxu1 %v5733_v22  ;;  %v3340_v58 = vpack.c.bf16 %v916_v48, %v915_v57 }
 0x2e6   :  { %3335 = vmatprep.subr.bf16.mxu1 %v5734_v8 }
 0x2e7   :  { %v906_v52 = vpop.permute.xlu1 %905  ;;  %v912_v34 = vpop.permute.xlu0 %911  ;;  %v3338_v7 = vpack.c.bf16 %v926_v25, %v924_v41 }
 0x2e8   :  { %v921_v53 = vsel %vm713_vm4, %v912_v34, %v904_v51  ;;  %v917_v46 = vsel %vm713_vm4, %v904_v51, %v912_v34 }
 0x2e9   :  { %3337 = vmatpush1.bf16.msra.mxu1 %v5735_v35  ;;  %v928_v59 = vmul.f32 %v4552_v20, %v921_v53 }
 0x2ea   :  { %3339 = vmatprep.subr.bf16.mxu1 %v3338_v7 }
 0x2eb   :  { %v914_v56 = vpop.permute.xlu1 %913 }
 0x2ec   :  { %v922_v37 = vsel %vm713_vm4, %v914_v56, %v906_v52  ;;  %v918_v5 = vsel %vm713_vm4, %v906_v52, %v914_v56 }
 0x2ed   :  { %v930_v16 = vmul.f32 %v4552_v20, %v922_v37  ;;  %3341 = vmatpush1.bf16.msra.mxu1 %v3340_v58  ;;  %v3344_v30 = vpack.c.bf16 %v918_v5, %v917_v46  ;;  %v1070_v46 = vld [vmem:[%s5632_s8] sm:$0xff] }
 0x2ef   :  { %v3342_v36 = vpack.c.bf16 %v930_v16, %v928_v59 }
 0x2f1   :  { %3343 = vmatprep.subr.bf16.mxu1 %v3342_v36  ;;  %v5741_v36 = vld [vmem:[#allocation40_spill] sm:$0xff] }
 0x2f2   :  { %3345 = vmatpush1.bf16.msra.mxu1 %v3344_v30  ;;  %v5742_v30 = vld [vmem:[#allocation39_spill] sm:$0xff] }
 0x2f3   :  { %3371 = vmatprep.subr.bf16.mxu1 %v3900_v13  ;;  %v2983_v13 = vld [vmem:[%s5625_s6 + $0x30] sm:$0xff] }
 0x2f5   :  { %2989 = vmatmul.mubr.msk.f32.vlgmr.msra.gmra.mrb[24].mxu1 %vm562_vm6, %v2981_v27  ;;  %v1071_v27 = vld [vmem:[%s5632_s8 + $0x8] sm:$0xff] }
 0x2f6   :  { %1043 = vmatprep.mubr.f32.mxu1 %v5731_v2  ;;  %3373 = vmatpush1.bf16.msra.mxu1 %v3914_v18 }
 0x2f7   :  { %3375 = vmatprep.subr.bf16.mxu1 %v3938_v26 }
 0x2f8   :  { %v545_v1 = vpop.permute.xlu0 %544 }
 0x2f9   :  { %2990 = vmatmul.mubr.msk.f32.gmra.mrb[26].mxu1 %vm562_vm6, %v2982_v60  ;;  %v4833_v4 = vadd.f32 %v4746_v28, %v545_v1  ;;  %v4836_v18 = vadd.f32 %v4748_v23, %v545_v1  ;;  %v5743_v60 = vld [vmem:[#allocation42_spill] sm:$0xff]  ;;  %v5744_v1 = vld [vmem:[#allocation41_spill] sm:$0xff] }
 0x2fa   :  { %1049 = vmatprep.mubr.f32.mxu1 %v5731_v2  ;;  %3377 = vmatpush1.bf16.msra.mxu1 %v3956_v32  ;;  %v2984_v32 = vld [vmem:[%s5625_s6 + $0x38] sm:$0xff] }
 0x2fb   :  { %3379 = vmatprep.subr.bf16.mxu1 %v3982_v40 }
 0x2fc   :  { %v550_v51 = vpop.permute.xlu1 %549  ;;  %v555_v25 = vpop.permute.xlu0 %554 }
 0x2fd   :  { %v4839_v26 = vadd.f32 %v4750_v19, %v550_v51  ;;  %v4842_v41 = vadd.f32 %v4752_v12, %v550_v51  ;;  %2991 = vmatmul.mubr.msk.f32.gmra.mrb[28].mxu1 %vm562_vm6, %v2983_v13  ;;  %v4856_v23 = vadd.f32 %v4754_v6, %v555_v25  ;;  %v4859_v12 = vadd.f32 %v4756_v63, %v555_v25  ;;  %v1072_v13 = vld [vmem:[%s5632_s8 + $0x10] sm:$0xff]  ;;  %v5745_v51 = vld [vmem:[#allocation2_spill] sm:$0xff]  ;;  %v1073_v25 = vld [vmem:[%s5632_s8 + $0x18] sm:$0xff] }
 0x2fe   :  { %1055 = vmatprep.mubr.f32.mxu1 %v5731_v2  ;;  %3381 = vmatpush1.bf16.msra.mxu1 %v4009_v49 }
 0x2ff   :  { %v3348_v40 = vpack.c.bf16 %v4839_v26, %v4833_v4  ;;  %v3346_v28 = vpack.c.bf16 %v4842_v41, %v4836_v18  ;;  %3383 = vmatprep.subr.bf16.mxu1 %v4029_v55 }
 0x300   :  { %v560_v19 = vpop.permute.xlu1 %559 }
 0x301   :  { %v4862_v22 = vadd.f32 %v4758_v44, %v560_v19  ;;  %v4865_v49 = vadd.f32 %v4760_v17, %v560_v19  ;;  %2992 = vmatmul.mubr.msk.f32.gmra.mrb[30].mxu1 %vm562_vm6, %v2984_v32  ;;  %3347 = vmatprep.subr.bf16.mxu0 %v3346_v28  ;;  %v1248_v32 = vld [vmem:[%s5633_s10] sm:$0xff]  ;;  %v5746_v28 = vld [vmem:[#allocation3_spill] sm:$0xff]  ;;  %v5747_v19 = vld [vmem:[#allocation4_spill] sm:$0xff] }
 0x302   :  { %3349 = vmatpush1.bf16.msra.mxu0 %v3348_v40  ;;  %3385 = vmatpush1.bf16.msra.mxu1 %v4050_v62  ;;  %v5736_v62 = vld [vmem:[#allocation29_spill] sm:$0xff]  ;;  %v1249_v40 = vld [vmem:[%s5633_s10 + $0x8] sm:$0xff] }
 0x303   :  { %v3352_v55 = vpack.c.bf16 %v4862_v22, %v4856_v23  ;;  %v3350_v6 = vpack.c.bf16 %v4865_v49, %v4859_v12  ;;  %3387 = vmatprep.subr.bf16.mxu1 %v4056_v0  ;;  %v5737_v0 = vld [vmem:[#allocation31_spill] sm:$0xff] }
 0x305   :  { %3351 = vmatprep.subr.bf16.mxu0 %v3350_v6  ;;  %v5748_v6 = vld [vmem:[#allocation5_spill] sm:$0xff] }
 0x306   :  { %3353 = vmatpush1.bf16.msra.mxu0 %v3352_v55  ;;  %3389 = vmatpush1.bf16.msra.mxu1 %v4087_v11  ;;  %v5738_v11 = vld [vmem:[#allocation33_spill] sm:$0xff]  ;;  %v1250_v55 = vld [vmem:[%s5633_s10 + $0x10] sm:$0xff] }
 0x307   :  { %3391 = vmatprep.subr.bf16.mxu1 %v4093_v14  ;;  %v5739_v14 = vld [vmem:[#allocation35_spill] sm:$0xff] }
 0x30a   :  { %3393 = vmatpush1.bf16.msra.mxu1 %v4123_v29  ;;  %v5740_v29 = vld [vmem:[#allocation37_spill] sm:$0xff] }
 0x30b   :  { %3395 = vmatprep.subr.bf16.mxu1 %v4129_v31 }
 0x30e   :  { %3397 = vmatpush1.bf16.msra.mxu1 %v4159_v45 }
 0x30f   :  { %3399 = vmatprep.subr.bf16.mxu1 %v4165_v47  ;;  %v944_v47 = vpop.permute.xlu0 %943 }
 0x312   :  { %3401 = vmatpush1.bf16.msra.mxu1 %v4195_v61  ;;  %v949_v61 = vpop.permute.xlu1 %948 }
 0x313   :  { %3403 = vmatprep.subr.bf16.mxu1 %v4201_v3  ;;  %v954_v17 = vpop.permute.xlu0 %953 }
 0x316   :  { %3405 = vmatpush1.bf16.msra.mxu1 %v4231_v21  ;;  %v959_v52 = vpop.permute.xlu1 %958 }
 0x317   :  { %3407 = vmatprep.subr.bf16.mxu1 %v4237_v24 }
 0x31a   :  { %3409 = vmatpush1.bf16.msra.mxu1 %v4267_v43 }
 0x31b   :  { %3411 = vmatprep.subr.bf16.mxu1 %v4273_v50 }
 0x31e   :  { %3413 = vmatpush1.bf16.msra.mxu1 %v4303_v9 }
 0x31f   :  { %3415 = vmatprep.subr.bf16.mxu1 %v4309_v15 }
 0x322   :  { %3417 = vmatpush1.bf16.msra.mxu1 %v4339_v42 }
 0x323   :  { %3419 = vmatprep.subr.bf16.mxu1 %v4345_v54 }
 0x326   :  { %3421 = vmatpush1.bf16.msra.mxu1 %v4375_v33 }
 0x327   :  { %3423 = vmatprep.subr.bf16.mxu1 %v4381_v38 }
 0x32a   :  { %3425 = vmatpush1.bf16.msra.mxu1 %v5736_v62  ;;  %v5749_v62 = vld [vmem:[#allocation6_spill] sm:$0xff] }
 0x32b   :  { %3427 = vmatprep.subr.bf16.mxu1 %v5737_v0  ;;  %v1251_v0 = vld [vmem:[%s5633_s10 + $0x18] sm:$0xff] }
 0x32e   :  { %3429 = vmatpush1.bf16.msra.mxu1 %v5738_v11  ;;  %v5750_v11 = vld [vmem:[#allocation7_spill] sm:$0xff] }
 0x32f   :  { %3431 = vmatprep.subr.bf16.mxu1 %v5739_v14  ;;  %v5751_v14 = vld [vmem:[#allocation8_spill] sm:$0xff] }
 0x332   :  { %3433 = vmatpush1.bf16.msra.mxu1 %v5740_v29  ;;  %v5752_v29 = vld [vmem:[#allocation9_spill] sm:$0xff] }
 0x3c8   :  { %v1039_v31 = vpop.f32.mrb[24].mxu1 }
 0x3c9   :  { %v1041_v45 = vpop.f32.mrb[25].mxu1  ;;  %v4899_v24 = vadd.f32 %v1039_v31, %v944_v47  ;;  %v5753_v31 = vld [vmem:[#allocation10_spill] sm:$0xff] }
 0x3ca   :  { %v4897_v3 = vadd.f32 %v1041_v45, %v944_v47  ;;  %v5754_v45 = vld [vmem:[#allocation11_spill] sm:$0xff]  ;;  %v5755_v47 = vld [vmem:[#allocation12_spill] sm:$0xff] }
 0x3cb   :  { %v1062_v38 = vmax.f32 %v4899_v24, 0.0 }
 0x3cc   :  { %v1045_v21 = vpop.f32.mrb[26].mxu1  ;;  %v1063_v42 = vmax.f32 %v4897_v3, 0.0 }
 0x3cd   :  { %v4901_v43 = vadd.f32 %v1045_v21, %v949_v61  ;;  %v1047_v50 = vpop.f32.mrb[27].mxu1  ;;  %v5757_v21 = vld [vmem:[#allocation14_spill] sm:$0xff] }
 0x3ce   :  { %v4903_v9 = vadd.f32 %v1047_v50, %v949_v61  ;;  %v5756_v61 = vld [vmem:[#allocation13_spill] sm:$0xff]  ;;  %v5758_v50 = vld [vmem:[#allocation15_spill] sm:$0xff] }
 0x3cf   :  { %v1064_v15 = vmax.f32 %v4901_v43, 0.0 }
 0x3d0   :  { %v1065_v54 = vmax.f32 %v4903_v9, 0.0  ;;  %v1051_v33 = vpop.f32.mrb[28].mxu1 }
 0x3d1   :  { %v1053_v63 = vpop.f32.mrb[29].mxu1  ;;  %v3356_v8 = vpack.c.bf16 %v1064_v15, %v1062_v38  ;;  %v4919_v48 = vadd.f32 %v1051_v33, %v954_v17  ;;  %v5759_v33 = vld [vmem:[#allocation16_spill] sm:$0xff] }
 0x3d2   :  { %v3354_v44 = vpack.c.bf16 %v1065_v54, %v1063_v42  ;;  %v4917_v34 = vadd.f32 %v1053_v63, %v954_v17  ;;  %v5760_v63 = vld [vmem:[#allocation17_spill] sm:$0xff]  ;;  %v5762_v17 = vld [vmem:[#allocation19_spill] sm:$0xff] }
 0x3d3   :  { %v1066_v59 = vmax.f32 %v4919_v48, 0.0 }
 0x3d4   :  { %v1057_v7 = vpop.f32.mrb[30].mxu1  ;;  %3355 = vmatprep.subr.bf16.mxu0 %v3354_v44  ;;  %v1067_v56 = vmax.f32 %v4917_v34, 0.0  ;;  %v5761_v44 = vld [vmem:[#allocation18_spill] sm:$0xff] }
 0x3d5   :  { %v4921_v35 = vadd.f32 %v1057_v7, %v959_v52  ;;  %v1059_v57 = vpop.f32.mrb[31].mxu1  ;;  %3357 = vmatpush1.bf16.msra.mxu0 %v3356_v8  ;;  %v5763_v8 = vld [vmem:[#allocation20_spill] sm:$0xff]  ;;  %v5765_v7 = vld [vmem:[#allocation22_spill] sm:$0xff] }
 0x3d6   :  { %v4923_v53 = vadd.f32 %v1059_v57, %v959_v52  ;;  %v5764_v52 = vld [vmem:[#allocation21_spill] sm:$0xff]  ;;  %v5766_v57 = vld [vmem:[#allocation23_spill] sm:$0xff] }
 0x3d7   :  { %v1068_v58 = vmax.f32 %v4921_v35, 0.0 }
 0x3d8   :  { %v1069_v37 = vmax.f32 %v4923_v53, 0.0 }
 0x3d9   :  { %v3360_v16 = vpack.c.bf16 %v1068_v58, %v1066_v59 }
 0x3da   :  { %v3358_v5 = vpack.c.bf16 %v1069_v37, %v1067_v56 }
 0x3dc   :  { %3359 = vmatprep.subr.bf16.mxu0 %v3358_v5  ;;  %v5767_v5 = vld [vmem:[#allocation24_spill] sm:$0xff] }
 0x3dd   :  { %3361 = vmatpush1.bf16.msra.mxu0 %v3360_v16  ;;  %v5768_v16 = vld [vmem:[#allocation25_spill] sm:$0xff] }
 0x3de   :  { %3363 = vmatprep.subr.bf16.mxu0 %v5741_v36  ;;  %v5770_v36 = vld [vmem:[#allocation27_spill] sm:$0xff] }
 0x3e0   :  { %2993 = vmatmul.mubr.msk.f32.vlgmr.msra.gmra.mrb[16].mxu0 %vm1098_vm7, %v1070_v46  ;;  %v5769_v46 = vld [vmem:[#allocation26_spill] sm:$0xff] }
 0x3e1   :  { %3365 = vmatpush1.bf16.msra.mxu0 %v5742_v30  ;;  %1181 = vmatprep.mubr.f32.mxu0 %v5731_v2  ;;  %v5771_v30 = vld [vmem:[#allocation28_spill] sm:$0xff] }
 0x3e2   :  { %3367 = vmatprep.subr.bf16.mxu0 %v5743_v60  ;;  %v5773_v60 = vld [vmem:[#allocation32_spill] sm:$0xff] }
 0x3e4   :  { %2994 = vmatmul.mubr.msk.f32.gmra.mrb[18].mxu0 %vm1098_vm7, %v1071_v27  ;;  %v5772_v27 = vld [vmem:[#allocation30_spill] sm:$0xff] }
 0x3e5   :  { %3369 = vmatpush1.bf16.msra.mxu0 %v5744_v1  ;;  %1187 = vmatprep.mubr.f32.mxu0 %v5731_v2  ;;  %v5774_v1 = vld [vmem:[#allocation34_spill] sm:$0xff] }
 0x3e6   :  { %3435 = vmatprep.subr.bf16.mxu0 %v5745_v51  ;;  %v5776_v51 = vld [vmem:[#allocation38_spill] sm:$0xff] }
 0x3e8   :  { %2995 = vmatmul.mubr.msk.f32.gmra.mrb[20].mxu0 %vm1098_vm7, %v1072_v13  ;;  %v5775_v13 = vld [vmem:[#allocation36_spill] sm:$0xff] }
 0x3e9   :  { %1193 = vmatprep.mubr.f32.mxu0 %v5731_v2 }
 0x3ec   :  { %2996 = vmatmul.mubr.msk.f32.gmra.mrb[22].mxu0 %vm1098_vm7, %v1073_v25  ;;  %v1081_v25 = vpop.permute.xlu0 %1080 }
 0x3ed   :  { %1353 = vmatprep.mubr.f32.mxu0 %v5731_v2 }
 0x3f0   :  { %3005 = vmatmul.mubr.msk.f32.vlgmr.msra.gmra.mrb[24].mxu0 %vm1276_vm8, %v1248_v32 }
 0x3f1   :  { %1359 = vmatprep.mubr.f32.mxu0 %v5731_v2  ;;  %3437 = vmatpush1.bf16.msra.mxu0 %v5746_v28 }
 0x3f2   :  { %3439 = vmatprep.subr.bf16.mxu0 %v5747_v19 }
 0x3f4   :  { %3006 = vmatmul.mubr.msk.f32.gmra.mrb[26].mxu0 %vm1276_vm8, %v1249_v40 }
 0x3f5   :  { %1365 = vmatprep.mubr.f32.mxu0 %v5731_v2  ;;  %3441 = vmatpush1.bf16.msra.mxu0 %v5748_v6  ;;  %v1086_v6 = vpop.permute.xlu1 %1085 }
 0x3f6   :  { %3443 = vmatprep.subr.bf16.mxu0 %v5749_v62 }
 0x3f8   :  { %3007 = vmatmul.mubr.msk.f32.gmra.mrb[28].mxu0 %vm1276_vm8, %v1250_v55 }
 0x3f9   :  { %1371 = vmatprep.mubr.f32.mxu0 %v5731_v2  ;;  %3445 = vmatpush1.bf16.msra.mxu0 %v5750_v11 }
 0x3fa   :  { %3447 = vmatprep.subr.bf16.mxu0 %v5751_v14 }
 0x3fc   :  { %3008 = vmatmul.mubr.msk.f32.gmra.mrb[30].mxu0 %vm1276_vm8, %v1251_v0 }
 0x3fd   :  { %3449 = vmatpush1.bf16.msra.mxu0 %v5752_v29 }
 0x3fe   :  { %3451 = vmatprep.subr.bf16.mxu0 %v5753_v31 }
 0x401   :  { %3453 = vmatpush1.bf16.msra.mxu0 %v5754_v45  ;;  %v1091_v45 = vpop.permute.xlu0 %1090 }
 0x402   :  { %3455 = vmatprep.subr.bf16.mxu0 %v5755_v47 }
 0x405   :  { %3457 = vmatpush1.bf16.msra.mxu0 %v5756_v61 }
 0x406   :  { %3459 = vmatprep.subr.bf16.mxu0 %v5757_v21 }
 0x409   :  { %3461 = vmatpush1.bf16.msra.mxu0 %v5758_v50 }
 0x40a   :  { %3463 = vmatprep.subr.bf16.mxu0 %v5759_v33 }
 0x40d   :  { %3465 = vmatpush1.bf16.msra.mxu0 %v5760_v63 }
 0x40e   :  { %3467 = vmatprep.subr.bf16.mxu0 %v5761_v44  ;;  %v1096_v44 = vpop.permute.xlu1 %1095 }
 0x411   :  { %3469 = vmatpush1.bf16.msra.mxu0 %v5762_v17 }
 0x412   :  { %3471 = vmatprep.subr.bf16.mxu0 %v5763_v8 }
 0x415   :  { %3473 = vmatpush1.bf16.msra.mxu0 %v5764_v52 }
 0x416   :  { %3475 = vmatprep.subr.bf16.mxu0 %v5765_v7 }
 0x419   :  { %3477 = vmatpush1.bf16.msra.mxu0 %v5766_v57 }
 0x41a   :  { %3479 = vmatprep.subr.bf16.mxu0 %v5767_v5 }
 0x41d   :  { %3481 = vmatpush1.bf16.msra.mxu0 %v5768_v16 }
 0x41e   :  { %3483 = vmatprep.subr.bf16.mxu0 %v5769_v46 }
 0x421   :  { %3485 = vmatpush1.bf16.msra.mxu0 %v5770_v36  ;;  %v1259_v36 = vpop.permute.xlu0 %1258 }
 0x422   :  { %3487 = vmatprep.subr.bf16.mxu0 %v5771_v30 }
 0x425   :  { %3489 = vmatpush1.bf16.msra.mxu0 %v5772_v27 }
 0x426   :  { %3491 = vmatprep.subr.bf16.mxu0 %v5773_v60 }
 0x429   :  { %3493 = vmatpush1.bf16.msra.mxu0 %v5774_v1 }
 0x42a   :  { %3495 = vmatprep.subr.bf16.mxu0 %v5775_v13 }
 0x42d   :  { %3497 = vmatpush1.bf16.msra.mxu0 %v5776_v51 }
 0x4b3   :  { %v1177_v32 = vpop.f32.mrb[16].mxu0 }
 0x4b4   :  { %v1178_v40 = vadd.f32 %v1177_v32, %v1081_v25  ;;  %v1179_v28 = vpop.f32.mrb[17].mxu0  ;;  %v1264_v32 = vpop.permute.xlu1 %1263 }
 0x4b5   :  { %v1180_v19 = vadd.f32 %v1179_v28, %v1081_v25 }
 0x4b6   :  { %v2997_v55 = vmul.f32 -1.442695, %v1178_v40 }
 0x4b7   :  { %v2998_v62 = vmul.f32 -1.442695, %v1180_v19  ;;  %v1183_v0 = vpop.f32.mrb[18].mxu0 }
 0x4b8   :  { %3701 = vpow2.f32 %v2997_v55  ;;  %v1184_v11 = vadd.f32 %v1183_v0, %v1086_v6  ;;  %v1185_v14 = vpop.f32.mrb[19].mxu0 }
 0x4b9   :  { %3703 = vpow2.f32 %v2998_v62  ;;  %v1186_v29 = vadd.f32 %v1185_v14, %v1086_v6  ;;  %v1269_v6 = vpop.permute.xlu0 %1268 }
 0x4ba   :  { %v2999_v31 = vmul.f32 -1.442695, %v1184_v11 }
 0x4bb   :  { %v3000_v47 = vmul.f32 -1.442695, %v1186_v29  ;;  %v1189_v61 = vpop.f32.mrb[20].mxu0 }
 0x4bc   :  { %3705 = vpow2.f32 %v2999_v31  ;;  %v1190_v21 = vadd.f32 %v1189_v61, %v1091_v45  ;;  %v1191_v50 = vpop.f32.mrb[21].mxu0 }
 0x4bd   :  { %3707 = vpow2.f32 %v3000_v47  ;;  %v1192_v33 = vadd.f32 %v1191_v50, %v1091_v45  ;;  %v5012_v45 = vpop.permute.xlu1 %1273 }
 0x4be   :  { %v3001_v63 = vmul.f32 -1.442695, %v1190_v21  ;;  %v1425_v21 = vpop.permute.xlu0 %1424 }
 0x4bf   :  { %v3002_v17 = vmul.f32 -1.442695, %v1192_v33  ;;  %v1195_v8 = vpop.f32.mrb[22].mxu0 }
 0x4c0   :  { %3709 = vpow2.f32 %v3001_v63  ;;  %v1196_v52 = vadd.f32 %v1195_v8, %v1096_v44  ;;  %v1197_v7 = vpop.f32.mrb[23].mxu0 }
 0x4c1   :  { %3711 = vpow2.f32 %v3002_v17  ;;  %v1198_v57 = vadd.f32 %v1197_v7, %v1096_v44 }
 0x4c2   :  { %v3702_v5 = vpop.eup %3701  ;;  %v3003_v16 = vmul.f32 -1.442695, %v1196_v52 }
 0x4c3   :  { %v3704_v46 = vpop.eup %3703  ;;  %v1224_v30 = vadd.f32 1.0, %v3702_v5  ;;  %v3004_v27 = vmul.f32 -1.442695, %v1198_v57  ;;  %v1355_v60 = vpop.f32.mrb[24].mxu0 }
 0x4c4   :  { %v1225_v1 = vadd.f32 1.0, %v3704_v46  ;;  %3713 = vpow2.f32 %v3003_v16  ;;  %v1357_v13 = vpop.f32.mrb[25].mxu0  ;;  %v1430_v46 = vpop.permute.xlu1 %1429 }
 0x4c5   :  { %3715 = vrcp.f32 %v1224_v30 }
 0x4c6   :  { %v3706_v51 = vpop.eup %3705  ;;  %3717 = vrcp.f32 %v1225_v1 }
 0x4c7   :  { %v3708_v25 = vpop.eup %3707  ;;  %v1226_v40 = vadd.f32 1.0, %v3706_v51  ;;  %3719 = vpow2.f32 %v3004_v27  ;;  %v1361_v28 = vpop.f32.mrb[26].mxu0  ;;  %v1356_v51 = vadd.f32 %v1355_v60, %v1259_v36 }
 0x4c8   :  { %v1227_v19 = vadd.f32 1.0, %v3708_v25  ;;  %v1363_v55 = vpop.f32.mrb[27].mxu0 }
 0x4c9   :  { %3721 = vrcp.f32 %v1226_v40  ;;  %v1364_v3 = vadd.f32 %v1363_v55, %v1264_v32 }
 0x4ca   :  { %v3710_v62 = vpop.eup %3709  ;;  %3723 = vrcp.f32 %v1227_v19  ;;  %v1457_v19 = vpop.permute.xlu0 %1456 }
 0x4cb   :  { %v3712_v0 = vpop.eup %3711  ;;  %v1228_v11 = vadd.f32 1.0, %v3710_v62  ;;  %v1367_v14 = vpop.f32.mrb[28].mxu0  ;;  %v1358_v62 = vadd.f32 %v1357_v13, %v1259_v36 }
 0x4cc   :  { %v1229_v29 = vadd.f32 1.0, %v3712_v0  ;;  %v1369_v31 = vpop.f32.mrb[29].mxu0  ;;  %v1368_v13 = vadd.f32 %v1367_v14, %v1269_v6 }
 0x4cd   :  { %3725 = vrcp.f32 %v1228_v11 }
 0x4ce   :  { %v3714_v47 = vpop.eup %3713  ;;  %3727 = vrcp.f32 %v1229_v29  ;;  %v1362_v29 = vadd.f32 %v1361_v28, %v1264_v32 }
 0x4cf   :  { %v3716_v61 = vpop.eup %3715  ;;  %v1230_v50 = vadd.f32 1.0, %v3714_v47  ;;  %v1373_v33 = vpop.f32.mrb[30].mxu0 }
 0x4d0   :  { %v3718_v63 = vpop.eup %3717  ;;  %v1390_v44 = vsub.f32 1.0, %v3716_v61  ;;  %v5014_v17 = vpop.f32.mrb[31].mxu0  ;;  %v1382_v57 = vmul.f32 %v3716_v61, %v4833_v4 }
 0x4d1   :  { %v3720_v8 = vpop.eup %3719  ;;  %3729 = vrcp.f32 %v1230_v50  ;;  %v1391_v52 = vsub.f32 1.0, %v3718_v63  ;;  %v1383_v30 = vmul.f32 %v3718_v63, %v4836_v18 }
 0x4d2   :  { %v1231_v7 = vadd.f32 1.0, %v3720_v8  ;;  %v1398_v5 = vmul.f32 %v1390_v44, %v1062_v38  ;;  %v1462_v44 = vpop.permute.xlu1 %1461 }
 0x4d3   :  { %v3722_v16 = vpop.eup %3721  ;;  %v1399_v27 = vmul.f32 %v1391_v52, %v1063_v42 }
 0x4d4   :  { %v3724_v1 = vpop.eup %3723  ;;  %3731 = vrcp.f32 %v1231_v7  ;;  %v1406_v25 = vadd.f32 %v1398_v5, %v1382_v57  ;;  %v1392_v40 = vsub.f32 1.0, %v3722_v16  ;;  %v1384_v24 = vmul.f32 %v3722_v16, %v4839_v26 }
 0x4d5   :  { %v1407_v0 = vadd.f32 %v1399_v27, %v1383_v30  ;;  %v1393_v11 = vsub.f32 1.0, %v3724_v1  ;;  %v1385_v42 = vmul.f32 %v3724_v1, %v4842_v41  ;;  %v1370_v26 = vadd.f32 %v1369_v31, %v1269_v6 }
 0x4d6   :  { %v1414_v4 = vadd.f32 %v1406_v25, %v1356_v51  ;;  %v1400_v38 = vmul.f32 %v1392_v40, %v1064_v15  ;;  %v1374_v57 = vadd.f32 %v1373_v33, %v5012_v45  ;;  %v1440_v33 = vpop.permute.xlu1 %1439 }
 0x4d7   :  { %v3726_v18 = vpop.eup %3725  ;;  %v1415_v47 = vadd.f32 %v1407_v0, %v1358_v62  ;;  %v1401_v60 = vmul.f32 %v1393_v11, %v1065_v54  ;;  %v1435_v54 = vpop.permute.xlu0 %1434  ;;  %v1376_v11 = vadd.f32 %v5014_v17, %v5012_v45 }
 0x4d8   :  { %v3728_v61 = vpop.eup %3727  ;;  %v1442_v50 = vmul.f32 %v1425_v21, %v1414_v4  ;;  %v1408_v36 = vadd.f32 %v1400_v38, %v1384_v24  ;;  %v1394_v63 = vsub.f32 1.0, %v3726_v18  ;;  %v1386_v32 = vmul.f32 %v3726_v18, %v4856_v23 }
 0x4d9   :  { %v1443_v28 = vmul.f32 %v1425_v21, %v1415_v47  ;;  %v1409_v8 = vadd.f32 %v1401_v60, %v1385_v42  ;;  %v1395_v52 = vsub.f32 1.0, %v3728_v61  ;;  %v1387_v14 = vmul.f32 %v3728_v61, %v4859_v12  ;;  %v3025_v47 = vld [vmem:[%s5624_s7 + $0x40] sm:$0xff]  ;;  %v3027_v42 = vld [vmem:[%s5624_s7 + $0x50] sm:$0xff]  ;;  %v3028_v60 = vld [vmem:[%s5624_s7 + $0x58] sm:$0xff] }
 0x4da   :  { %v5028_v43 = vadd.f32 %v1457_v19, %v1442_v50  ;;  %v1416_v15 = vadd.f32 %v1408_v36, %v1362_v29  ;;  %v1402_v41 = vmul.f32 %v1394_v63, %v1066_v59  ;;  %v1472_v53 = vpop.permute.xlu1 %1471 }
 0x4db   :  { %v3730_v9 = vpop.eup %3729  ;;  %v5033_v55 = vadd.f32 %v1457_v19, %v1443_v28  ;;  %v1417_v7 = vadd.f32 %v1409_v8, %v1364_v3  ;;  %v1403_v21 = vmul.f32 %v1395_v52, %v1067_v56  ;;  %v3026_v3 = vld [vmem:[%s5624_s7 + $0x48] sm:$0xff] }
 0x4dc   :  { %v1444_v6 = vmul.f32 %v1430_v46, %v1416_v15  ;;  %v1410_v31 = vadd.f32 %v1402_v41, %v1386_v32  ;;  %v1396_v5 = vsub.f32 1.0, %v3730_v9  ;;  %1791 = vrot.lane.b32.xlu0 %v5028_v43, %s3767_s1  ;;  %v1388_v59 = vmul.f32 %v3730_v9, %v4862_v22 }
 0x4dd   :  { %v1445_v23 = vmul.f32 %v1430_v46, %v1417_v7  ;;  %v1411_v48 = vadd.f32 %v1403_v21, %v1387_v14  ;;  %1546 = vmatprep.mubr.f32.mxu1 %v5033_v55  ;;  %1635 = vmatprep.mubr.f32.mxu0 %v5033_v55 }
 0x4de   :  { %v3732_v12 = vpop.eup %3731  ;;  %v1476_v16 = vadd.f32 %v1462_v44, %v1444_v6  ;;  %v1418_v34 = vadd.f32 %v1410_v31, %v1368_v13  ;;  %v1404_v56 = vmul.f32 %v1396_v5, %v1068_v58  ;;  %1547 = vmatmul.mubr.f32.vlgmr.msra.gmra.mrb[32].mxu1 %v5028_v43  ;;  %1636 = vmatmul.mubr.f32.vlgmr.msra.gmra.mrb[32].mxu0 %v5028_v43  ;;  %v1467_v58 = vpop.permute.xlu0 %1466 }
 0x4df   :  { %v1477_v30 = vadd.f32 %v1462_v44, %v1445_v23  ;;  %v1419_v46 = vadd.f32 %v1411_v48, %v1370_v26  ;;  %v1389_v27 = vmul.f32 %v3732_v12, %v4865_v49  ;;  %v1397_v22 = vsub.f32 1.0, %v3732_v12 }
 0x4e0   :  { %v1446_v1 = vmul.f32 %v1435_v54, %v1418_v34  ;;  %v1412_v51 = vadd.f32 %v1404_v56, %v1388_v59  ;;  %1793 = vrot.lane.b32.xlu1 %v1476_v16, %s3767_s1  ;;  %1799 = vrot.lane.b32.xlu0 %v5033_v55, %s3767_s1  ;;  %v5053_v35 = vpack.c.bf16 %v1476_v16, %v5028_v43 }
 0x4e1   :  { %v1447_v25 = vmul.f32 %v1435_v54, %v1419_v46  ;;  %v1405_v40 = vmul.f32 %v1397_v22, %v1069_v37  ;;  %1552 = vmatprep.mubr.f32.mxu1 %v1477_v30  ;;  %1641 = vmatprep.mubr.f32.mxu0 %v1477_v30  ;;  %v5058_v49 = vpack.c.bf16 %v1477_v30, %v5033_v55 }
 0x4e2   :  { %v1478_v19 = vadd.f32 %v1467_v58, %v1446_v1  ;;  %v1420_v62 = vadd.f32 %v1412_v51, %v1374_v57  ;;  %1553 = vmatmul.mubr.f32.gmra.mrb[34].mxu1 %v1476_v16  ;;  %1642 = vmatmul.mubr.f32.gmra.mrb[34].mxu0 %v1476_v16 }
 0x4e3   :  { %v1479_v0 = vadd.f32 %v1467_v58, %v1447_v25  ;;  %v1413_v4 = vadd.f32 %v1405_v40, %v1389_v27  ;;  %3499 = vmatprep.subr.bf16.mxu1 %v5058_v49 }
 0x4e4   :  { %v1448_v29 = vmul.f32 %v1440_v33, %v1420_v62  ;;  %1801 = vrot.lane.b32.xlu1 %v1477_v30, %s3767_s1  ;;  %1795 = vrot.lane.b32.xlu0 %v1478_v19, %s3767_s1 }
 0x4e5   :  { %v1421_v37 = vadd.f32 %v1413_v4, %v1376_v11  ;;  %3501 = vmatpush1.bf16.msra.mxu1 %v5053_v35  ;;  %1558 = vmatprep.mubr.f32.mxu1 %v1479_v0 }
 0x4e6   :  { %v1480_v24 = vadd.f32 %v1472_v53, %v1448_v29  ;;  %1647 = vmatprep.mubr.f32.mxu0 %v1479_v0  ;;  %1559 = vmatmul.mubr.f32.gmra.mrb[36].mxu1 %v1478_v19 }
 0x4e7   :  { %v1449_v38 = vmul.f32 %v1440_v33, %v1421_v37  ;;  %1648 = vmatmul.mubr.f32.gmra.mrb[36].mxu0 %v1478_v19  ;;  %v3021_v37 = vld [vmem:[%s5625_s6 + $0x40] sm:$0xff] }
 0x4e8   :  { %1797 = vrot.lane.b32.xlu1 %v1480_v24, %s3767_s1  ;;  %1803 = vrot.lane.b32.xlu0 %v1479_v0, %s3767_s1  ;;  %v5068_v45 = vpack.c.bf16 %v1480_v24, %v1478_v19 }
 0x4e9   :  { %v1481_v17 = vadd.f32 %v1472_v53, %v1449_v38  ;;  %v3023_v38 = vld [vmem:[%s5625_s6 + $0x50] sm:$0xff] }
 0x4eb   :  { %1564 = vmatprep.mubr.f32.mxu1 %v1481_v17  ;;  %1653 = vmatprep.mubr.f32.mxu0 %v1481_v17  ;;  %v5070_v18 = vpack.c.bf16 %v1481_v17, %v1479_v0 }
 0x4ec   :  { %1565 = vmatmul.mubr.f32.gmra.mrb[38].mxu1 %v1480_v24  ;;  %1654 = vmatmul.mubr.f32.gmra.mrb[38].mxu0 %v1480_v24 }
 0x4ed   :  { %3503 = vmatprep.subr.bf16.mxu1 %v5070_v18  ;;  %1805 = vrot.lane.b32.xlu1 %v1481_v17, %s3767_s1 }
 0x4ee   :  { %1823 = vrot.lane.b32.xlu0 %v5028_v43, %s3768_s23  ;;  %3505 = vmatpush1.bf16.msra.mxu1 %v5068_v45 }
 0x4ef   :  { %1961 = vmatprep.mubr.f32.mxu0 %v5731_v2  ;;  %1766 = vmatprep.mubr.f32.mxu1 %v5731_v2 }
 0x4f1   :  { %1825 = vrot.lane.b32.xlu1 %v1476_v16, %s3768_s23 }
 0x4f2   :  { %1831 = vrot.lane.b32.xlu0 %v5033_v55, %s3768_s23 }
 0x4f5   :  { %1833 = vrot.lane.b32.xlu1 %v1477_v30, %s3768_s23 }
 0x4f6   :  { %1827 = vrot.lane.b32.xlu0 %v1478_v19, %s3768_s23 }
 0x4f9   :  { %1829 = vrot.lane.b32.xlu1 %v1480_v24, %s3768_s23  ;;  %v3022_v24 = vld [vmem:[%s5625_s6 + $0x48] sm:$0xff] }
 0x4fa   :  { %1835 = vrot.lane.b32.xlu0 %v1479_v0, %s3768_s23 }
 0x4fd   :  { %1837 = vrot.lane.b32.xlu1 %v1481_v17, %s3768_s23  ;;  %v3024_v17 = vld [vmem:[%s5625_s6 + $0x58] sm:$0xff] }
 0x4fe   :  { %1867 = vperm.xlu0 %3639, %v3025_v47  }
 0x501   :  { %1872 = vperm.xlu1 %3640, %v3026_v3  }
 0x502   :  { %1877 = vperm.xlu0 %3639, %v3027_v42  }
 0x505   :  { %1882 = vperm.xlu1 %3640, %v3028_v60  }
 0x54e   :  { %v1792_v61 = vpop.permute.xlu0 %1791 }
 0x552   :  { %v1794_v50 = vpop.permute.xlu1 %1793  ;;  %v1800_v36 = vpop.permute.xlu0 %1799 }
 0x553   :  { %v1811_v13 = vsel %vm680_vm3, %v1800_v36, %v1792_v61  ;;  %v1807_v28 = vsel %vm680_vm3, %v1792_v61, %v1800_v36 }
 0x554   :  { %v1815_v52 = vmul.f32 %v4527_v39, %v1811_v13 }
 0x556   :  { %v1802_v63 = vpop.permute.xlu1 %1801  ;;  %v1796_v44 = vpop.permute.xlu0 %1795 }
 0x557   :  { %v1808_v8 = vsel %vm680_vm3, %v1794_v50, %v1802_v63  ;;  %v1812_v26 = vsel %vm680_vm3, %v1802_v63, %v1794_v50 }
 0x558   :  { %v1817_v43 = vmul.f32 %v4527_v39, %v1812_v26  ;;  %v3522_v15 = vpack.c.bf16 %v1808_v8, %v1807_v28 }
 0x55a   :  { %v3524_v32 = vpack.c.bf16 %v1817_v43, %v1815_v52  ;;  %v1798_v41 = vpop.permute.xlu1 %1797  ;;  %3523 = vmatprep.subr.bf16.mxu0 %v3522_v15  ;;  %v1804_v9 = vpop.permute.xlu0 %1803 }
 0x55b   :  { %v1813_v54 = vsel %vm680_vm3, %v1804_v9, %v1796_v44  ;;  %v1809_v7 = vsel %vm680_vm3, %v1796_v44, %v1804_v9 }
 0x55c   :  { %3525 = vmatpush1.bf16.msra.mxu0 %v3524_v32  ;;  %v1819_v31 = vmul.f32 %v4527_v39, %v1813_v54 }
 0x55f   :  { %v1806_v55 = vpop.permute.xlu1 %1805 }
 0x560   :  { %v1810_v14 = vsel %vm680_vm3, %v1798_v41, %v1806_v55  ;;  %v1814_v21 = vsel %vm680_vm3, %v1806_v55, %v1798_v41  ;;  %v1824_v6 = vpop.permute.xlu0 %1823 }
 0x561   :  { %v1821_v57 = vmul.f32 %v4527_v39, %v1814_v21  ;;  %v3526_v5 = vpack.c.bf16 %v1810_v14, %v1809_v7 }
 0x563   :  { %v3528_v23 = vpack.c.bf16 %v1821_v57, %v1819_v31  ;;  %v1826_v48 = vpop.permute.xlu1 %1825  ;;  %3527 = vmatprep.subr.bf16.mxu0 %v3526_v5  ;;  %v3010_v31 = vld [vmem:[%s5626_s4 + $0x28] sm:$0xff]  ;;  %v3011_v57 = vld [vmem:[%s5626_s4 + $0x30] sm:$0xff]  ;;  %v3012_v5 = vld [vmem:[%s5626_s4 + $0x38] sm:$0xff] }
 0x564   :  { %v1832_v59 = vpop.permute.xlu0 %1831 }
 0x565   :  { %3529 = vmatpush1.bf16.msra.mxu0 %v3528_v23  ;;  %v1843_v12 = vsel %vm713_vm4, %v1832_v59, %v1824_v6  ;;  %v1839_v51 = vsel %vm713_vm4, %v1824_v6, %v1832_v59  ;;  %v3009_v6 = vld [vmem:[%s5626_s4 + $0x20] sm:$0xff] }
 0x566   :  { %3531 = vmatprep.subr.bf16.mxu0 %v5058_v49  ;;  %v1848_v33 = vmul.f32 %v4552_v20, %v1843_v12 }
 0x567   :  { %v1834_v16 = vpop.permute.xlu1 %1833 }
 0x568   :  { %v1844_v34 = vsel %vm713_vm4, %v1834_v16, %v1826_v48  ;;  %v1828_v56 = vpop.permute.xlu0 %1827  ;;  %v1840_v22 = vsel %vm713_vm4, %v1826_v48, %v1834_v16 }
 0x569   :  { %v1850_v30 = vmul.f32 %v4552_v20, %v1844_v34  ;;  %3533 = vmatpush1.bf16.msra.mxu0 %v5053_v35  ;;  %v3540_v25 = vpack.c.bf16 %v1840_v22, %v1839_v51 }
 0x56a   :  { %3535 = vmatprep.subr.bf16.mxu0 %v5070_v18 }
 0x56b   :  { %v1830_v46 = vpop.permute.xlu1 %1829  ;;  %v3538_v27 = vpack.c.bf16 %v1850_v30, %v1848_v33 }
 0x56c   :  { %v1836_v1 = vpop.permute.xlu0 %1835 }
 0x56d   :  { %3537 = vmatpush1.bf16.msra.mxu0 %v5068_v45  ;;  %v1845_v58 = vsel %vm713_vm4, %v1836_v1, %v1828_v56  ;;  %v1841_v4 = vsel %vm713_vm4, %v1828_v56, %v1836_v1 }
 0x56e   :  { %3539 = vmatprep.subr.bf16.mxu0 %v3538_v27  ;;  %v1852_v62 = vmul.f32 %v4552_v20, %v1845_v58 }
 0x56f   :  { %v1838_v40 = vpop.permute.xlu1 %1837 }
 0x570   :  { %v1846_v19 = vsel %vm713_vm4, %v1838_v40, %v1830_v46  ;;  %v1842_v0 = vsel %vm713_vm4, %v1830_v46, %v1838_v40 }
 0x571   :  { %v1854_v11 = vmul.f32 %v4552_v20, %v1846_v19  ;;  %3541 = vmatpush1.bf16.msra.mxu0 %v3540_v25  ;;  %v3544_v53 = vpack.c.bf16 %v1842_v0, %v1841_v4 }
 0x573   :  { %v3542_v29 = vpack.c.bf16 %v1854_v11, %v1852_v62 }
 0x575   :  { %3543 = vmatprep.subr.bf16.mxu0 %v3542_v29 }
 0x576   :  { %3545 = vmatpush1.bf16.msra.mxu0 %v3544_v53 }
 0x579   :  { %3029 = vmatmul.mubr.msk.f32.vlgmr.msra.gmra.mrb[40].mxu0 %vm562_vm6, %v3021_v37 }
 0x57a   :  { %1967 = vmatprep.mubr.f32.mxu0 %v5731_v2 }
 0x57d   :  { %3030 = vmatmul.mubr.msk.f32.gmra.mrb[42].mxu0 %vm562_vm6, %v3022_v24  ;;  %v1868_v23 = vpop.permute.xlu0 %1867 }
 0x57e   :  { %1973 = vmatprep.mubr.f32.mxu0 %v5731_v2 }
 0x580   :  { %v1873_v56 = vpop.permute.xlu1 %1872 }
 0x581   :  { %3031 = vmatmul.mubr.msk.f32.gmra.mrb[44].mxu0 %vm562_vm6, %v3023_v38  ;;  %v1878_v51 = vpop.permute.xlu0 %1877 }
 0x582   :  { %1979 = vmatprep.mubr.f32.mxu0 %v5731_v2 }
 0x584   :  { %v1883_v29 = vpop.permute.xlu1 %1882 }
 0x585   :  { %3032 = vmatmul.mubr.msk.f32.gmra.mrb[46].mxu0 %vm562_vm6, %v3024_v17 }
 0x586   :  { %2303 = vmatprep.mubr.f32.mxu0 %v5731_v2 }
 0x5b1   :  { %v1548_v47 = vpop.f32.mrb[32].mxu1  ;;  %v1637_v3 = vpop.f32.mrb[32].mxu0 }
 0x5b2   :  { %v1550_v42 = vpop.f32.mrb[33].mxu1  ;;  %v1639_v60 = vpop.f32.mrb[33].mxu0 }
 0x5b5   :  { %v1554_v61 = vpop.f32.mrb[34].mxu1  ;;  %v1643_v50 = vpop.f32.mrb[34].mxu0 }
 0x5b6   :  { %v3508_v36 = vpack.c.bf16 %v1554_v61, %v1548_v47  ;;  %v3516_v13 = vpack.c.bf16 %v1643_v50, %v1637_v3  ;;  %v1556_v63 = vpop.f32.mrb[35].mxu1  ;;  %v1645_v44 = vpop.f32.mrb[35].mxu0  ;;  %v3013_v61 = vld [vmem:[%s5627_s5 + $0x20] sm:$0xff]  ;;  %v3014_v50 = vld [vmem:[%s5627_s5 + $0x28] sm:$0xff] }
 0x5b7   :  { %v3506_v28 = vpack.c.bf16 %v1556_v63, %v1550_v42  ;;  %v3514_v8 = vpack.c.bf16 %v1645_v44, %v1639_v60  ;;  %v3037_v63 = vld [vmem:[%s5624_s7 + $0x60] sm:$0xff]  ;;  %v3038_v44 = vld [vmem:[%s5624_s7 + $0x68] sm:$0xff] }
 0x5b9   :  { %v1560_v26 = vpop.f32.mrb[36].mxu1  ;;  %3507 = vmatprep.subr.bf16.mxu1 %v3506_v28  ;;  %v3039_v28 = vld [vmem:[%s5624_s7 + $0x70] sm:$0xff] }
 0x5ba   :  { %v1649_v52 = vpop.f32.mrb[36].mxu0  ;;  %v1562_v43 = vpop.f32.mrb[37].mxu1  ;;  %3509 = vmatpush1.bf16.msra.mxu1 %v3508_v36  ;;  %v3015_v36 = vld [vmem:[%s5627_s5 + $0x30] sm:$0xff] }
 0x5bb   :  { %v1651_v15 = vpop.f32.mrb[37].mxu0 }
 0x5bf   :  { %v1566_v32 = vpop.f32.mrb[38].mxu1  ;;  %v1655_v41 = vpop.f32.mrb[38].mxu0 }
 0x5c0   :  { %v3512_v9 = vpack.c.bf16 %v1566_v32, %v1560_v26  ;;  %v3520_v54 = vpack.c.bf16 %v1655_v41, %v1649_v52  ;;  %v1568_v55 = vpop.f32.mrb[39].mxu1  ;;  %v1657_v7 = vpop.f32.mrb[39].mxu0  ;;  %v3049_v26 = vld [vmem:[%s5628_s9 + $0x20] sm:$0xff]  ;;  %v3050_v52 = vld [vmem:[%s5628_s9 + $0x28] sm:$0xff] }
 0x5c1   :  { %v3510_v14 = vpack.c.bf16 %v1568_v55, %v1562_v43  ;;  %v3518_v21 = vpack.c.bf16 %v1657_v7, %v1651_v15  ;;  %v3051_v43 = vld [vmem:[%s5628_s9 + $0x30] sm:$0xff]  ;;  %v3052_v15 = vld [vmem:[%s5628_s9 + $0x38] sm:$0xff]  ;;  %v3069_v32 = vld [vmem:[%s5629_s11 + $0x20] sm:$0xff] }
 0x5c2   :  { %v3070_v41 = vld [vmem:[%s5629_s11 + $0x28] sm:$0xff]  ;;  %v3077_v55 = vld [vmem:[%s5630_s12 + $0x20] sm:$0xff] }
 0x5c3   :  { %3511 = vmatprep.subr.bf16.mxu1 %v3510_v14  ;;  %v3078_v7 = vld [vmem:[%s5630_s12 + $0x28] sm:$0xff]  ;;  %v3081_v14 = vld [vmem:[%s5631_s13 + $0x20] sm:$0xff] }
 0x5c4   :  { %3513 = vmatpush1.bf16.msra.mxu1 %v3512_v9  ;;  %v3071_v9 = vld [vmem:[%s5629_s11 + $0x30] sm:$0xff] }
 0x5c5   :  { %3515 = vmatprep.subr.bf16.mxu1 %v3514_v8  ;;  %v3040_v8 = vld [vmem:[%s5624_s7 + $0x78] sm:$0xff] }
 0x5c8   :  { %3517 = vmatpush1.bf16.msra.mxu1 %v3516_v13  ;;  %v3016_v13 = vld [vmem:[%s5627_s5 + $0x38] sm:$0xff] }
 0x5c9   :  { %3519 = vmatprep.subr.bf16.mxu1 %v3518_v21  ;;  %v3082_v21 = vld [vmem:[%s5631_s13 + $0x28] sm:$0xff] }
 0x5cc   :  { %3521 = vmatpush1.bf16.msra.mxu1 %v3520_v54  ;;  %v3072_v54 = vld [vmem:[%s5629_s11 + $0x38] sm:$0xff] }
 0x5cf   :  { %3017 = vmatmul.mubr.msk.f32.vlgmr.msra.gmra.mrb[40].mxu1 %vm562_vm6, %v3009_v6  ;;  %v3079_v6 = vld [vmem:[%s5630_s12 + $0x30] sm:$0xff] }
 0x5d0   :  { %1772 = vmatprep.mubr.f32.mxu1 %v5731_v2 }
 0x5d3   :  { %3018 = vmatmul.mubr.msk.f32.gmra.mrb[42].mxu1 %vm562_vm6, %v3010_v31  ;;  %v3080_v31 = vld [vmem:[%s5630_s12 + $0x38] sm:$0xff] }
 0x5d4   :  { %1778 = vmatprep.mubr.f32.mxu1 %v5731_v2 }
 0x5d7   :  { %3019 = vmatmul.mubr.msk.f32.gmra.mrb[44].mxu1 %vm562_vm6, %v3011_v57  ;;  %v3083_v57 = vld [vmem:[%s5631_s13 + $0x30] sm:$0xff] }
 0x5d8   :  { %1784 = vmatprep.mubr.f32.mxu1 %v5731_v2 }
 0x5db   :  { %3020 = vmatmul.mubr.msk.f32.gmra.mrb[46].mxu1 %vm562_vm6, %v3012_v5  ;;  %v3084_v5 = vld [vmem:[%s5631_s13 + $0x38] sm:$0xff] }
 0x5dc   :  { %2164 = vmatprep.mubr.f32.mxu1 %v5731_v2 }
 0x64c   :  { %v1963_v48 = vpop.f32.mrb[40].mxu0 }
 0x64d   :  { %v1964_v59 = vadd.f32 %v1963_v48, %v1868_v23  ;;  %v1965_v12 = vpop.f32.mrb[41].mxu0 }
 0x64e   :  { %v1966_v34 = vadd.f32 %v1965_v12, %v1868_v23 }
 0x64f   :  { %v5183_v16 = vmax.f32 %v1964_v59, 0.0 }
 0x650   :  { %v1969_v33 = vpop.f32.mrb[42].mxu0  ;;  %v5187_v22 = vmax.f32 %v1966_v34, 0.0 }
 0x651   :  { %v1970_v30 = vadd.f32 %v1969_v33, %v1873_v56  ;;  %v1971_v46 = vpop.f32.mrb[43].mxu0  ;;  %1994 = vrot.lane.b32.xlu0 %v5183_v16, %s3767_s1 }
 0x652   :  { %v1972_v27 = vadd.f32 %v1971_v46, %v1873_v56 }
 0x653   :  { %v5189_v1 = vmax.f32 %v1970_v30, 0.0 }
 0x654   :  { %v5191_v58 = vmax.f32 %v1972_v27, 0.0  ;;  %v1975_v25 = vpop.f32.mrb[44].mxu0 }
 0x655   :  { %v3556_v40 = vpack.c.bf16 %v5189_v1, %v5183_v16  ;;  %v1976_v19 = vadd.f32 %v1975_v25, %v1878_v51  ;;  %v1977_v62 = vpop.f32.mrb[45].mxu0  ;;  %1996 = vrot.lane.b32.xlu1 %v5189_v1, %s3767_s1  ;;  %2002 = vrot.lane.b32.xlu0 %v5187_v22, %s3767_s1 }
 0x656   :  { %v3554_v0 = vpack.c.bf16 %v5191_v58, %v5187_v22  ;;  %v1978_v4 = vadd.f32 %v1977_v62, %v1878_v51 }
 0x657   :  { %v5201_v11 = vmax.f32 %v1976_v19, 0.0 }
 0x658   :  { %v1981_v53 = vpop.f32.mrb[46].mxu0  ;;  %v5207_v17 = vmax.f32 %v1978_v4, 0.0 }
 0x659   :  { %v1982_v37 = vadd.f32 %v1981_v53, %v1883_v29  ;;  %v1983_v24 = vpop.f32.mrb[47].mxu0  ;;  %2004 = vrot.lane.b32.xlu1 %v5191_v58, %s3767_s1  ;;  %1998 = vrot.lane.b32.xlu0 %v5201_v11, %s3767_s1 }
 0x65a   :  { %v1984_v38 = vadd.f32 %v1983_v24, %v1883_v29 }
 0x65b   :  { %v5209_v47 = vmax.f32 %v1982_v37, 0.0 }
 0x65c   :  { %v5211_v3 = vmax.f32 %v1984_v38, 0.0 }
 0x65d   :  { %v3560_v42 = vpack.c.bf16 %v5209_v47, %v5201_v11  ;;  %2000 = vrot.lane.b32.xlu1 %v5209_v47, %s3767_s1  ;;  %2006 = vrot.lane.b32.xlu0 %v5207_v17, %s3767_s1 }
 0x65e   :  { %v3558_v60 = vpack.c.bf16 %v5211_v3, %v5207_v17 }
 0x661   :  { %2008 = vrot.lane.b32.xlu1 %v5211_v3, %s3767_s1  ;;  %2026 = vrot.lane.b32.xlu0 %v5183_v16, %s3768_s23 }
 0x665   :  { %2028 = vrot.lane.b32.xlu1 %v5189_v1, %s3768_s23  ;;  %2034 = vrot.lane.b32.xlu0 %v5187_v22, %s3768_s23 }
 0x669   :  { %2036 = vrot.lane.b32.xlu1 %v5191_v58, %s3768_s23  ;;  %2030 = vrot.lane.b32.xlu0 %v5201_v11, %s3768_s23 }
 0x66d   :  { %2032 = vrot.lane.b32.xlu1 %v5209_v47, %s3768_s23  ;;  %2038 = vrot.lane.b32.xlu0 %v5207_v17, %s3768_s23 }
 0x671   :  { %2040 = vrot.lane.b32.xlu1 %v5211_v3, %s3768_s23  ;;  %1672 = vperm.xlu0 %3639, %v3013_v61  }
 0x675   :  { %1677 = vperm.xlu1 %3640, %v3014_v50   ;;  %1682 = vperm.xlu0 %3639, %v3015_v36  }
 0x679   :  { %1687 = vperm.xlu1 %3640, %v3016_v13   ;;  %2070 = vperm.xlu0 %3639, %v3037_v63  }
 0x67d   :  { %2075 = vperm.xlu1 %3640, %v3038_v44   ;;  %2080 = vperm.xlu0 %3639, %v3039_v28  }
 0x681   :  { %2085 = vperm.xlu1 %3640, %v3040_v8   ;;  %2209 = vperm.xlu0 %3639, %v3049_v26  }
 0x685   :  { %2214 = vperm.xlu1 %3640, %v3050_v52   ;;  %2219 = vperm.xlu0 %3639, %v3051_v43  }
 0x689   :  { %2224 = vperm.xlu1 %3640, %v3052_v15   ;;  %2388 = vperm.xlu0 %3639, %v3069_v32  }
 0x68d   :  { %2393 = vperm.xlu1 %3640, %v3070_v41   ;;  %2398 = vperm.xlu0 %3639, %v3071_v9  }
 0x691   :  { %2403 = vperm.xlu1 %3640, %v3072_v54   ;;  %2554 = vperm.xlu0 %3639, %v3077_v55  }
 0x695   :  { %2559 = vperm.xlu1 %3640, %v3078_v7   ;;  %2587 = vperm.xlu0 %3639, %v3081_v14  }
 0x699   :  { %2592 = vperm.xlu1 %3640, %v3082_v21   ;;  %2564 = vperm.xlu0 %3639, %v3079_v6  }
 0x69d   :  { %2569 = vperm.xlu1 %3640, %v3080_v31   ;;  %2597 = vperm.xlu0 %3639, %v3083_v57  }
 0x6a1   :  { %2602 = vperm.xlu1 %3640, %v3084_v5   ;;  %v3033_v5 = vld [vmem:[%s5625_s6 + $0x60] sm:$0xff] }
 0x6a2   :  { %v5311_v23 = vpop.f32.mrb[40].mxu1 }
 0x6a3   :  { %v5313_v48 = vpop.f32.mrb[41].mxu1 }
 0x6a6   :  { %v5315_v59 = vpop.f32.mrb[42].mxu1 }
 0x6a7   :  { %v5317_v12 = vpop.f32.mrb[43].mxu1 }
 0x6aa   :  { %v5319_v34 = vpop.f32.mrb[44].mxu1 }
 0x6ab   :  { %v5321_v56 = vpop.f32.mrb[45].mxu1 }
 0x6ae   :  { %v5323_v33 = vpop.f32.mrb[46].mxu1 }
 0x6af   :  { %v5325_v30 = vpop.f32.mrb[47].mxu1 }
 0x6c3   :  { %v1995_v46 = vpop.permute.xlu0 %1994 }
 0x6c7   :  { %v1997_v27 = vpop.permute.xlu1 %1996  ;;  %v2003_v51 = vpop.permute.xlu0 %2002 }
 0x6c8   :  { %v2014_v25 = vsel %vm680_vm3, %v2003_v51, %v1995_v46  ;;  %v2010_v4 = vsel %vm680_vm3, %v1995_v46, %v2003_v51 }
 0x6c9   :  { %v2018_v37 = vmul.f32 %v4527_v39, %v2014_v25  ;;  %v3036_v25 = vld [vmem:[%s5625_s6 + $0x78] sm:$0xff] }
 0x6cb   :  { %v2005_v19 = vpop.permute.xlu1 %2004  ;;  %v1999_v62 = vpop.permute.xlu0 %1998 }
 0x6cc   :  { %v2011_v29 = vsel %vm680_vm3, %v1997_v27, %v2005_v19  ;;  %v2015_v53 = vsel %vm680_vm3, %v2005_v19, %v1997_v27 }
 0x6cd   :  { %v2020_v24 = vmul.f32 %v4527_v39, %v2015_v53  ;;  %v3546_v38 = vpack.c.bf16 %v2011_v29, %v2010_v4  ;;  %v3067_v29 = vld [vmem:[%s5633_s10 + $0x30] sm:$0xff]  ;;  %v3068_v53 = vld [vmem:[%s5633_s10 + $0x38] sm:$0xff] }
 0x6cf   :  { %v3548_v61 = vpack.c.bf16 %v2020_v24, %v2018_v37  ;;  %v2001_v50 = vpop.permute.xlu1 %2000  ;;  %v2007_v36 = vpop.permute.xlu0 %2006  ;;  %3547 = vmatprep.subr.bf16.mxu1 %v3546_v38 }
 0x6d0   :  { %v2016_v13 = vsel %vm680_vm3, %v2007_v36, %v1999_v62  ;;  %v2012_v28 = vsel %vm680_vm3, %v1999_v62, %v2007_v36 }
 0x6d1   :  { %3549 = vmatpush1.bf16.msra.mxu1 %v3548_v61  ;;  %v2022_v52 = vmul.f32 %v4527_v39, %v2016_v13 }
 0x6d3   :  { %v2009_v63 = vpop.permute.xlu1 %2008  ;;  %v2027_v44 = vpop.permute.xlu0 %2026 }
 0x6d4   :  { %v2013_v8 = vsel %vm680_vm3, %v2001_v50, %v2009_v63  ;;  %v2017_v26 = vsel %vm680_vm3, %v2009_v63, %v2001_v50 }
 0x6d5   :  { %v2024_v43 = vmul.f32 %v4527_v39, %v2017_v26  ;;  %v3550_v15 = vpack.c.bf16 %v2013_v8, %v2012_v28 }
 0x6d7   :  { %v3552_v32 = vpack.c.bf16 %v2024_v43, %v2022_v52  ;;  %v2029_v41 = vpop.permute.xlu1 %2028  ;;  %v2035_v9 = vpop.permute.xlu0 %2034  ;;  %3551 = vmatprep.subr.bf16.mxu1 %v3550_v15 }
 0x6d8   :  { %v2046_v54 = vsel %vm713_vm4, %v2035_v9, %v2027_v44  ;;  %v2042_v31 = vsel %vm713_vm4, %v2027_v44, %v2035_v9 }
 0x6d9   :  { %3553 = vmatpush1.bf16.msra.mxu1 %v3552_v32  ;;  %v2051_v39 = vmul.f32 %v4552_v20, %v2046_v54 }
 0x6da   :  { %3555 = vmatprep.subr.bf16.mxu1 %v3554_v0 }
 0x6db   :  { %v2037_v55 = vpop.permute.xlu1 %2036  ;;  %v2031_v7 = vpop.permute.xlu0 %2030 }
 0x6dc   :  { %v2047_v14 = vsel %vm713_vm4, %v2037_v55, %v2029_v41  ;;  %v2043_v0 = vsel %vm713_vm4, %v2029_v41, %v2037_v55 }
 0x6dd   :  { %v2053_v21 = vmul.f32 %v4552_v20, %v2047_v14  ;;  %3557 = vmatpush1.bf16.msra.mxu1 %v3556_v40  ;;  %v3564_v1 = vpack.c.bf16 %v2043_v0, %v2042_v31 }
 0x6de   :  { %3559 = vmatprep.subr.bf16.mxu1 %v3558_v60 }
 0x6df   :  { %v2033_v6 = vpop.permute.xlu1 %2032  ;;  %v2039_v22 = vpop.permute.xlu0 %2038  ;;  %v3562_v58 = vpack.c.bf16 %v2053_v21, %v2051_v39 }
 0x6e0   :  { %v2048_v16 = vsel %vm713_vm4, %v2039_v22, %v2031_v7  ;;  %v2044_v47 = vsel %vm713_vm4, %v2031_v7, %v2039_v22 }
 0x6e1   :  { %3561 = vmatpush1.bf16.msra.mxu1 %v3560_v42  ;;  %v2055_v3 = vmul.f32 %v4552_v20, %v2048_v16 }
 0x6e2   :  { %3563 = vmatprep.subr.bf16.mxu1 %v3562_v58 }
 0x6e3   :  { %v2041_v40 = vpop.permute.xlu1 %2040 }
 0x6e4   :  { %v2049_v17 = vsel %vm713_vm4, %v2041_v40, %v2033_v6  ;;  %v2045_v60 = vsel %vm713_vm4, %v2033_v6, %v2041_v40 }
 0x6e5   :  { %v2057_v11 = vmul.f32 %v4552_v20, %v2049_v17  ;;  %3565 = vmatpush1.bf16.msra.mxu1 %v3564_v1  ;;  %v3568_v57 = vpack.c.bf16 %v2045_v60, %v2044_v47  ;;  %v3045_v47 = vld [vmem:[%s5632_s8 + $0x20] sm:$0xff] }
 0x6e7   :  { %v3566_v42 = vpack.c.bf16 %v2057_v11, %v2055_v3 }
 0x6e9   :  { %3567 = vmatprep.subr.bf16.mxu1 %v3566_v42 }
 0x6ea   :  { %3569 = vmatpush1.bf16.msra.mxu1 %v3568_v57 }
 0x6eb   :  { %3587 = vmatprep.subr.bf16.mxu1 %v5058_v49  ;;  %v3035_v49 = vld [vmem:[%s5625_s6 + $0x70] sm:$0xff] }
 0x6ed   :  { %3041 = vmatmul.mubr.msk.f32.vlgmr.msra.gmra.mrb[48].mxu1 %vm562_vm6, %v3033_v5  ;;  %v3046_v5 = vld [vmem:[%s5632_s8 + $0x28] sm:$0xff] }
 0x6ee   :  { %3589 = vmatpush1.bf16.msra.mxu1 %v5053_v35  ;;  %2170 = vmatprep.mubr.f32.mxu1 %v5731_v2 }
 0x6ef   :  { %3591 = vmatprep.subr.bf16.mxu1 %v5070_v18 }
 0x6f0   :  { %v1673_v20 = vpop.permute.xlu0 %1672 }
 0x6f1   :  { %3042 = vmatmul.mubr.msk.f32.gmra.mrb[50].mxu1 %vm562_vm6, %v3034_v10  ;;  %v5397_v46 = vadd.f32 %v5311_v23, %v1673_v20  ;;  %v5400_v27 = vadd.f32 %v5313_v48, %v1673_v20 }
 0x6f2   :  { %3593 = vmatpush1.bf16.msra.mxu1 %v5068_v45  ;;  %2176 = vmatprep.mubr.f32.mxu1 %v5731_v2 }
 0x6f4   :  { %v1678_v35 = vpop.permute.xlu1 %1677  ;;  %v1683_v45 = vpop.permute.xlu0 %1682 }
 0x6f5   :  { %v5403_v18 = vadd.f32 %v5315_v59, %v1678_v35  ;;  %v5406_v51 = vadd.f32 %v5317_v12, %v1678_v35  ;;  %3043 = vmatmul.mubr.msk.f32.gmra.mrb[52].mxu1 %vm562_vm6, %v3035_v49  ;;  %v5418_v59 = vadd.f32 %v5319_v34, %v1683_v45  ;;  %v5421_v19 = vadd.f32 %v5321_v56, %v1683_v45  ;;  %v3065_v34 = vld [vmem:[%s5633_s10 + $0x20] sm:$0xff]  ;;  %v3047_v49 = vld [vmem:[%s5632_s8 + $0x30] sm:$0xff]  ;;  %v3048_v35 = vld [vmem:[%s5632_s8 + $0x38] sm:$0xff]  ;;  %s3769_s8 = smov 64  }
 0x6f6   :  { %2182 = vmatprep.mubr.f32.mxu1 %v5731_v2 }
 0x6f7   :  { %v3570_v23 = vpack.c.bf16 %v5406_v51, %v5400_v27  ;;  %v3572_v48 = vpack.c.bf16 %v5403_v18, %v5397_v46 }
 0x6f8   :  { %v1688_v12 = vpop.permute.xlu1 %1687  ;;  %v2071_v38 = vpop.permute.xlu0 %2070 }
 0x6f9   :  { %v5424_v62 = vadd.f32 %v5323_v33, %v1688_v12  ;;  %v5427_v4 = vadd.f32 %v5325_v30, %v1688_v12  ;;  %3044 = vmatmul.mubr.msk.f32.gmra.mrb[54].mxu1 %vm562_vm6, %v3036_v25  ;;  %3571 = vmatprep.subr.bf16.mxu0 %v3570_v23  ;;  %v3066_v30 = vld [vmem:[%s5633_s10 + $0x28] sm:$0xff] }
 0x6fa   :  { %3573 = vmatpush1.bf16.msra.mxu0 %v3572_v48  ;;  %2482 = vmatprep.mubr.f32.mxu1 %v5731_v2 }
 0x6fb   :  { %v3576_v56 = vpack.c.bf16 %v5424_v62, %v5418_v59  ;;  %v3574_v33 = vpack.c.bf16 %v5427_v4, %v5421_v19 }
 0x6fc   :  { %v2076_v61 = vpop.permute.xlu1 %2075  ;;  %v2081_v9 = vpop.permute.xlu0 %2080 }
 0x6fd   :  { %3575 = vmatprep.subr.bf16.mxu0 %v3574_v33  ;;  %3073 = vmatmul.mubr.msk.f32.vlgmr.msra.gmra.mrb[56].mxu1 %vm1276_vm8, %v3065_v34 }
 0x6fe   :  { %3577 = vmatpush1.bf16.msra.mxu0 %v3576_v56  ;;  %2488 = vmatprep.mubr.f32.mxu1 %v5731_v2 }
 0x700   :  { %v2086_v55 = vpop.permute.xlu1 %2085  ;;  %v2210_v45 = vpop.permute.xlu0 %2209 }
 0x701   :  { %3074 = vmatmul.mubr.msk.f32.gmra.mrb[58].mxu1 %vm1276_vm8, %v3066_v30 }
 0x702   :  { %2494 = vmatprep.mubr.f32.mxu1 %v5731_v2 }
 0x704   :  { %v2215_v56 = vpop.permute.xlu1 %2214 }
 0x705   :  { %3075 = vmatmul.mubr.msk.f32.gmra.mrb[60].mxu1 %vm1276_vm8, %v3067_v29 }
 0x706   :  { %2500 = vmatprep.mubr.f32.mxu1 %v5731_v2 }
 0x709   :  { %3076 = vmatmul.mubr.msk.f32.gmra.mrb[62].mxu1 %vm1276_vm8, %v3068_v53 }
 0x70a   :  { %3143 = vmatprep.mubr.msk.f32.mxu1 %vm3771_vm9, %v5731_v2 }
 0x7c0   :  { %v2166_v37 = vpop.f32.mrb[48].mxu1 }
 0x7c1   :  { %v2168_v24 = vpop.f32.mrb[49].mxu1  ;;  %v5456_v13 = vadd.f32 %v2166_v37, %v2071_v38 }
 0x7c2   :  { %v5454_v50 = vadd.f32 %v2168_v24, %v2071_v38  ;;  %v2220_v38 = vpop.permute.xlu0 %2219 }
 0x7c3   :  { %v2189_v15 = vmax.f32 %v5456_v13, 0.0 }
 0x7c4   :  { %v2172_v36 = vpop.f32.mrb[50].mxu1  ;;  %v2190_v26 = vmax.f32 %v5454_v50, 0.0 }
 0x7c5   :  { %v5458_v63 = vadd.f32 %v2172_v36, %v2076_v61  ;;  %v2174_v44 = vpop.f32.mrb[51].mxu1 }
 0x7c6   :  { %v5460_v28 = vadd.f32 %v2174_v44, %v2076_v61 }
 0x7c7   :  { %v2191_v8 = vmax.f32 %v5458_v63, 0.0 }
 0x7c8   :  { %v2192_v52 = vmax.f32 %v5460_v28, 0.0  ;;  %v2178_v43 = vpop.f32.mrb[52].mxu1 }
 0x7c9   :  { %v2180_v32 = vpop.f32.mrb[53].mxu1  ;;  %v3580_v54 = vpack.c.bf16 %v2191_v8, %v2189_v15  ;;  %v5476_v39 = vadd.f32 %v2178_v43, %v2081_v9 }
 0x7ca   :  { %v3578_v41 = vpack.c.bf16 %v2192_v52, %v2190_v26  ;;  %v5474_v7 = vadd.f32 %v2180_v32, %v2081_v9  ;;  %v2225_v9 = vpop.permute.xlu1 %2224 }
 0x7cb   :  { %v2193_v1 = vmax.f32 %v5476_v39, 0.0 }
 0x7cc   :  { %v2184_v14 = vpop.f32.mrb[54].mxu1  ;;  %3579 = vmatprep.subr.bf16.mxu0 %v3578_v41  ;;  %v2194_v0 = vmax.f32 %v5474_v7, 0.0 }
 0x7cd   :  { %v5478_v21 = vadd.f32 %v2184_v14, %v2086_v55  ;;  %v2186_v6 = vpop.f32.mrb[55].mxu1  ;;  %3581 = vmatpush1.bf16.msra.mxu0 %v3580_v54 }
 0x7ce   :  { %v5480_v22 = vadd.f32 %v2186_v6, %v2086_v55 }
 0x7cf   :  { %v2195_v58 = vmax.f32 %v5478_v21, 0.0 }
 0x7d0   :  { %v2196_v31 = vmax.f32 %v5480_v22, 0.0  ;;  %v5485_v16 = vpop.f32.mrb[56].mxu1 }
 0x7d1   :  { %v5488_v40 = vpop.f32.mrb[57].mxu1  ;;  %v3584_v3 = vpack.c.bf16 %v2195_v58, %v2193_v1 }
 0x7d2   :  { %v3582_v17 = vpack.c.bf16 %v2196_v31, %v2194_v0 }
 0x7d4   :  { %3583 = vmatprep.subr.bf16.mxu0 %v3582_v17  ;;  %v5498_v60 = vpop.f32.mrb[58].mxu1 }
 0x7d5   :  { %3585 = vmatpush1.bf16.msra.mxu0 %v3584_v3  ;;  %v5500_v11 = vpop.f32.mrb[59].mxu1 }
 0x7d8   :  { %3053 = vmatmul.mubr.msk.f32.vlgmr.msra.gmra.mrb[48].mxu0 %vm1098_vm7, %v3045_v47  ;;  %v5506_v42 = vpop.f32.mrb[60].mxu1 }
 0x7d9   :  { %v5508_v57 = vpop.f32.mrb[61].mxu1  ;;  %2309 = vmatprep.mubr.f32.mxu0 %v5731_v2 }
 0x7dc   :  { %3054 = vmatmul.mubr.msk.f32.gmra.mrb[50].mxu0 %vm1098_vm7, %v3046_v5  ;;  %v5515_v10 = vpop.f32.mrb[62].mxu1 }
 0x7dd   :  { %v5517_v20 = vpop.f32.mrb[63].mxu1  ;;  %2315 = vmatprep.mubr.f32.mxu0 %v5731_v2 }
 0x7e0   :  { %3055 = vmatmul.mubr.msk.f32.gmra.mrb[52].mxu0 %vm1098_vm7, %v3047_v49 }
 0x7e1   :  { %2321 = vmatprep.mubr.f32.mxu0 %v5731_v2 }
 0x7e4   :  { %3056 = vmatmul.mubr.msk.f32.gmra.mrb[54].mxu0 %vm1098_vm7, %v3048_v35 }
 0x8ab   :  { %v2305_v25 = vpop.f32.mrb[48].mxu0 }
 0x8ac   :  { %v2306_v23 = vadd.f32 %v2305_v25, %v2210_v45  ;;  %v2307_v48 = vpop.f32.mrb[49].mxu0 }
 0x8ad   :  { %v2308_v12 = vadd.f32 %v2307_v48, %v2210_v45  ;;  %v2389_v48 = vpop.permute.xlu0 %2388 }
 0x8ae   :  { %v3057_v34 = vmul.f32 -1.442695, %v2306_v23 }
 0x8af   :  { %v3058_v33 = vmul.f32 -1.442695, %v2308_v12  ;;  %v2311_v30 = vpop.f32.mrb[50].mxu0  ;;  %v2394_v12 = vpop.permute.xlu1 %2393 }
 0x8b0   :  { %3733 = vpow2.f32 %v3057_v34  ;;  %v2312_v29 = vadd.f32 %v2311_v30, %v2215_v56  ;;  %v2313_v53 = vpop.f32.mrb[51].mxu0 }
 0x8b1   :  { %3735 = vpow2.f32 %v3058_v33  ;;  %v2314_v37 = vadd.f32 %v2313_v53, %v2215_v56 }
 0x8b2   :  { %v3059_v24 = vmul.f32 -1.442695, %v2312_v29 }
 0x8b3   :  { %v3060_v61 = vmul.f32 -1.442695, %v2314_v37  ;;  %v2317_v36 = vpop.f32.mrb[52].mxu0  ;;  %v2399_v37 = vpop.permute.xlu0 %2398 }
 0x8b4   :  { %3737 = vpow2.f32 %v3059_v24  ;;  %v2318_v44 = vadd.f32 %v2317_v36, %v2220_v38  ;;  %v2319_v43 = vpop.f32.mrb[53].mxu0  ;;  %v5529_v24 = vpop.permute.xlu1 %2403 }
 0x8b5   :  { %3739 = vpow2.f32 %v3060_v61  ;;  %v2320_v32 = vadd.f32 %v2319_v43, %v2220_v38 }
 0x8b6   :  { %v3061_v41 = vmul.f32 -1.442695, %v2318_v44 }
 0x8b7   :  { %v3062_v54 = vmul.f32 -1.442695, %v2320_v32  ;;  %v2323_v55 = vpop.f32.mrb[54].mxu0 }
 0x8b8   :  { %3741 = vpow2.f32 %v3061_v41  ;;  %v2324_v14 = vadd.f32 %v2323_v55, %v2225_v9  ;;  %v2325_v6 = vpop.f32.mrb[55].mxu0 }
 0x8b9   :  { %3743 = vpow2.f32 %v3062_v54  ;;  %v2326_v17 = vadd.f32 %v2325_v6, %v2225_v9  ;;  %v2555_v6 = vpop.permute.xlu0 %2554 }
 0x8ba   :  { %v3734_v3 = vpop.eup %3733  ;;  %v3063_v47 = vmul.f32 -1.442695, %v2324_v14 }
 0x8bb   :  { %v3736_v5 = vpop.eup %3735  ;;  %v2352_v49 = vadd.f32 1.0, %v3734_v3  ;;  %v3064_v35 = vmul.f32 -1.442695, %v2326_v17  ;;  %v2560_v17 = vpop.permute.xlu1 %2559 }
 0x8bc   :  { %v2353_v45 = vadd.f32 1.0, %v3736_v5  ;;  %3745 = vpow2.f32 %v3063_v47 }
 0x8bd   :  { %3747 = vrcp.f32 %v2352_v49  ;;  %v2485_v49 = vadd.f32 %v5485_v16, %v2389_v48 }
 0x8be   :  { %v3738_v25 = vpop.eup %3737  ;;  %3749 = vrcp.f32 %v2353_v45 }
 0x8bf   :  { %v3740_v23 = vpop.eup %3739  ;;  %v2354_v34 = vadd.f32 1.0, %v3738_v25  ;;  %3751 = vpow2.f32 %v3064_v35 }
 0x8c0   :  { %v2355_v56 = vadd.f32 1.0, %v3740_v23 }
 0x8c1   :  { %3753 = vrcp.f32 %v2354_v34 }
 0x8c2   :  { %v3742_v33 = vpop.eup %3741  ;;  %3755 = vrcp.f32 %v2355_v56 }
 0x8c3   :  { %v3744_v30 = vpop.eup %3743  ;;  %v2356_v29 = vadd.f32 1.0, %v3742_v33  ;;  %v2491_v33 = vadd.f32 %v5498_v60, %v2394_v12 }
 0x8c4   :  { %v2357_v53 = vadd.f32 1.0, %v3744_v30 }
 0x8c5   :  { %3757 = vrcp.f32 %v2356_v29  ;;  %v2593_v29 = vpop.permute.xlu1 %2592 }
 0x8c6   :  { %v3746_v38 = vpop.eup %3745  ;;  %3759 = vrcp.f32 %v2357_v53 }
 0x8c7   :  { %v3748_v61 = vpop.eup %3747  ;;  %v2358_v36 = vadd.f32 1.0, %v3746_v38 }
 0x8c8   :  { %v3750_v44 = vpop.eup %3749  ;;  %v2520_v43 = vsub.f32 1.0, %v3748_v61  ;;  %v2512_v9 = vmul.f32 %v3748_v61, %v5397_v46  ;;  %v2487_v46 = vadd.f32 %v5488_v40, %v2389_v48  ;;  %v2588_v48 = vpop.permute.xlu0 %2587 }
 0x8c9   :  { %v3752_v32 = vpop.eup %3751  ;;  %v2521_v41 = vsub.f32 1.0, %v3750_v44  ;;  %3761 = vrcp.f32 %v2358_v36  ;;  %v2513_v3 = vmul.f32 %v3750_v44, %v5400_v27 }
 0x8ca   :  { %v2528_v54 = vmul.f32 %v2520_v43, %v2189_v15  ;;  %v2359_v55 = vadd.f32 1.0, %v3752_v32  ;;  %v2497_v43 = vadd.f32 %v5506_v42, %v2399_v37 }
 0x8cb   :  { %v3754_v14 = vpop.eup %3753  ;;  %v2529_v47 = vmul.f32 %v2521_v41, %v2190_v26  ;;  %v2499_v41 = vadd.f32 %v5508_v57, %v2399_v37  ;;  %v2503_v57 = vadd.f32 %v5515_v10, %v5529_v24 }
 0x8cc   :  { %v3756_v5 = vpop.eup %3755  ;;  %v2536_v35 = vadd.f32 %v2528_v54, %v2512_v9  ;;  %v2522_v45 = vsub.f32 1.0, %v3754_v14  ;;  %3763 = vrcp.f32 %v2359_v55  ;;  %v2514_v15 = vmul.f32 %v3754_v14, %v5403_v18  ;;  %v2565_v55 = vpop.permute.xlu0 %2564 }
 0x8cd   :  { %v2537_v25 = vadd.f32 %v2529_v47, %v2513_v3  ;;  %v2523_v13 = vsub.f32 1.0, %v3756_v5  ;;  %v2515_v50 = vmul.f32 %v3756_v5, %v5406_v51  ;;  %v2493_v18 = vadd.f32 %v5500_v11, %v2394_v12  ;;  %v2570_v14 = vpop.permute.xlu1 %2569 }
 0x8ce   :  { %v2530_v23 = vmul.f32 %v2522_v45, %v2191_v8  ;;  %v2544_v34 = vadd.f32 %v2536_v35, %v2485_v49 }
 0x8cf   :  { %v3758_v27 = vpop.eup %3757  ;;  %v2531_v26 = vmul.f32 %v2523_v13, %v2192_v52  ;;  %v2545_v16 = vadd.f32 %v2537_v25, %v2487_v46  ;;  %v2505_v46 = vadd.f32 %v5517_v20, %v5529_v24 }
 0x8d0   :  { %v3760_v56 = vpop.eup %3759  ;;  %v2538_v30 = vadd.f32 %v2530_v23, %v2514_v15  ;;  %v2524_v40 = vsub.f32 1.0, %v3758_v27  ;;  %v2572_v8 = vmul.f32 %v2555_v6, %v2544_v34  ;;  %v2516_v38 = vmul.f32 %v3758_v27, %v5418_v59  ;;  %v2598_v13 = vpop.permute.xlu0 %2597 }
 0x8d1   :  { %v2539_v53 = vadd.f32 %v2531_v26, %v2515_v50  ;;  %v2525_v63 = vsub.f32 1.0, %v3760_v56  ;;  %v2517_v61 = vmul.f32 %v3760_v56, %v5421_v19  ;;  %v2573_v44 = vmul.f32 %v2555_v6, %v2545_v16  ;;  %v2694_v56 = vld [vmem:[%s5634_s14 + $0x8] sm:$0xff] }
 0x8d2   :  { %v2532_v51 = vmul.f32 %v2524_v40, %v2193_v1  ;;  %v2546_v28 = vadd.f32 %v2538_v30, %v2491_v33  ;;  %v2605_v9 = vadd.f32 %v2588_v48, %v2572_v8  ;;  %2789 = vmatprep.mubr.f32.mxu0 %v2694_v56  ;;  %v2702_v33 = vld [vmem:[%s5635_s15 + $0x8] sm:$0xff]  ;;  %v2701_v30 = vld [vmem:[%s5635_s15] sm:$0xff]  ;;  %v2704_v40 = vld [vmem:[%s5635_s15 + $0x18] sm:$0xff] }
 0x8d3   :  { %v3762_v52 = vpop.eup %3761  ;;  %v2533_v60 = vmul.f32 %v2525_v63, %v2194_v0  ;;  %v2547_v36 = vadd.f32 %v2539_v53, %v2493_v18  ;;  %v2606_v42 = vadd.f32 %v2588_v48, %v2573_v44  ;;  %v2703_v48 = vld [vmem:[%s5635_s15 + $0x10] sm:$0xff] }
 0x8d4   :  { %v2540_v11 = vadd.f32 %v2532_v51, %v2516_v38  ;;  %v2526_v12 = vsub.f32 1.0, %v3762_v52  ;;  %v2574_v32 = vmul.f32 %v2560_v17, %v2546_v28  ;;  %v2518_v54 = vmul.f32 %v3762_v52, %v5424_v62 }
 0x8d5   :  { %v2541_v59 = vadd.f32 %v2533_v60, %v2517_v61  ;;  %v2575_v39 = vmul.f32 %v2560_v17, %v2547_v36 }
 0x8d6   :  { %v3764_v1 = vpop.eup %3763  ;;  %v2534_v19 = vmul.f32 %v2526_v12, %v2195_v58  ;;  %v2607_v7 = vadd.f32 %v2593_v29, %v2574_v32  ;;  %v2548_v0 = vadd.f32 %v2540_v11, %v2497_v43 }
 0x8d7   :  { %v2527_v6 = vsub.f32 1.0, %v3764_v1  ;;  %v2608_v3 = vadd.f32 %v2593_v29, %v2575_v39  ;;  %v2549_v47 = vadd.f32 %v2541_v59, %v2499_v41  ;;  %v2519_v49 = vmul.f32 %v3764_v1, %v5427_v4  ;;  %v2603_v4 = vpop.permute.xlu1 %2602  ;;  %v2815_v29 = vld [vmem:[%s5636_s17] sm:$0xf] }
 0x8d8   :  { %v2542_v37 = vadd.f32 %v2534_v19, %v2518_v54  ;;  %v3641_v5 = vpack.i.bf16 %v2607_v7, %v2605_v9  ;;  %v3596_v17 = vpack.c.bf16 %v2607_v7, %v2605_v9  ;;  %v2576_v45 = vmul.f32 %v2565_v55, %v2548_v0 }
 0x8d9   :  { %v2535_v62 = vmul.f32 %v2527_v6, %v2196_v31  ;;  %v3646_v21 = vpack.i.bf16 %v2608_v3, %v2606_v42  ;;  %v3594_v58 = vpack.c.bf16 %v2608_v3, %v2606_v42  ;;  %v2577_v22 = vmul.f32 %v2565_v55, %v2549_v47 }
 0x8da   :  { %3642 = vrot.lane.b32.xlu1 %v3641_v5, %s3768_s23  ;;  %v2550_v35 = vadd.f32 %v2542_v37, %v2503_v57  ;;  %v2609_v31 = vadd.f32 %v2598_v13, %v2576_v45 }
 0x8db   :  { %v2543_v25 = vadd.f32 %v2535_v62, %v2519_v49  ;;  %3647 = vrot.lane.b32.xlu0 %v3646_v21, %s3768_s23  ;;  %3595 = vmatprep.subr.bf16.mxu0 %v3594_v58  ;;  %v2610_v26 = vadd.f32 %v2598_v13, %v2577_v22 }
 0x8dc   :  { %3597 = vmatpush3.bf16.msra.mxu0 %v3596_v17  ;;  %v2578_v10 = vmul.f32 %v2570_v14, %v2550_v35 }
 0x8dd   :  { %v2551_v15 = vadd.f32 %v2543_v25, %v2505_v46 }
 0x8de   :  { %v2611_v23 = vadd.f32 %v2603_v4, %v2578_v10 }
 0x8df   :  { %v2579_v34 = vmul.f32 %v2570_v14, %v2551_v15 }
 0x8e0   :  { %v3651_v27 = vpack.i.bf16 %v2611_v23, %v2609_v31  ;;  %v3600_v50 = vpack.c.bf16 %v2611_v23, %v2609_v31  ;;  %v2693_v31 = vld [vmem:[%s5634_s14] sm:$0xff]  ;;  %v2696_v23 = vld [vmem:[%s5634_s14 + $0x18] sm:$0xff] }
 0x8e1   :  { %v2612_v16 = vadd.f32 %v2603_v4, %v2579_v34  ;;  %v2695_v34 = vld [vmem:[%s5634_s14 + $0x10] sm:$0xff] }
 0x8e2   :  { %3652 = vrot.lane.b32.xlu1 %v3651_v27, %s3768_s23 }
 0x8e3   :  { %v3656_v20 = vpack.i.bf16 %v2612_v16, %v2610_v26  ;;  %v3598_v24 = vpack.c.bf16 %v2612_v16, %v2610_v26  ;;  %v2700_v26 = vld [vmem:[%s5634_s14 + $0x38] sm:$0xff]  ;;  %v2699_v16 = vld [vmem:[%s5634_s14 + $0x30] sm:$0xff] }
 0x8e5   :  { %3657 = vrot.lane.b32.xlu0 %v3656_v20, %s3768_s23  ;;  %3599 = vmatprep.subr.bf16.mxu0 %v3598_v24 }
 0x8e6   :  { %3601 = vmatpush3.bf16.msra.mxu0 %v3600_v50  ;;  %3667 = vrot.lane.b32.xlu1 %v3641_v5, %s3769_s8  ;;  %v2697_v50 = vld [vmem:[%s5634_s14 + $0x20] sm:$0xff] }
 0x8e9   :  { %3662 = vrot.lane.b32.xlu0 %v3646_v21, %s3769_s8 }
 0x8ea   :  { %3672 = vrot.lane.b32.xlu1 %v3651_v27, %s3769_s8 }
 0x8ed   :  { %3677 = vrot.lane.b32.xlu0 %v3656_v20, %s3769_s8 }
 0x8ee   :  { %3687 = vrot.lane.b32.xlu1 %v3641_v5, %s3767_s1 }
 0x8f1   :  { %3682 = vrot.lane.b32.xlu0 %v3646_v21, %s3767_s1 }
 0x8f2   :  { %3697 = vrot.lane.b32.xlu1 %v3651_v27, %s3767_s1  ;;  %v2698_v27 = vld [vmem:[%s5634_s14 + $0x28] sm:$0xff] }
 0x8f5   :  { %3692 = vrot.lane.b32.xlu0 %v3656_v20, %s3767_s1  ;;  %v3770_v20 = vmov 0.0|0.0  }
 0x8f6   :  { %2712 = vperm.xlu1 %3640, %v2702_v33   ;;  %3626 = vmatprep.subr.bf16.mxu1 %v3770_v20 }
 0x8f9   :  { %2707 = vperm.xlu0 %3639, %v2701_v30  }
 0x8fa   :  { %2722 = vperm.xlu1 %3640, %v2704_v40  }
 0x8fd   :  { %2717 = vperm.xlu0 %3639, %v2703_v48  }
 0x901   :  { %2818 = vperm.xlu0 %3639, %v2815_v29  }
 0x94c   :  { %v3643_v18 = vpop.permute.xlu1 %3642 }
 0x94d   :  { %v3645_v53 = vunpack.i.h.bf16 %v3643_v18  ;;  %v3644_v63 = vunpack.i.l.bf16 %v3643_v18  ;;  %v3648_v8 = vpop.permute.xlu0 %3647 }
 0x94e   :  { %v3650_v38 = vunpack.i.h.bf16 %v3648_v8  ;;  %v3649_v51 = vunpack.i.l.bf16 %v3648_v8 }
 0x94f   :  { %v3604_v52 = vpack.c.bf16 %v3645_v53, %v3644_v63 }
 0x950   :  { %v3602_v28 = vpack.c.bf16 %v3650_v38, %v3649_v51 }
 0x952   :  { %3603 = vmatprep.subr.bf16.mxu0 %v3602_v28 }
 0x953   :  { %3605 = vmatpush3.bf16.msra.mxu0 %v3604_v52 }
 0x954   :  { %v3653_v61 = vpop.permute.xlu1 %3652 }
 0x955   :  { %v3655_v60 = vunpack.i.h.bf16 %v3653_v61  ;;  %v3654_v36 = vunpack.i.l.bf16 %v3653_v61 }
 0x957   :  { %v3658_v44 = vpop.permute.xlu0 %3657  ;;  %v3608_v41 = vpack.c.bf16 %v3655_v60, %v3654_v36 }
 0x958   :  { %v3660_v43 = vunpack.i.h.bf16 %v3658_v44  ;;  %v3659_v11 = vunpack.i.l.bf16 %v3658_v44  ;;  %v3668_v12 = vpop.permute.xlu1 %3667 }
 0x959   :  { %v3670_v59 = vunpack.i.h.bf16 %v3668_v12  ;;  %v3669_v9 = vunpack.i.l.bf16 %v3668_v12 }
 0x95a   :  { %v3606_v32 = vpack.c.bf16 %v3660_v43, %v3659_v11 }
 0x95b   :  { %v3663_v39 = vpop.permute.xlu0 %3662  ;;  %v3612_v0 = vpack.c.bf16 %v3670_v59, %v3669_v9  ;;  %v2814_v9 = vld [vmem:[%s5637_s16] sm:$0xf] }
 0x95c   :  { %v3665_v1 = vunpack.i.h.bf16 %v3663_v39  ;;  %v3664_v54 = vunpack.i.l.bf16 %v3663_v39  ;;  %3607 = vmatprep.subr.bf16.mxu0 %v3606_v32  ;;  %v3673_v19 = vpop.permute.xlu1 %3672 }
 0x95d   :  { %3609 = vmatpush3.bf16.msra.mxu0 %v3608_v41  ;;  %v3675_v55 = vunpack.i.h.bf16 %v3673_v19  ;;  %v3674_v14 = vunpack.i.l.bf16 %v3673_v19 }
 0x95e   :  { %v3610_v7 = vpack.c.bf16 %v3665_v1, %v3664_v54 }
 0x95f   :  { %v3678_v6 = vpop.permute.xlu0 %3677  ;;  %v3616_v37 = vpack.c.bf16 %v3675_v55, %v3674_v14 }
 0x960   :  { %v3680_v42 = vunpack.i.h.bf16 %v3678_v6  ;;  %v3679_v3 = vunpack.i.l.bf16 %v3678_v6  ;;  %3611 = vmatprep.subr.bf16.mxu0 %v3610_v7  ;;  %v3688_v47 = vpop.permute.xlu1 %3687 }
 0x961   :  { %3613 = vmatpush3.bf16.msra.mxu0 %v3612_v0  ;;  %v3690_v5 = vunpack.i.h.bf16 %v3688_v47  ;;  %v3689_v17 = vunpack.i.l.bf16 %v3688_v47 }
 0x962   :  { %v3614_v57 = vpack.c.bf16 %v3680_v42, %v3679_v3 }
 0x963   :  { %v3683_v49 = vpop.permute.xlu0 %3682  ;;  %v3620_v45 = vpack.c.bf16 %v3690_v5, %v3689_v17 }
 0x964   :  { %v3685_v62 = vunpack.i.h.bf16 %v3683_v49  ;;  %v3684_v21 = vunpack.i.l.bf16 %v3683_v49  ;;  %3615 = vmatprep.subr.bf16.mxu0 %v3614_v57  ;;  %v3698_v58 = vpop.permute.xlu1 %3697 }
 0x965   :  { %3617 = vmatpush3.bf16.msra.mxu0 %v3616_v37  ;;  %v3700_v46 = vunpack.i.h.bf16 %v3698_v58  ;;  %v3699_v25 = vunpack.i.l.bf16 %v3698_v58 }
 0x966   :  { %v3618_v35 = vpack.c.bf16 %v3685_v62, %v3684_v21 }
 0x967   :  { %v3693_v10 = vpop.permute.xlu0 %3692  ;;  %v3624_v22 = vpack.c.bf16 %v3700_v46, %v3699_v25 }
 0x968   :  { %v3695_v13 = vunpack.i.h.bf16 %v3693_v10  ;;  %v3694_v4 = vunpack.i.l.bf16 %v3693_v10  ;;  %3619 = vmatprep.subr.bf16.mxu0 %v3618_v35 }
 0x969   :  { %3621 = vmatpush3.bf16.msra.mxu0 %v3620_v45 }
 0x96a   :  { %v3622_v15 = vpack.c.bf16 %v3695_v13, %v3694_v4 }
 0x96c   :  { %3623 = vmatprep.subr.bf16.mxu0 %v3622_v15 }
 0x96d   :  { %3625 = vmatpush3.bf16.msra.mxu0 %v3624_v22 }
 0x970   :  { %2790 = vmatmul.mubr.f32.vlgmr.msra.gmra.mrb[56].mxu0 %v2693_v31 }
 0x971   :  { %2794 = vmatprep.mubr.f32.mxu0 %v2696_v23 }
 0x974   :  { %2795 = vmatmul.mubr.f32.gmra.mrb[58].mxu0 %v2695_v34 }
 0x975   :  { %2799 = vmatprep.mubr.f32.mxu0 %v2698_v27  ;;  %v2713_v53 = vpop.permute.xlu1 %2712 }
 0x978   :  { %2800 = vmatmul.mubr.f32.gmra.mrb[60].mxu0 %v2697_v50  ;;  %v2708_v40 = vpop.permute.xlu0 %2707 }
 0x979   :  { %2804 = vmatprep.mubr.f32.mxu0 %v2700_v26  ;;  %v2723_v11 = vpop.permute.xlu1 %2722 }
 0x97c   :  { %2805 = vmatmul.mubr.f32.gmra.mrb[62].mxu0 %v2699_v16  ;;  %v2718_v36 = vpop.permute.xlu0 %2717 }
 0x980   :  { %v2819_v39 = vpop.permute.xlu0 %2818 }
 0xa43   :  { %v3118_v24 = vpop.f32.mrb[56].mxu0 }
 0xa44   :  { %v3119_v56 = vpop.f32.mrb[57].mxu0 }
 0xa45   :  { %v3120_v33 = vadd.f32 %v3119_v56, %v3118_v24 }
 0xa47   :  { %v3121_v30 = vpop.f32.mrb[58].mxu0  ;;  %v2792_v29 = vadd.f32 %v3120_v33, %v2708_v40 }
 0xa48   :  { %v3122_v48 = vpop.f32.mrb[59].mxu0 }
 0xa49   :  { %v3123_v18 = vadd.f32 %v3122_v48, %v3121_v30  ;;  %v2810_v51 = vmax.f32 %v2792_v29, 0.0 }
 0xa4b   :  { %v2797_v63 = vadd.f32 %v3123_v18, %v2713_v53  ;;  %v3124_v8 = vpop.f32.mrb[60].mxu0 }
 0xa4c   :  { %v3125_v38 = vpop.f32.mrb[61].mxu0 }
 0xa4d   :  { %v2811_v28 = vmax.f32 %v2797_v63, 0.0  ;;  %v3126_v52 = vadd.f32 %v3125_v38, %v3124_v8 }
 0xa4f   :  { %v3627_v61 = vpack.c.bf16 %v2811_v28, %v2810_v51  ;;  %v3127_v60 = vpop.f32.mrb[62].mxu0  ;;  %v2802_v2 = vadd.f32 %v3126_v52, %v2718_v36 }
 0xa50   :  { %v3128_v44 = vpop.f32.mrb[63].mxu0 }
 0xa51   :  { %v3129_v43 = vadd.f32 %v3128_v44, %v3127_v60  ;;  %3628 = vmatpush3.bf16.msra.mxu1 %v3627_v61  ;;  %v2812_v32 = vmax.f32 %v2802_v2, 0.0 }
 0xa52   :  { %3629 = vmatprep.subr.bf16.mxu1 %v3770_v20 }
 0xa53   :  { %v2807_v12 = vadd.f32 %v3129_v43, %v2723_v11 }
 0xa55   :  { %v2813_v41 = vmax.f32 %v2807_v12, 0.0 }
 0xa57   :  { %v3630_v59 = vpack.c.bf16 %v2813_v41, %v2812_v32 }
 0xa59   :  { %3631 = vmatpush3.bf16.msra.mxu1 %v3630_v59 }
 0xa5c   :  { %3144 = vmatmul.mubr.msk.f32.vlgmr.msra.gmra.mrb[64].mxu1 %vm1276_vm8, %v2814_v9 }
 0xb2f   :  { %v2890_v1 = vpop.f32.mrb[64].mxu1 }
 0xb30   :  { %v2891_v54 = vadd.f32 %v2890_v1, %v2819_v39  ;;  %v3145_v19 = vpop.f32.mrb[65].mxu1 }
 0xb32   :  { %2895 = vst.msk [vmem:[%s5638_s18] sm:$0xf] %vm2894_vm10, %v2891_v54 }

</bundles_post_ra>
